<compile_context>
chip_gen: v5e
topology: v5e:2x2
jax: 0.10.0
libtpu: 0.0.40
codegen_flags: <defaults>
</compile_context>

<pallas_src>
import functools

import jax
import jax.numpy as jnp
from jax import lax
from jax.experimental import pallas as pl
from jax.experimental.pallas import tpu as pltpu

K = 7
PAD = 3


def _sa_kernel(w_ref, x_ref, o_ref, sum_ref, max_ref, pad_ref, *, H, W, C, Ct):
    """One (batch, C-tile) grid step.

    w_ref   : SMEM (2*K*K,) f32 conv weights, layout [in_ch(avg,max), kh, kw]
    x_ref   : VMEM (1, Ct, H*W) unpadded input tile (lane-dense spatial axis)
    o_ref   : VMEM (1, 1, H, W) output block (written on the last C tile)
    sum_ref : VMEM (1, H*W) f32 running channel sum
    max_ref : VMEM (1, H*W) f32 running channel max
    pad_ref : VMEM (2, H+6, W+6) f32 zero-padded avg/max maps (conv input)
    """
    c_idx = pl.program_id(1)
    n_c = pl.num_programs(1)
    HW = H * W
    Hp, Wp = H + 2 * PAD, W + 2 * PAD

    # ---- fused single pass over this C tile: partial sum + partial max ----------------
    part_sum = jnp.zeros((1, HW), jnp.float32)
    part_max = jnp.full((1, HW), -jnp.inf, jnp.float32)

    def _acc_chunk(blk, s, m):
        blk = blk.astype(jnp.float32)
        return (s + jnp.sum(blk, axis=0, keepdims=True),
                jnp.maximum(m, jnp.max(blk, axis=0, keepdims=True)))

    nch, rem = Ct // 8, Ct % 8
    if nch > 0:
        if nch <= 16:                                    # short: unroll statically
            for ci in range(nch):
                part_sum, part_max = _acc_chunk(
                    x_ref[0, ci * 8:(ci + 1) * 8, :], part_sum, part_max)
        else:                                            # long: rolled loop over 8-row chunks
            def _body(ci, carry):
                start = pl.multiple_of(ci * 8, 8)
                return _acc_chunk(x_ref[0, pl.ds(start, 8), :], *carry)
            part_sum, part_max = lax.fori_loop(0, nch, _body, (part_sum, part_max))
    if rem > 0:
        part_sum, part_max = _acc_chunk(x_ref[0, nch * 8:Ct, :], part_sum, part_max)

    # ---- accumulate across C tiles in VMEM scratch -------------------------------------
    @pl.when(c_idx == 0)
    def _init():
        sum_ref[...] = jnp.zeros((1, HW), jnp.float32)
        max_ref[...] = jnp.full((1, HW), -jnp.inf, jnp.float32)

    sum_ref[...] = sum_ref[...] + part_sum
    max_ref[...] = jnp.maximum(max_ref[...], part_max)

    # ---- last C tile: pad reduced maps in VMEM, 7x7 conv on VPU, sigmoid, store --------
    @pl.when(c_idx == n_c - 1)
    def _finalize():
        avg_flat = sum_ref[...] * jnp.float32(1.0 / C)   # (1, HW) channel mean
        max_flat = max_ref[...]                          # (1, HW) channel max

        # zero-padded 2-D maps (== conv padding=3); interior filled row by row
        pad_ref[...] = jnp.zeros((2, Hp, Wp), jnp.float32)
        for i in range(H):
            pad_ref[0, PAD + i:PAD + i + 1, PAD:PAD + W] = avg_flat[:, i * W:(i + 1) * W]
            pad_ref[1, PAD + i:PAD + i + 1, PAD:PAD + W] = max_flat[:, i * W:(i + 1) * W]

        # hoist the 98 SMEM weight reads out of the MAC loop
        w = [w_ref[i] for i in range(2 * K * K)]

        avg_p = pad_ref[0]                               # (Hp, Wp)
        max_p = pad_ref[1]
        acc = jnp.zeros((H, W), jnp.float32)
        for kw in range(K):                              # hoisted lane-direction shifts (7+7)
            a_kw = avg_p[:, kw:kw + W]                   # (Hp, W)
            m_kw = max_p[:, kw:kw + W]
            for kh in range(K):                          # cheap sublane-offset slices
                acc = acc + w[kh * K + kw] * a_kw[kh:kh + H, :]
                acc = acc + w[K * K + kh * K + kw] * m_kw[kh:kh + H, :]

        o_ref[0, 0] = jax.nn.sigmoid(acc).astype(o_ref.dtype)


def _pick_c_tile(C, HW, budget_bytes=4 * 1024 * 1024):
    """Largest BlockSpec-legal C tile whose (Ct, HW) f32 block fits the byte budget."""
    if C * HW * 4 <= budget_bytes:
        return C
    cap = min(C, max(8, budget_bytes // (HW * 4)))
    start = cap - (cap % 8)
    for d in range(start, 7, -8):                        # multiple of 8 that divides C
        if C % d == 0:
            return d
    return C                                             # fallback: single big tile


def spatial_attention(x, weight):
    """x: [N, C, H, W]; weight: [1, 2, 7, 7] -> sigmoid(conv7x7([mean_c, max_c])): [N, 1, H, W]."""
    N, C, H, W = x.shape
    HW = H * W

    x_flat = x.reshape(N, C, HW)                         # lane-dense spatial axis
    w_flat = weight.astype(jnp.float32).reshape(-1)      # (2*K*K,)

    Ct = _pick_c_tile(C, HW)
    n_c = C // Ct

    kernel = functools.partial(_sa_kernel, H=H, W=W, C=C, Ct=Ct)
    return pl.pallas_call(
        kernel,
        out_shape=jax.ShapeDtypeStruct((N, 1, H, W), x.dtype),
        grid_spec=pltpu.PrefetchScalarGridSpec(
            num_scalar_prefetch=0,
            grid=(N, n_c),                               # reduction axis (C tiles) last
            in_specs=[
                # tiny conv weights live in SMEM, read as scalars in the kernel
                pl.BlockSpec(memory_space=pltpu.MemorySpace.SMEM),
                # unpadded (1, Ct, H*W) input tile per grid step
                pl.BlockSpec((1, Ct, HW), lambda n, c: (n, c, 0)),
            ],
            out_specs=pl.BlockSpec((1, 1, H, W), lambda n, c: (n, 0, 0, 0)),
            scratch_shapes=[
                pltpu.VMEM((1, HW), jnp.float32),                         # running sum
                pltpu.VMEM((1, HW), jnp.float32),                         # running max
                pltpu.VMEM((2, H + 2 * PAD, W + 2 * PAD), jnp.float32),   # padded maps
            ],
        ),
        compiler_params=pltpu.CompilerParams(
            dimension_semantics=("parallel", "arbitrary"),
            vmem_limit_bytes=32 * 1024 * 1024,
        ),
    )(w_flat, x_flat)


def _reference(x, weight):
    avg = jnp.mean(x, axis=1, keepdims=True)
    mx = jnp.max(x, axis=1, keepdims=True)
    cat = jnp.concatenate([avg, mx], axis=1)
    out = lax.conv_general_dilated(
        cat, weight, window_strides=(1, 1),
        padding=((PAD, PAD), (PAD, PAD)),
        dimension_numbers=("NCHW", "OIHW", "NCHW"))
    return jax.nn.sigmoid(out)


if __name__ == "__main__":
    key = jax.random.PRNGKey(0)
    kx, kw = jax.random.split(key)

    N, C, H, W = 2, 4, 16, 16
    x = jax.random.normal(kx, (N, C, H, W), dtype=jnp.float32)

    # Conv2d(2, 1, 7, bias=False) weight: [out=1, in=2, 7, 7]
    fan_in = 2 * K * K
    bound = 1.0 / (fan_in ** 0.5)
    weight = jax.random.uniform(kw, (1, 2, K, K), dtype=jnp.float32,
                                minval=-bound, maxval=bound)

    out = spatial_attention(x, weight)
    out = jax.block_until_ready(out)

    ref = _reference(x, weight)
    assert out.shape == (N, 1, H, W)
    assert jnp.allclose(out, ref, atol=1e-5, rtol=1e-5), "mismatch vs reference"

    print("KERNEL_OK")
</pallas_src>

<mosaic_0001>
module attributes {stable_mosaic.version = 11 : i64} {
  func.func @_sa_kernel(%arg0: i32, %arg1: i32, %arg2: memref<98xf32, #tpu.memory_space<smem>>, %arg3: memref<1x4x256xf32, #tpu.memory_space<vmem>>, %arg4: memref<1x1x16x16xf32, #tpu.memory_space<vmem>>, %arg5: memref<1x256xf32, #tpu.memory_space<vmem>>, %arg6: memref<1x256xf32, #tpu.memory_space<vmem>>, %arg7: memref<2x22x22xf32, #tpu.memory_space<vmem>>) attributes {dimension_semantics = [#tpu.dimension_semantics<parallel>, #tpu.dimension_semantics<arbitrary>], iteration_bounds = array<i64: 2, 1>, scalar_prefetch = 0 : i64, scratch_operands = 3 : i64, tpu.core_type = #tpu.core_type<tc>, window_params = [{transform_indices = @transform_0, window_bounds = array<i64: 98>}, {transform_indices = @transform_1, window_bounds = array<i64: 1, 4, 256>}, {transform_indices = @transform_2, window_bounds = array<i64: 1, 1, 16, 16>}]} {
    %cst = arith.constant 0.000000e+00 : f32
    %0 = vector.broadcast %cst : f32 to vector<1x256xf32>
    %cst_0 = arith.constant 0xFF800000 : f32
    %1 = vector.broadcast %cst_0 : f32 to vector<1x256xf32>
    %c0 = arith.constant 0 : index
    %c0_1 = arith.constant 0 : index
    %c0_2 = arith.constant 0 : index
    %2 = vector.load %arg3[%c0, %c0_1, %c0_2] : memref<1x4x256xf32, #tpu.memory_space<vmem>>, vector<1x4x256xf32>
    %3 = vector.shape_cast %2 : vector<1x4x256xf32> to vector<4x256xf32>
    %cst_3 = arith.constant dense<0.000000e+00> : vector<256xf32>
    %4 = vector.multi_reduction <add>, %3, %cst_3 [0] : vector<4x256xf32> to vector<256xf32>
    %5 = vector.shape_cast %4 : vector<256xf32> to vector<1x256xf32>
    %6 = arith.addf %0, %5 : vector<1x256xf32>
    %cst_4 = arith.constant dense<0xFF800000> : vector<256xf32>
    %7 = vector.multi_reduction <maximumf>, %3, %cst_4 [0] : vector<4x256xf32> to vector<256xf32>
    %8 = vector.shape_cast %7 : vector<256xf32> to vector<1x256xf32>
    %9 = arith.maximumf %1, %8 : vector<1x256xf32>
    %c0_i32 = arith.constant 0 : i32
    %10 = arith.cmpi eq, %arg1, %c0_i32 : i32
    %11 = arith.extui %10 : i1 to i32
    %c0_i32_5 = arith.constant 0 : i32
    %12 = arith.cmpi ne, %11, %c0_i32_5 : i32
    scf.if %12 {
      %cst_16 = arith.constant 0.000000e+00 : f32
      %22 = vector.broadcast %cst_16 : f32 to vector<1x256xf32>
      %c0_17 = arith.constant 0 : index
      %c0_18 = arith.constant 0 : index
      %23 = vector.load %arg5[%c0_17, %c0_18] : memref<1x256xf32, #tpu.memory_space<vmem>>, vector<1x256xf32>
      tpu.vector_store %arg5[%c0_17, %c0_18], %22 {strides = array<i32>} : memref<1x256xf32, #tpu.memory_space<vmem>>, vector<1x256xf32>,
      %cst_19 = arith.constant 0xFF800000 : f32
      %24 = vector.broadcast %cst_19 : f32 to vector<1x256xf32>
      %c0_20 = arith.constant 0 : index
      %c0_21 = arith.constant 0 : index
      %25 = vector.load %arg6[%c0_20, %c0_21] : memref<1x256xf32, #tpu.memory_space<vmem>>, vector<1x256xf32>
      tpu.vector_store %arg6[%c0_20, %c0_21], %24 {strides = array<i32>} : memref<1x256xf32, #tpu.memory_space<vmem>>, vector<1x256xf32>,
    } else {
    }
    %c0_6 = arith.constant 0 : index
    %c0_7 = arith.constant 0 : index
    %13 = vector.load %arg5[%c0_6, %c0_7] : memref<1x256xf32, #tpu.memory_space<vmem>>, vector<1x256xf32>
    %14 = arith.addf %13, %6 : vector<1x256xf32>
    %c0_8 = arith.constant 0 : index
    %c0_9 = arith.constant 0 : index
    %15 = vector.load %arg5[%c0_8, %c0_9] : memref<1x256xf32, #tpu.memory_space<vmem>>, vector<1x256xf32>
    tpu.vector_store %arg5[%c0_8, %c0_9], %14 {strides = array<i32>} : memref<1x256xf32, #tpu.memory_space<vmem>>, vector<1x256xf32>,
    %c0_10 = arith.constant 0 : index
    %c0_11 = arith.constant 0 : index
    %16 = vector.load %arg6[%c0_10, %c0_11] : memref<1x256xf32, #tpu.memory_space<vmem>>, vector<1x256xf32>
    %17 = arith.maximumf %16, %9 : vector<1x256xf32>
    %c0_12 = arith.constant 0 : index
    %c0_13 = arith.constant 0 : index
    %18 = vector.load %arg6[%c0_12, %c0_13] : memref<1x256xf32, #tpu.memory_space<vmem>>, vector<1x256xf32>
    tpu.vector_store %arg6[%c0_12, %c0_13], %17 {strides = array<i32>} : memref<1x256xf32, #tpu.memory_space<vmem>>, vector<1x256xf32>,
    %c0_i32_14 = arith.constant 0 : i32
    %19 = arith.cmpi eq, %arg1, %c0_i32_14 : i32
    %20 = arith.extui %19 : i1 to i32
    %c0_i32_15 = arith.constant 0 : i32
    %21 = arith.cmpi ne, %20, %c0_i32_15 : i32
    scf.if %21 {
      %c0_16 = arith.constant 0 : index
      %c0_17 = arith.constant 0 : index
      %22 = vector.load %arg5[%c0_16, %c0_17] : memref<1x256xf32, #tpu.memory_space<vmem>>, vector<1x256xf32>
      %cst_18 = arith.constant 2.500000e-01 : f32
      %23 = vector.broadcast %cst_18 : f32 to vector<1x256xf32>
      %24 = arith.mulf %22, %23 : vector<1x256xf32>
      %c0_19 = arith.constant 0 : index
      %c0_20 = arith.constant 0 : index
      %25 = vector.load %arg6[%c0_19, %c0_20] : memref<1x256xf32, #tpu.memory_space<vmem>>, vector<1x256xf32>
      %cst_21 = arith.constant 0.000000e+00 : f32
      %26 = vector.broadcast %cst_21 : f32 to vector<2x22x22xf32>
      %c0_22 = arith.constant 0 : index
      %c0_23 = arith.constant 0 : index
      %c0_24 = arith.constant 0 : index
      %27 = vector.load %arg7[%c0_22, %c0_23, %c0_24] : memref<2x22x22xf32, #tpu.memory_space<vmem>>, vector<2x22x22xf32>
      tpu.vector_store %arg7[%c0_22, %c0_23, %c0_24], %26 {strides = array<i32>} : memref<2x22x22xf32, #tpu.memory_space<vmem>>, vector<2x22x22xf32>,
      %28 = vector.extract_strided_slice %24 {offsets = [0, 0], sizes = [1, 16], strides = [1, 1]} : vector<1x256xf32> to vector<1x16xf32>
      %c0_25 = arith.constant 0 : index
      %c3 = arith.constant 3 : index
      %c3_26 = arith.constant 3 : index
      %29 = vector.load %arg7[%c0_25, %c3, %c3_26] : memref<2x22x22xf32, #tpu.memory_space<vmem>>, vector<1x1x16xf32>
      %30 = vector.shape_cast %29 : vector<1x1x16xf32> to vector<1x16xf32>
      %31 = vector.shape_cast %28 : vector<1x16xf32> to vector<1x1x16xf32>
      tpu.vector_store %arg7[%c0_25, %c3, %c3_26], %31 {strides = array<i32>} : memref<2x22x22xf32, #tpu.memory_space<vmem>>, vector<1x1x16xf32>,
      %32 = vector.extract_strided_slice %25 {offsets = [0, 0], sizes = [1, 16], strides = [1, 1]} : vector<1x256xf32> to vector<1x16xf32>
      %c1 = arith.constant 1 : index
      %c3_27 = arith.constant 3 : index
      %c3_28 = arith.constant 3 : index
      %33 = vector.load %arg7[%c1, %c3_27, %c3_28] : memref<2x22x22xf32, #tpu.memory_space<vmem>>, vector<1x1x16xf32>
      %34 = vector.shape_cast %33 : vector<1x1x16xf32> to vector<1x16xf32>
      %35 = vector.shape_cast %32 : vector<1x16xf32> to vector<1x1x16xf32>
      tpu.vector_store %arg7[%c1, %c3_27, %c3_28], %35 {strides = array<i32>} : memref<2x22x22xf32, #tpu.memory_space<vmem>>, vector<1x1x16xf32>,
      %36 = vector.extract_strided_slice %24 {offsets = [0, 16], sizes = [1, 16], strides = [1, 1]} : vector<1x256xf32> to vector<1x16xf32>
      %c0_29 = arith.constant 0 : index
      %c4 = arith.constant 4 : index
      %c3_30 = arith.constant 3 : index
      %37 = vector.load %arg7[%c0_29, %c4, %c3_30] : memref<2x22x22xf32, #tpu.memory_space<vmem>>, vector<1x1x16xf32>
      %38 = vector.shape_cast %37 : vector<1x1x16xf32> to vector<1x16xf32>
      %39 = vector.shape_cast %36 : vector<1x16xf32> to vector<1x1x16xf32>
      tpu.vector_store %arg7[%c0_29, %c4, %c3_30], %39 {strides = array<i32>} : memref<2x22x22xf32, #tpu.memory_space<vmem>>, vector<1x1x16xf32>,
      %40 = vector.extract_strided_slice %25 {offsets = [0, 16], sizes = [1, 16], strides = [1, 1]} : vector<1x256xf32> to vector<1x16xf32>
      %c1_31 = arith.constant 1 : index
      %c4_32 = arith.constant 4 : index
      %c3_33 = arith.constant 3 : index
      %41 = vector.load %arg7[%c1_31, %c4_32, %c3_33] : memref<2x22x22xf32, #tpu.memory_space<vmem>>, vector<1x1x16xf32>
      %42 = vector.shape_cast %41 : vector<1x1x16xf32> to vector<1x16xf32>
      %43 = vector.shape_cast %40 : vector<1x16xf32> to vector<1x1x16xf32>
      tpu.vector_store %arg7[%c1_31, %c4_32, %c3_33], %43 {strides = array<i32>} : memref<2x22x22xf32, #tpu.memory_space<vmem>>, vector<1x1x16xf32>,
      %44 = vector.extract_strided_slice %24 {offsets = [0, 32], sizes = [1, 16], strides = [1, 1]} : vector<1x256xf32> to vector<1x16xf32>
      %c0_34 = arith.constant 0 : index
      %c5 = arith.constant 5 : index
      %c3_35 = arith.constant 3 : index
      %45 = vector.load %arg7[%c0_34, %c5, %c3_35] : memref<2x22x22xf32, #tpu.memory_space<vmem>>, vector<1x1x16xf32>
      %46 = vector.shape_cast %45 : vector<1x1x16xf32> to vector<1x16xf32>
      %47 = vector.shape_cast %44 : vector<1x16xf32> to vector<1x1x16xf32>
      tpu.vector_store %arg7[%c0_34, %c5, %c3_35], %47 {strides = array<i32>} : memref<2x22x22xf32, #tpu.memory_space<vmem>>, vector<1x1x16xf32>,
      %48 = vector.extract_strided_slice %25 {offsets = [0, 32], sizes = [1, 16], strides = [1, 1]} : vector<1x256xf32> to vector<1x16xf32>
      %c1_36 = arith.constant 1 : index
      %c5_37 = arith.constant 5 : index
      %c3_38 = arith.constant 3 : index
      %49 = vector.load %arg7[%c1_36, %c5_37, %c3_38] : memref<2x22x22xf32, #tpu.memory_space<vmem>>, vector<1x1x16xf32>
      %50 = vector.shape_cast %49 : vector<1x1x16xf32> to vector<1x16xf32>
      %51 = vector.shape_cast %48 : vector<1x16xf32> to vector<1x1x16xf32>
      tpu.vector_store %arg7[%c1_36, %c5_37, %c3_38], %51 {strides = array<i32>} : memref<2x22x22xf32, #tpu.memory_space<vmem>>, vector<1x1x16xf32>,
      %52 = vector.extract_strided_slice %24 {offsets = [0, 48], sizes = [1, 16], strides = [1, 1]} : vector<1x256xf32> to vector<1x16xf32>
      %c0_39 = arith.constant 0 : index
      %c6 = arith.constant 6 : index
      %c3_40 = arith.constant 3 : index
      %53 = vector.load %arg7[%c0_39, %c6, %c3_40] : memref<2x22x22xf32, #tpu.memory_space<vmem>>, vector<1x1x16xf32>
      %54 = vector.shape_cast %53 : vector<1x1x16xf32> to vector<1x16xf32>
      %55 = vector.shape_cast %52 : vector<1x16xf32> to vector<1x1x16xf32>
      tpu.vector_store %arg7[%c0_39, %c6, %c3_40], %55 {strides = array<i32>} : memref<2x22x22xf32, #tpu.memory_space<vmem>>, vector<1x1x16xf32>,
      %56 = vector.extract_strided_slice %25 {offsets = [0, 48], sizes = [1, 16], strides = [1, 1]} : vector<1x256xf32> to vector<1x16xf32>
      %c1_41 = arith.constant 1 : index
      %c6_42 = arith.constant 6 : index
      %c3_43 = arith.constant 3 : index
      %57 = vector.load %arg7[%c1_41, %c6_42, %c3_43] : memref<2x22x22xf32, #tpu.memory_space<vmem>>, vector<1x1x16xf32>
      %58 = vector.shape_cast %57 : vector<1x1x16xf32> to vector<1x16xf32>
      %59 = vector.shape_cast %56 : vector<1x16xf32> to vector<1x1x16xf32>
      tpu.vector_store %arg7[%c1_41, %c6_42, %c3_43], %59 {strides = array<i32>} : memref<2x22x22xf32, #tpu.memory_space<vmem>>, vector<1x1x16xf32>,
      %60 = vector.extract_strided_slice %24 {offsets = [0, 64], sizes = [1, 16], strides = [1, 1]} : vector<1x256xf32> to vector<1x16xf32>
      %c0_44 = arith.constant 0 : index
      %c7 = arith.constant 7 : index
      %c3_45 = arith.constant 3 : index
      %61 = vector.load %arg7[%c0_44, %c7, %c3_45] : memref<2x22x22xf32, #tpu.memory_space<vmem>>, vector<1x1x16xf32>
      %62 = vector.shape_cast %61 : vector<1x1x16xf32> to vector<1x16xf32>
      %63 = vector.shape_cast %60 : vector<1x16xf32> to vector<1x1x16xf32>
      tpu.vector_store %arg7[%c0_44, %c7, %c3_45], %63 {strides = array<i32>} : memref<2x22x22xf32, #tpu.memory_space<vmem>>, vector<1x1x16xf32>,
      %64 = vector.extract_strided_slice %25 {offsets = [0, 64], sizes = [1, 16], strides = [1, 1]} : vector<1x256xf32> to vector<1x16xf32>
      %c1_46 = arith.constant 1 : index
      %c7_47 = arith.constant 7 : index
      %c3_48 = arith.constant 3 : index
      %65 = vector.load %arg7[%c1_46, %c7_47, %c3_48] : memref<2x22x22xf32, #tpu.memory_space<vmem>>, vector<1x1x16xf32>
      %66 = vector.shape_cast %65 : vector<1x1x16xf32> to vector<1x16xf32>
      %67 = vector.shape_cast %64 : vector<1x16xf32> to vector<1x1x16xf32>
      tpu.vector_store %arg7[%c1_46, %c7_47, %c3_48], %67 {strides = array<i32>} : memref<2x22x22xf32, #tpu.memory_space<vmem>>, vector<1x1x16xf32>,
      %68 = vector.extract_strided_slice %24 {offsets = [0, 80], sizes = [1, 16], strides = [1, 1]} : vector<1x256xf32> to vector<1x16xf32>
      %c0_49 = arith.constant 0 : index
      %c8 = arith.constant 8 : index
      %c3_50 = arith.constant 3 : index
      %69 = vector.load %arg7[%c0_49, %c8, %c3_50] : memref<2x22x22xf32, #tpu.memory_space<vmem>>, vector<1x1x16xf32>
      %70 = vector.shape_cast %69 : vector<1x1x16xf32> to vector<1x16xf32>
      %71 = vector.shape_cast %68 : vector<1x16xf32> to vector<1x1x16xf32>
      tpu.vector_store %arg7[%c0_49, %c8, %c3_50], %71 {strides = array<i32>} : memref<2x22x22xf32, #tpu.memory_space<vmem>>, vector<1x1x16xf32>,
      %72 = vector.extract_strided_slice %25 {offsets = [0, 80], sizes = [1, 16], strides = [1, 1]} : vector<1x256xf32> to vector<1x16xf32>
      %c1_51 = arith.constant 1 : index
      %c8_52 = arith.constant 8 : index
      %c3_53 = arith.constant 3 : index
      %73 = vector.load %arg7[%c1_51, %c8_52, %c3_53] : memref<2x22x22xf32, #tpu.memory_space<vmem>>, vector<1x1x16xf32>
      %74 = vector.shape_cast %73 : vector<1x1x16xf32> to vector<1x16xf32>
      %75 = vector.shape_cast %72 : vector<1x16xf32> to vector<1x1x16xf32>
      tpu.vector_store %arg7[%c1_51, %c8_52, %c3_53], %75 {strides = array<i32>} : memref<2x22x22xf32, #tpu.memory_space<vmem>>, vector<1x1x16xf32>,
      %76 = vector.extract_strided_slice %24 {offsets = [0, 96], sizes = [1, 16], strides = [1, 1]} : vector<1x256xf32> to vector<1x16xf32>
      %c0_54 = arith.constant 0 : index
      %c9 = arith.constant 9 : index
      %c3_55 = arith.constant 3 : index
      %77 = vector.load %arg7[%c0_54, %c9, %c3_55] : memref<2x22x22xf32, #tpu.memory_space<vmem>>, vector<1x1x16xf32>
      %78 = vector.shape_cast %77 : vector<1x1x16xf32> to vector<1x16xf32>
      %79 = vector.shape_cast %76 : vector<1x16xf32> to vector<1x1x16xf32>
      tpu.vector_store %arg7[%c0_54, %c9, %c3_55], %79 {strides = array<i32>} : memref<2x22x22xf32, #tpu.memory_space<vmem>>, vector<1x1x16xf32>,
      %80 = vector.extract_strided_slice %25 {offsets = [0, 96], sizes = [1, 16], strides = [1, 1]} : vector<1x256xf32> to vector<1x16xf32>
      %c1_56 = arith.constant 1 : index
      %c9_57 = arith.constant 9 : index
      %c3_58 = arith.constant 3 : index
      %81 = vector.load %arg7[%c1_56, %c9_57, %c3_58] : memref<2x22x22xf32, #tpu.memory_space<vmem>>, vector<1x1x16xf32>
      %82 = vector.shape_cast %81 : vector<1x1x16xf32> to vector<1x16xf32>
      %83 = vector.shape_cast %80 : vector<1x16xf32> to vector<1x1x16xf32>
      tpu.vector_store %arg7[%c1_56, %c9_57, %c3_58], %83 {strides = array<i32>} : memref<2x22x22xf32, #tpu.memory_space<vmem>>, vector<1x1x16xf32>,
      %84 = vector.extract_strided_slice %24 {offsets = [0, 112], sizes = [1, 16], strides = [1, 1]} : vector<1x256xf32> to vector<1x16xf32>
      %c0_59 = arith.constant 0 : index
      %c10 = arith.constant 10 : index
      %c3_60 = arith.constant 3 : index
      %85 = vector.load %arg7[%c0_59, %c10, %c3_60] : memref<2x22x22xf32, #tpu.memory_space<vmem>>, vector<1x1x16xf32>
      %86 = vector.shape_cast %85 : vector<1x1x16xf32> to vector<1x16xf32>
      %87 = vector.shape_cast %84 : vector<1x16xf32> to vector<1x1x16xf32>
      tpu.vector_store %arg7[%c0_59, %c10, %c3_60], %87 {strides = array<i32>} : memref<2x22x22xf32, #tpu.memory_space<vmem>>, vector<1x1x16xf32>,
      %88 = vector.extract_strided_slice %25 {offsets = [0, 112], sizes = [1, 16], strides = [1, 1]} : vector<1x256xf32> to vector<1x16xf32>
      %c1_61 = arith.constant 1 : index
      %c10_62 = arith.constant 10 : index
      %c3_63 = arith.constant 3 : index
      %89 = vector.load %arg7[%c1_61, %c10_62, %c3_63] : memref<2x22x22xf32, #tpu.memory_space<vmem>>, vector<1x1x16xf32>
      %90 = vector.shape_cast %89 : vector<1x1x16xf32> to vector<1x16xf32>
      %91 = vector.shape_cast %88 : vector<1x16xf32> to vector<1x1x16xf32>
      tpu.vector_store %arg7[%c1_61, %c10_62, %c3_63], %91 {strides = array<i32>} : memref<2x22x22xf32, #tpu.memory_space<vmem>>, vector<1x1x16xf32>,
      %92 = vector.extract_strided_slice %24 {offsets = [0, 128], sizes = [1, 16], strides = [1, 1]} : vector<1x256xf32> to vector<1x16xf32>
      %c0_64 = arith.constant 0 : index
      %c11 = arith.constant 11 : index
      %c3_65 = arith.constant 3 : index
      %93 = vector.load %arg7[%c0_64, %c11, %c3_65] : memref<2x22x22xf32, #tpu.memory_space<vmem>>, vector<1x1x16xf32>
      %94 = vector.shape_cast %93 : vector<1x1x16xf32> to vector<1x16xf32>
      %95 = vector.shape_cast %92 : vector<1x16xf32> to vector<1x1x16xf32>
      tpu.vector_store %arg7[%c0_64, %c11, %c3_65], %95 {strides = array<i32>} : memref<2x22x22xf32, #tpu.memory_space<vmem>>, vector<1x1x16xf32>,
      %96 = vector.extract_strided_slice %25 {offsets = [0, 128], sizes = [1, 16], strides = [1, 1]} : vector<1x256xf32> to vector<1x16xf32>
      %c1_66 = arith.constant 1 : index
      %c11_67 = arith.constant 11 : index
      %c3_68 = arith.constant 3 : index
      %97 = vector.load %arg7[%c1_66, %c11_67, %c3_68] : memref<2x22x22xf32, #tpu.memory_space<vmem>>, vector<1x1x16xf32>
      %98 = vector.shape_cast %97 : vector<1x1x16xf32> to vector<1x16xf32>
      %99 = vector.shape_cast %96 : vector<1x16xf32> to vector<1x1x16xf32>
      tpu.vector_store %arg7[%c1_66, %c11_67, %c3_68], %99 {strides = array<i32>} : memref<2x22x22xf32, #tpu.memory_space<vmem>>, vector<1x1x16xf32>,
      %100 = vector.extract_strided_slice %24 {offsets = [0, 144], sizes = [1, 16], strides = [1, 1]} : vector<1x256xf32> to vector<1x16xf32>
      %c0_69 = arith.constant 0 : index
      %c12 = arith.constant 12 : index
      %c3_70 = arith.constant 3 : index
      %101 = vector.load %arg7[%c0_69, %c12, %c3_70] : memref<2x22x22xf32, #tpu.memory_space<vmem>>, vector<1x1x16xf32>
      %102 = vector.shape_cast %101 : vector<1x1x16xf32> to vector<1x16xf32>
      %103 = vector.shape_cast %100 : vector<1x16xf32> to vector<1x1x16xf32>
      tpu.vector_store %arg7[%c0_69, %c12, %c3_70], %103 {strides = array<i32>} : memref<2x22x22xf32, #tpu.memory_space<vmem>>, vector<1x1x16xf32>,
      %104 = vector.extract_strided_slice %25 {offsets = [0, 144], sizes = [1, 16], strides = [1, 1]} : vector<1x256xf32> to vector<1x16xf32>
      %c1_71 = arith.constant 1 : index
      %c12_72 = arith.constant 12 : index
      %c3_73 = arith.constant 3 : index
      %105 = vector.load %arg7[%c1_71, %c12_72, %c3_73] : memref<2x22x22xf32, #tpu.memory_space<vmem>>, vector<1x1x16xf32>
      %106 = vector.shape_cast %105 : vector<1x1x16xf32> to vector<1x16xf32>
      %107 = vector.shape_cast %104 : vector<1x16xf32> to vector<1x1x16xf32>
      tpu.vector_store %arg7[%c1_71, %c12_72, %c3_73], %107 {strides = array<i32>} : memref<2x22x22xf32, #tpu.memory_space<vmem>>, vector<1x1x16xf32>,
      %108 = vector.extract_strided_slice %24 {offsets = [0, 160], sizes = [1, 16], strides = [1, 1]} : vector<1x256xf32> to vector<1x16xf32>
      %c0_74 = arith.constant 0 : index
      %c13 = arith.constant 13 : index
      %c3_75 = arith.constant 3 : index
      %109 = vector.load %arg7[%c0_74, %c13, %c3_75] : memref<2x22x22xf32, #tpu.memory_space<vmem>>, vector<1x1x16xf32>
      %110 = vector.shape_cast %109 : vector<1x1x16xf32> to vector<1x16xf32>
      %111 = vector.shape_cast %108 : vector<1x16xf32> to vector<1x1x16xf32>
      tpu.vector_store %arg7[%c0_74, %c13, %c3_75], %111 {strides = array<i32>} : memref<2x22x22xf32, #tpu.memory_space<vmem>>, vector<1x1x16xf32>,
      %112 = vector.extract_strided_slice %25 {offsets = [0, 160], sizes = [1, 16], strides = [1, 1]} : vector<1x256xf32> to vector<1x16xf32>
      %c1_76 = arith.constant 1 : index
      %c13_77 = arith.constant 13 : index
      %c3_78 = arith.constant 3 : index
      %113 = vector.load %arg7[%c1_76, %c13_77, %c3_78] : memref<2x22x22xf32, #tpu.memory_space<vmem>>, vector<1x1x16xf32>
      %114 = vector.shape_cast %113 : vector<1x1x16xf32> to vector<1x16xf32>
      %115 = vector.shape_cast %112 : vector<1x16xf32> to vector<1x1x16xf32>
      tpu.vector_store %arg7[%c1_76, %c13_77, %c3_78], %115 {strides = array<i32>} : memref<2x22x22xf32, #tpu.memory_space<vmem>>, vector<1x1x16xf32>,
      %116 = vector.extract_strided_slice %24 {offsets = [0, 176], sizes = [1, 16], strides = [1, 1]} : vector<1x256xf32> to vector<1x16xf32>
      %c0_79 = arith.constant 0 : index
      %c14 = arith.constant 14 : index
      %c3_80 = arith.constant 3 : index
      %117 = vector.load %arg7[%c0_79, %c14, %c3_80] : memref<2x22x22xf32, #tpu.memory_space<vmem>>, vector<1x1x16xf32>
      %118 = vector.shape_cast %117 : vector<1x1x16xf32> to vector<1x16xf32>
      %119 = vector.shape_cast %116 : vector<1x16xf32> to vector<1x1x16xf32>
      tpu.vector_store %arg7[%c0_79, %c14, %c3_80], %119 {strides = array<i32>} : memref<2x22x22xf32, #tpu.memory_space<vmem>>, vector<1x1x16xf32>,
      %120 = vector.extract_strided_slice %25 {offsets = [0, 176], sizes = [1, 16], strides = [1, 1]} : vector<1x256xf32> to vector<1x16xf32>
      %c1_81 = arith.constant 1 : index
      %c14_82 = arith.constant 14 : index
      %c3_83 = arith.constant 3 : index
      %121 = vector.load %arg7[%c1_81, %c14_82, %c3_83] : memref<2x22x22xf32, #tpu.memory_space<vmem>>, vector<1x1x16xf32>
      %122 = vector.shape_cast %121 : vector<1x1x16xf32> to vector<1x16xf32>
      %123 = vector.shape_cast %120 : vector<1x16xf32> to vector<1x1x16xf32>
      tpu.vector_store %arg7[%c1_81, %c14_82, %c3_83], %123 {strides = array<i32>} : memref<2x22x22xf32, #tpu.memory_space<vmem>>, vector<1x1x16xf32>,
      %124 = vector.extract_strided_slice %24 {offsets = [0, 192], sizes = [1, 16], strides = [1, 1]} : vector<1x256xf32> to vector<1x16xf32>
      %c0_84 = arith.constant 0 : index
      %c15 = arith.constant 15 : index
      %c3_85 = arith.constant 3 : index
      %125 = vector.load %arg7[%c0_84, %c15, %c3_85] : memref<2x22x22xf32, #tpu.memory_space<vmem>>, vector<1x1x16xf32>
      %126 = vector.shape_cast %125 : vector<1x1x16xf32> to vector<1x16xf32>
      %127 = vector.shape_cast %124 : vector<1x16xf32> to vector<1x1x16xf32>
      tpu.vector_store %arg7[%c0_84, %c15, %c3_85], %127 {strides = array<i32>} : memref<2x22x22xf32, #tpu.memory_space<vmem>>, vector<1x1x16xf32>,
      %128 = vector.extract_strided_slice %25 {offsets = [0, 192], sizes = [1, 16], strides = [1, 1]} : vector<1x256xf32> to vector<1x16xf32>
      %c1_86 = arith.constant 1 : index
      %c15_87 = arith.constant 15 : index
      %c3_88 = arith.constant 3 : index
      %129 = vector.load %arg7[%c1_86, %c15_87, %c3_88] : memref<2x22x22xf32, #tpu.memory_space<vmem>>, vector<1x1x16xf32>
      %130 = vector.shape_cast %129 : vector<1x1x16xf32> to vector<1x16xf32>
      %131 = vector.shape_cast %128 : vector<1x16xf32> to vector<1x1x16xf32>
      tpu.vector_store %arg7[%c1_86, %c15_87, %c3_88], %131 {strides = array<i32>} : memref<2x22x22xf32, #tpu.memory_space<vmem>>, vector<1x1x16xf32>,
      %132 = vector.extract_strided_slice %24 {offsets = [0, 208], sizes = [1, 16], strides = [1, 1]} : vector<1x256xf32> to vector<1x16xf32>
      %c0_89 = arith.constant 0 : index
      %c16 = arith.constant 16 : index
      %c3_90 = arith.constant 3 : index
      %133 = vector.load %arg7[%c0_89, %c16, %c3_90] : memref<2x22x22xf32, #tpu.memory_space<vmem>>, vector<1x1x16xf32>
      %134 = vector.shape_cast %133 : vector<1x1x16xf32> to vector<1x16xf32>
      %135 = vector.shape_cast %132 : vector<1x16xf32> to vector<1x1x16xf32>
      tpu.vector_store %arg7[%c0_89, %c16, %c3_90], %135 {strides = array<i32>} : memref<2x22x22xf32, #tpu.memory_space<vmem>>, vector<1x1x16xf32>,
      %136 = vector.extract_strided_slice %25 {offsets = [0, 208], sizes = [1, 16], strides = [1, 1]} : vector<1x256xf32> to vector<1x16xf32>
      %c1_91 = arith.constant 1 : index
      %c16_92 = arith.constant 16 : index
      %c3_93 = arith.constant 3 : index
      %137 = vector.load %arg7[%c1_91, %c16_92, %c3_93] : memref<2x22x22xf32, #tpu.memory_space<vmem>>, vector<1x1x16xf32>
      %138 = vector.shape_cast %137 : vector<1x1x16xf32> to vector<1x16xf32>
      %139 = vector.shape_cast %136 : vector<1x16xf32> to vector<1x1x16xf32>
      tpu.vector_store %arg7[%c1_91, %c16_92, %c3_93], %139 {strides = array<i32>} : memref<2x22x22xf32, #tpu.memory_space<vmem>>, vector<1x1x16xf32>,
      %140 = vector.extract_strided_slice %24 {offsets = [0, 224], sizes = [1, 16], strides = [1, 1]} : vector<1x256xf32> to vector<1x16xf32>
      %c0_94 = arith.constant 0 : index
      %c17 = arith.constant 17 : index
      %c3_95 = arith.constant 3 : index
      %141 = vector.load %arg7[%c0_94, %c17, %c3_95] : memref<2x22x22xf32, #tpu.memory_space<vmem>>, vector<1x1x16xf32>
      %142 = vector.shape_cast %141 : vector<1x1x16xf32> to vector<1x16xf32>
      %143 = vector.shape_cast %140 : vector<1x16xf32> to vector<1x1x16xf32>
      tpu.vector_store %arg7[%c0_94, %c17, %c3_95], %143 {strides = array<i32>} : memref<2x22x22xf32, #tpu.memory_space<vmem>>, vector<1x1x16xf32>,
      %144 = vector.extract_strided_slice %25 {offsets = [0, 224], sizes = [1, 16], strides = [1, 1]} : vector<1x256xf32> to vector<1x16xf32>
      %c1_96 = arith.constant 1 : index
      %c17_97 = arith.constant 17 : index
      %c3_98 = arith.constant 3 : index
      %145 = vector.load %arg7[%c1_96, %c17_97, %c3_98] : memref<2x22x22xf32, #tpu.memory_space<vmem>>, vector<1x1x16xf32>
      %146 = vector.shape_cast %145 : vector<1x1x16xf32> to vector<1x16xf32>
      %147 = vector.shape_cast %144 : vector<1x16xf32> to vector<1x1x16xf32>
      tpu.vector_store %arg7[%c1_96, %c17_97, %c3_98], %147 {strides = array<i32>} : memref<2x22x22xf32, #tpu.memory_space<vmem>>, vector<1x1x16xf32>,
      %148 = vector.extract_strided_slice %24 {offsets = [0, 240], sizes = [1, 16], strides = [1, 1]} : vector<1x256xf32> to vector<1x16xf32>
      %c0_99 = arith.constant 0 : index
      %c18 = arith.constant 18 : index
      %c3_100 = arith.constant 3 : index
      %149 = vector.load %arg7[%c0_99, %c18, %c3_100] : memref<2x22x22xf32, #tpu.memory_space<vmem>>, vector<1x1x16xf32>
      %150 = vector.shape_cast %149 : vector<1x1x16xf32> to vector<1x16xf32>
      %151 = vector.shape_cast %148 : vector<1x16xf32> to vector<1x1x16xf32>
      tpu.vector_store %arg7[%c0_99, %c18, %c3_100], %151 {strides = array<i32>} : memref<2x22x22xf32, #tpu.memory_space<vmem>>, vector<1x1x16xf32>,
      %152 = vector.extract_strided_slice %25 {offsets = [0, 240], sizes = [1, 16], strides = [1, 1]} : vector<1x256xf32> to vector<1x16xf32>
      %c1_101 = arith.constant 1 : index
      %c18_102 = arith.constant 18 : index
      %c3_103 = arith.constant 3 : index
      %153 = vector.load %arg7[%c1_101, %c18_102, %c3_103] : memref<2x22x22xf32, #tpu.memory_space<vmem>>, vector<1x1x16xf32>
      %154 = vector.shape_cast %153 : vector<1x1x16xf32> to vector<1x16xf32>
      %155 = vector.shape_cast %152 : vector<1x16xf32> to vector<1x1x16xf32>
      tpu.vector_store %arg7[%c1_101, %c18_102, %c3_103], %155 {strides = array<i32>} : memref<2x22x22xf32, #tpu.memory_space<vmem>>, vector<1x1x16xf32>,
      %c0_104 = arith.constant 0 : index
      %156 = memref.load %arg2[%c0_104] : memref<98xf32, #tpu.memory_space<smem>>
      %c1_105 = arith.constant 1 : index
      %157 = memref.load %arg2[%c1_105] : memref<98xf32, #tpu.memory_space<smem>>
      %c2 = arith.constant 2 : index
      %158 = memref.load %arg2[%c2] : memref<98xf32, #tpu.memory_space<smem>>
      %c3_106 = arith.constant 3 : index
      %159 = memref.load %arg2[%c3_106] : memref<98xf32, #tpu.memory_space<smem>>
      %c4_107 = arith.constant 4 : index
      %160 = memref.load %arg2[%c4_107] : memref<98xf32, #tpu.memory_space<smem>>
      %c5_108 = arith.constant 5 : index
      %161 = memref.load %arg2[%c5_108] : memref<98xf32, #tpu.memory_space<smem>>
      %c6_109 = arith.constant 6 : index
      %162 = memref.load %arg2[%c6_109] : memref<98xf32, #tpu.memory_space<smem>>
      %c7_110 = arith.constant 7 : index
      %163 = memref.load %arg2[%c7_110] : memref<98xf32, #tpu.memory_space<smem>>
      %c8_111 = arith.constant 8 : index
      %164 = memref.load %arg2[%c8_111] : memref<98xf32, #tpu.memory_space<smem>>
      %c9_112 = arith.constant 9 : index
      %165 = memref.load %arg2[%c9_112] : memref<98xf32, #tpu.memory_space<smem>>
      %c10_113 = arith.constant 10 : index
      %166 = memref.load %arg2[%c10_113] : memref<98xf32, #tpu.memory_space<smem>>
      %c11_114 = arith.constant 11 : index
      %167 = memref.load %arg2[%c11_114] : memref<98xf32, #tpu.memory_space<smem>>
      %c12_115 = arith.constant 12 : index
      %168 = memref.load %arg2[%c12_115] : memref<98xf32, #tpu.memory_space<smem>>
      %c13_116 = arith.constant 13 : index
      %169 = memref.load %arg2[%c13_116] : memref<98xf32, #tpu.memory_space<smem>>
      %c14_117 = arith.constant 14 : index
      %170 = memref.load %arg2[%c14_117] : memref<98xf32, #tpu.memory_space<smem>>
      %c15_118 = arith.constant 15 : index
      %171 = memref.load %arg2[%c15_118] : memref<98xf32, #tpu.memory_space<smem>>
      %c16_119 = arith.constant 16 : index
      %172 = memref.load %arg2[%c16_119] : memref<98xf32, #tpu.memory_space<smem>>
      %c17_120 = arith.constant 17 : index
      %173 = memref.load %arg2[%c17_120] : memref<98xf32, #tpu.memory_space<smem>>
      %c18_121 = arith.constant 18 : index
      %174 = memref.load %arg2[%c18_121] : memref<98xf32, #tpu.memory_space<smem>>
      %c19 = arith.constant 19 : index
      %175 = memref.load %arg2[%c19] : memref<98xf32, #tpu.memory_space<smem>>
      %c20 = arith.constant 20 : index
      %176 = memref.load %arg2[%c20] : memref<98xf32, #tpu.memory_space<smem>>
      %c21 = arith.constant 21 : index
      %177 = memref.load %arg2[%c21] : memref<98xf32, #tpu.memory_space<smem>>
      %c22 = arith.constant 22 : index
      %178 = memref.load %arg2[%c22] : memref<98xf32, #tpu.memory_space<smem>>
      %c23 = arith.constant 23 : index
      %179 = memref.load %arg2[%c23] : memref<98xf32, #tpu.memory_space<smem>>
      %c24 = arith.constant 24 : index
      %180 = memref.load %arg2[%c24] : memref<98xf32, #tpu.memory_space<smem>>
      %c25 = arith.constant 25 : index
      %181 = memref.load %arg2[%c25] : memref<98xf32, #tpu.memory_space<smem>>
      %c26 = arith.constant 26 : index
      %182 = memref.load %arg2[%c26] : memref<98xf32, #tpu.memory_space<smem>>
      %c27 = arith.constant 27 : index
      %183 = memref.load %arg2[%c27] : memref<98xf32, #tpu.memory_space<smem>>
      %c28 = arith.constant 28 : index
      %184 = memref.load %arg2[%c28] : memref<98xf32, #tpu.memory_space<smem>>
      %c29 = arith.constant 29 : index
      %185 = memref.load %arg2[%c29] : memref<98xf32, #tpu.memory_space<smem>>
      %c30 = arith.constant 30 : index
      %186 = memref.load %arg2[%c30] : memref<98xf32, #tpu.memory_space<smem>>
      %c31 = arith.constant 31 : index
      %187 = memref.load %arg2[%c31] : memref<98xf32, #tpu.memory_space<smem>>
      %c32 = arith.constant 32 : index
      %188 = memref.load %arg2[%c32] : memref<98xf32, #tpu.memory_space<smem>>
      %c33 = arith.constant 33 : index
      %189 = memref.load %arg2[%c33] : memref<98xf32, #tpu.memory_space<smem>>
      %c34 = arith.constant 34 : index
      %190 = memref.load %arg2[%c34] : memref<98xf32, #tpu.memory_space<smem>>
      %c35 = arith.constant 35 : index
      %191 = memref.load %arg2[%c35] : memref<98xf32, #tpu.memory_space<smem>>
      %c36 = arith.constant 36 : index
      %192 = memref.load %arg2[%c36] : memref<98xf32, #tpu.memory_space<smem>>
      %c37 = arith.constant 37 : index
      %193 = memref.load %arg2[%c37] : memref<98xf32, #tpu.memory_space<smem>>
      %c38 = arith.constant 38 : index
      %194 = memref.load %arg2[%c38] : memref<98xf32, #tpu.memory_space<smem>>
      %c39 = arith.constant 39 : index
      %195 = memref.load %arg2[%c39] : memref<98xf32, #tpu.memory_space<smem>>
      %c40 = arith.constant 40 : index
      %196 = memref.load %arg2[%c40] : memref<98xf32, #tpu.memory_space<smem>>
      %c41 = arith.constant 41 : index
      %197 = memref.load %arg2[%c41] : memref<98xf32, #tpu.memory_space<smem>>
      %c42 = arith.constant 42 : index
      %198 = memref.load %arg2[%c42] : memref<98xf32, #tpu.memory_space<smem>>
      %c43 = arith.constant 43 : index
      %199 = memref.load %arg2[%c43] : memref<98xf32, #tpu.memory_space<smem>>
      %c44 = arith.constant 44 : index
      %200 = memref.load %arg2[%c44] : memref<98xf32, #tpu.memory_space<smem>>
      %c45 = arith.constant 45 : index
      %201 = memref.load %arg2[%c45] : memref<98xf32, #tpu.memory_space<smem>>
      %c46 = arith.constant 46 : index
      %202 = memref.load %arg2[%c46] : memref<98xf32, #tpu.memory_space<smem>>
      %c47 = arith.constant 47 : index
      %203 = memref.load %arg2[%c47] : memref<98xf32, #tpu.memory_space<smem>>
      %c48 = arith.constant 48 : index
      %204 = memref.load %arg2[%c48] : memref<98xf32, #tpu.memory_space<smem>>
      %c49 = arith.constant 49 : index
      %205 = memref.load %arg2[%c49] : memref<98xf32, #tpu.memory_space<smem>>
      %c50 = arith.constant 50 : index
      %206 = memref.load %arg2[%c50] : memref<98xf32, #tpu.memory_space<smem>>
      %c51 = arith.constant 51 : index
      %207 = memref.load %arg2[%c51] : memref<98xf32, #tpu.memory_space<smem>>
      %c52 = arith.constant 52 : index
      %208 = memref.load %arg2[%c52] : memref<98xf32, #tpu.memory_space<smem>>
      %c53 = arith.constant 53 : index
      %209 = memref.load %arg2[%c53] : memref<98xf32, #tpu.memory_space<smem>>
      %c54 = arith.constant 54 : index
      %210 = memref.load %arg2[%c54] : memref<98xf32, #tpu.memory_space<smem>>
      %c55 = arith.constant 55 : index
      %211 = memref.load %arg2[%c55] : memref<98xf32, #tpu.memory_space<smem>>
      %c56 = arith.constant 56 : index
      %212 = memref.load %arg2[%c56] : memref<98xf32, #tpu.memory_space<smem>>
      %c57 = arith.constant 57 : index
      %213 = memref.load %arg2[%c57] : memref<98xf32, #tpu.memory_space<smem>>
      %c58 = arith.constant 58 : index
      %214 = memref.load %arg2[%c58] : memref<98xf32, #tpu.memory_space<smem>>
      %c59 = arith.constant 59 : index
      %215 = memref.load %arg2[%c59] : memref<98xf32, #tpu.memory_space<smem>>
      %c60 = arith.constant 60 : index
      %216 = memref.load %arg2[%c60] : memref<98xf32, #tpu.memory_space<smem>>
      %c61 = arith.constant 61 : index
      %217 = memref.load %arg2[%c61] : memref<98xf32, #tpu.memory_space<smem>>
      %c62 = arith.constant 62 : index
      %218 = memref.load %arg2[%c62] : memref<98xf32, #tpu.memory_space<smem>>
      %c63 = arith.constant 63 : index
      %219 = memref.load %arg2[%c63] : memref<98xf32, #tpu.memory_space<smem>>
      %c64 = arith.constant 64 : index
      %220 = memref.load %arg2[%c64] : memref<98xf32, #tpu.memory_space<smem>>
      %c65 = arith.constant 65 : index
      %221 = memref.load %arg2[%c65] : memref<98xf32, #tpu.memory_space<smem>>
      %c66 = arith.constant 66 : index
      %222 = memref.load %arg2[%c66] : memref<98xf32, #tpu.memory_space<smem>>
      %c67 = arith.constant 67 : index
      %223 = memref.load %arg2[%c67] : memref<98xf32, #tpu.memory_space<smem>>
      %c68 = arith.constant 68 : index
      %224 = memref.load %arg2[%c68] : memref<98xf32, #tpu.memory_space<smem>>
      %c69 = arith.constant 69 : index
      %225 = memref.load %arg2[%c69] : memref<98xf32, #tpu.memory_space<smem>>
      %c70 = arith.constant 70 : index
      %226 = memref.load %arg2[%c70] : memref<98xf32, #tpu.memory_space<smem>>
      %c71 = arith.constant 71 : index
      %227 = memref.load %arg2[%c71] : memref<98xf32, #tpu.memory_space<smem>>
      %c72 = arith.constant 72 : index
      %228 = memref.load %arg2[%c72] : memref<98xf32, #tpu.memory_space<smem>>
      %c73 = arith.constant 73 : index
      %229 = memref.load %arg2[%c73] : memref<98xf32, #tpu.memory_space<smem>>
      %c74 = arith.constant 74 : index
      %230 = memref.load %arg2[%c74] : memref<98xf32, #tpu.memory_space<smem>>
      %c75 = arith.constant 75 : index
      %231 = memref.load %arg2[%c75] : memref<98xf32, #tpu.memory_space<smem>>
      %c76 = arith.constant 76 : index
      %232 = memref.load %arg2[%c76] : memref<98xf32, #tpu.memory_space<smem>>
      %c77 = arith.constant 77 : index
      %233 = memref.load %arg2[%c77] : memref<98xf32, #tpu.memory_space<smem>>
      %c78 = arith.constant 78 : index
      %234 = memref.load %arg2[%c78] : memref<98xf32, #tpu.memory_space<smem>>
      %c79 = arith.constant 79 : index
      %235 = memref.load %arg2[%c79] : memref<98xf32, #tpu.memory_space<smem>>
      %c80 = arith.constant 80 : index
      %236 = memref.load %arg2[%c80] : memref<98xf32, #tpu.memory_space<smem>>
      %c81 = arith.constant 81 : index
      %237 = memref.load %arg2[%c81] : memref<98xf32, #tpu.memory_space<smem>>
      %c82 = arith.constant 82 : index
      %238 = memref.load %arg2[%c82] : memref<98xf32, #tpu.memory_space<smem>>
      %c83 = arith.constant 83 : index
      %239 = memref.load %arg2[%c83] : memref<98xf32, #tpu.memory_space<smem>>
      %c84 = arith.constant 84 : index
      %240 = memref.load %arg2[%c84] : memref<98xf32, #tpu.memory_space<smem>>
      %c85 = arith.constant 85 : index
      %241 = memref.load %arg2[%c85] : memref<98xf32, #tpu.memory_space<smem>>
      %c86 = arith.constant 86 : index
      %242 = memref.load %arg2[%c86] : memref<98xf32, #tpu.memory_space<smem>>
      %c87 = arith.constant 87 : index
      %243 = memref.load %arg2[%c87] : memref<98xf32, #tpu.memory_space<smem>>
      %c88 = arith.constant 88 : index
      %244 = memref.load %arg2[%c88] : memref<98xf32, #tpu.memory_space<smem>>
      %c89 = arith.constant 89 : index
      %245 = memref.load %arg2[%c89] : memref<98xf32, #tpu.memory_space<smem>>
      %c90 = arith.constant 90 : index
      %246 = memref.load %arg2[%c90] : memref<98xf32, #tpu.memory_space<smem>>
      %c91 = arith.constant 91 : index
      %247 = memref.load %arg2[%c91] : memref<98xf32, #tpu.memory_space<smem>>
      %c92 = arith.constant 92 : index
      %248 = memref.load %arg2[%c92] : memref<98xf32, #tpu.memory_space<smem>>
      %c93 = arith.constant 93 : index
      %249 = memref.load %arg2[%c93] : memref<98xf32, #tpu.memory_space<smem>>
      %c94 = arith.constant 94 : index
      %250 = memref.load %arg2[%c94] : memref<98xf32, #tpu.memory_space<smem>>
      %c95 = arith.constant 95 : index
      %251 = memref.load %arg2[%c95] : memref<98xf32, #tpu.memory_space<smem>>
      %c96 = arith.constant 96 : index
      %252 = memref.load %arg2[%c96] : memref<98xf32, #tpu.memory_space<smem>>
      %c97 = arith.constant 97 : index
      %253 = memref.load %arg2[%c97] : memref<98xf32, #tpu.memory_space<smem>>
      %c0_122 = arith.constant 0 : index
      %c0_123 = arith.constant 0 : index
      %c0_124 = arith.constant 0 : index
      %254 = vector.load %arg7[%c0_122, %c0_123, %c0_124] : memref<2x22x22xf32, #tpu.memory_space<vmem>>, vector<1x22x22xf32>
      %255 = vector.shape_cast %254 : vector<1x22x22xf32> to vector<22x22xf32>
      %c1_125 = arith.constant 1 : index
      %c0_126 = arith.constant 0 : index
      %c0_127 = arith.constant 0 : index
      %256 = vector.load %arg7[%c1_125, %c0_126, %c0_127] : memref<2x22x22xf32, #tpu.memory_space<vmem>>, vector<1x22x22xf32>
      %257 = vector.shape_cast %256 : vector<1x22x22xf32> to vector<22x22xf32>
      %cst_128 = arith.constant 0.000000e+00 : f32
      %258 = vector.broadcast %cst_128 : f32 to vector<16x16xf32>
      %259 = vector.extract_strided_slice %255 {offsets = [0, 0], sizes = [22, 16], strides = [1, 1]} : vector<22x22xf32> to vector<22x16xf32>
      %260 = vector.extract_strided_slice %257 {offsets = [0, 0], sizes = [22, 16], strides = [1, 1]} : vector<22x22xf32> to vector<22x16xf32>
      %261 = vector.extract_strided_slice %259 {offsets = [0, 0], sizes = [16, 16], strides = [1, 1]} : vector<22x16xf32> to vector<16x16xf32>
      %262 = vector.broadcast %156 : f32 to vector<16x16xf32>
      %263 = arith.mulf %262, %261 : vector<16x16xf32>
      %264 = arith.addf %258, %263 : vector<16x16xf32>
      %265 = vector.extract_strided_slice %260 {offsets = [0, 0], sizes = [16, 16], strides = [1, 1]} : vector<22x16xf32> to vector<16x16xf32>
      %266 = vector.broadcast %205 : f32 to vector<16x16xf32>
      %267 = arith.mulf %266, %265 : vector<16x16xf32>
      %268 = arith.addf %264, %267 : vector<16x16xf32>
      %269 = vector.extract_strided_slice %259 {offsets = [1, 0], sizes = [16, 16], strides = [1, 1]} : vector<22x16xf32> to vector<16x16xf32>
      %270 = vector.broadcast %163 : f32 to vector<16x16xf32>
      %271 = arith.mulf %270, %269 : vector<16x16xf32>
      %272 = arith.addf %268, %271 : vector<16x16xf32>
      %273 = vector.extract_strided_slice %260 {offsets = [1, 0], sizes = [16, 16], strides = [1, 1]} : vector<22x16xf32> to vector<16x16xf32>
      %274 = vector.broadcast %212 : f32 to vector<16x16xf32>
      %275 = arith.mulf %274, %273 : vector<16x16xf32>
      %276 = arith.addf %272, %275 : vector<16x16xf32>
      %277 = vector.extract_strided_slice %259 {offsets = [2, 0], sizes = [16, 16], strides = [1, 1]} : vector<22x16xf32> to vector<16x16xf32>
      %278 = vector.broadcast %170 : f32 to vector<16x16xf32>
      %279 = arith.mulf %278, %277 : vector<16x16xf32>
      %280 = arith.addf %276, %279 : vector<16x16xf32>
      %281 = vector.extract_strided_slice %260 {offsets = [2, 0], sizes = [16, 16], strides = [1, 1]} : vector<22x16xf32> to vector<16x16xf32>
      %282 = vector.broadcast %219 : f32 to vector<16x16xf32>
      %283 = arith.mulf %282, %281 : vector<16x16xf32>
      %284 = arith.addf %280, %283 : vector<16x16xf32>
      %285 = vector.extract_strided_slice %259 {offsets = [3, 0], sizes = [16, 16], strides = [1, 1]} : vector<22x16xf32> to vector<16x16xf32>
      %286 = vector.broadcast %177 : f32 to vector<16x16xf32>
      %287 = arith.mulf %286, %285 : vector<16x16xf32>
      %288 = arith.addf %284, %287 : vector<16x16xf32>
      %289 = vector.extract_strided_slice %260 {offsets = [3, 0], sizes = [16, 16], strides = [1, 1]} : vector<22x16xf32> to vector<16x16xf32>
      %290 = vector.broadcast %226 : f32 to vector<16x16xf32>
      %291 = arith.mulf %290, %289 : vector<16x16xf32>
      %292 = arith.addf %288, %291 : vector<16x16xf32>
      %293 = vector.extract_strided_slice %259 {offsets = [4, 0], sizes = [16, 16], strides = [1, 1]} : vector<22x16xf32> to vector<16x16xf32>
      %294 = vector.broadcast %184 : f32 to vector<16x16xf32>
      %295 = arith.mulf %294, %293 : vector<16x16xf32>
      %296 = arith.addf %292, %295 : vector<16x16xf32>
      %297 = vector.extract_strided_slice %260 {offsets = [4, 0], sizes = [16, 16], strides = [1, 1]} : vector<22x16xf32> to vector<16x16xf32>
      %298 = vector.broadcast %233 : f32 to vector<16x16xf32>
      %299 = arith.mulf %298, %297 : vector<16x16xf32>
      %300 = arith.addf %296, %299 : vector<16x16xf32>
      %301 = vector.extract_strided_slice %259 {offsets = [5, 0], sizes = [16, 16], strides = [1, 1]} : vector<22x16xf32> to vector<16x16xf32>
      %302 = vector.broadcast %191 : f32 to vector<16x16xf32>
      %303 = arith.mulf %302, %301 : vector<16x16xf32>
      %304 = arith.addf %300, %303 : vector<16x16xf32>
      %305 = vector.extract_strided_slice %260 {offsets = [5, 0], sizes = [16, 16], strides = [1, 1]} : vector<22x16xf32> to vector<16x16xf32>
      %306 = vector.broadcast %240 : f32 to vector<16x16xf32>
      %307 = arith.mulf %306, %305 : vector<16x16xf32>
      %308 = arith.addf %304, %307 : vector<16x16xf32>
      %309 = vector.extract_strided_slice %259 {offsets = [6, 0], sizes = [16, 16], strides = [1, 1]} : vector<22x16xf32> to vector<16x16xf32>
      %310 = vector.broadcast %198 : f32 to vector<16x16xf32>
      %311 = arith.mulf %310, %309 : vector<16x16xf32>
      %312 = arith.addf %308, %311 : vector<16x16xf32>
      %313 = vector.extract_strided_slice %260 {offsets = [6, 0], sizes = [16, 16], strides = [1, 1]} : vector<22x16xf32> to vector<16x16xf32>
      %314 = vector.broadcast %247 : f32 to vector<16x16xf32>
      %315 = arith.mulf %314, %313 : vector<16x16xf32>
      %316 = arith.addf %312, %315 : vector<16x16xf32>
      %317 = vector.extract_strided_slice %255 {offsets = [0, 1], sizes = [22, 16], strides = [1, 1]} : vector<22x22xf32> to vector<22x16xf32>
      %318 = vector.extract_strided_slice %257 {offsets = [0, 1], sizes = [22, 16], strides = [1, 1]} : vector<22x22xf32> to vector<22x16xf32>
      %319 = vector.extract_strided_slice %317 {offsets = [0, 0], sizes = [16, 16], strides = [1, 1]} : vector<22x16xf32> to vector<16x16xf32>
      %320 = vector.broadcast %157 : f32 to vector<16x16xf32>
      %321 = arith.mulf %320, %319 : vector<16x16xf32>
      %322 = arith.addf %316, %321 : vector<16x16xf32>
      %323 = vector.extract_strided_slice %318 {offsets = [0, 0], sizes = [16, 16], strides = [1, 1]} : vector<22x16xf32> to vector<16x16xf32>
      %324 = vector.broadcast %206 : f32 to vector<16x16xf32>
      %325 = arith.mulf %324, %323 : vector<16x16xf32>
      %326 = arith.addf %322, %325 : vector<16x16xf32>
      %327 = vector.extract_strided_slice %317 {offsets = [1, 0], sizes = [16, 16], strides = [1, 1]} : vector<22x16xf32> to vector<16x16xf32>
      %328 = vector.broadcast %164 : f32 to vector<16x16xf32>
      %329 = arith.mulf %328, %327 : vector<16x16xf32>
      %330 = arith.addf %326, %329 : vector<16x16xf32>
      %331 = vector.extract_strided_slice %318 {offsets = [1, 0], sizes = [16, 16], strides = [1, 1]} : vector<22x16xf32> to vector<16x16xf32>
      %332 = vector.broadcast %213 : f32 to vector<16x16xf32>
      %333 = arith.mulf %332, %331 : vector<16x16xf32>
      %334 = arith.addf %330, %333 : vector<16x16xf32>
      %335 = vector.extract_strided_slice %317 {offsets = [2, 0], sizes = [16, 16], strides = [1, 1]} : vector<22x16xf32> to vector<16x16xf32>
      %336 = vector.broadcast %171 : f32 to vector<16x16xf32>
      %337 = arith.mulf %336, %335 : vector<16x16xf32>
      %338 = arith.addf %334, %337 : vector<16x16xf32>
      %339 = vector.extract_strided_slice %318 {offsets = [2, 0], sizes = [16, 16], strides = [1, 1]} : vector<22x16xf32> to vector<16x16xf32>
      %340 = vector.broadcast %220 : f32 to vector<16x16xf32>
      %341 = arith.mulf %340, %339 : vector<16x16xf32>
      %342 = arith.addf %338, %341 : vector<16x16xf32>
      %343 = vector.extract_strided_slice %317 {offsets = [3, 0], sizes = [16, 16], strides = [1, 1]} : vector<22x16xf32> to vector<16x16xf32>
      %344 = vector.broadcast %178 : f32 to vector<16x16xf32>
      %345 = arith.mulf %344, %343 : vector<16x16xf32>
      %346 = arith.addf %342, %345 : vector<16x16xf32>
      %347 = vector.extract_strided_slice %318 {offsets = [3, 0], sizes = [16, 16], strides = [1, 1]} : vector<22x16xf32> to vector<16x16xf32>
      %348 = vector.broadcast %227 : f32 to vector<16x16xf32>
      %349 = arith.mulf %348, %347 : vector<16x16xf32>
      %350 = arith.addf %346, %349 : vector<16x16xf32>
      %351 = vector.extract_strided_slice %317 {offsets = [4, 0], sizes = [16, 16], strides = [1, 1]} : vector<22x16xf32> to vector<16x16xf32>
      %352 = vector.broadcast %185 : f32 to vector<16x16xf32>
      %353 = arith.mulf %352, %351 : vector<16x16xf32>
      %354 = arith.addf %350, %353 : vector<16x16xf32>
      %355 = vector.extract_strided_slice %318 {offsets = [4, 0], sizes = [16, 16], strides = [1, 1]} : vector<22x16xf32> to vector<16x16xf32>
      %356 = vector.broadcast %234 : f32 to vector<16x16xf32>
      %357 = arith.mulf %356, %355 : vector<16x16xf32>
      %358 = arith.addf %354, %357 : vector<16x16xf32>
      %359 = vector.extract_strided_slice %317 {offsets = [5, 0], sizes = [16, 16], strides = [1, 1]} : vector<22x16xf32> to vector<16x16xf32>
      %360 = vector.broadcast %192 : f32 to vector<16x16xf32>
      %361 = arith.mulf %360, %359 : vector<16x16xf32>
      %362 = arith.addf %358, %361 : vector<16x16xf32>
      %363 = vector.extract_strided_slice %318 {offsets = [5, 0], sizes = [16, 16], strides = [1, 1]} : vector<22x16xf32> to vector<16x16xf32>
      %364 = vector.broadcast %241 : f32 to vector<16x16xf32>
      %365 = arith.mulf %364, %363 : vector<16x16xf32>
      %366 = arith.addf %362, %365 : vector<16x16xf32>
      %367 = vector.extract_strided_slice %317 {offsets = [6, 0], sizes = [16, 16], strides = [1, 1]} : vector<22x16xf32> to vector<16x16xf32>
      %368 = vector.broadcast %199 : f32 to vector<16x16xf32>
      %369 = arith.mulf %368, %367 : vector<16x16xf32>
      %370 = arith.addf %366, %369 : vector<16x16xf32>
      %371 = vector.extract_strided_slice %318 {offsets = [6, 0], sizes = [16, 16], strides = [1, 1]} : vector<22x16xf32> to vector<16x16xf32>
      %372 = vector.broadcast %248 : f32 to vector<16x16xf32>
      %373 = arith.mulf %372, %371 : vector<16x16xf32>
      %374 = arith.addf %370, %373 : vector<16x16xf32>
      %375 = vector.extract_strided_slice %255 {offsets = [0, 2], sizes = [22, 16], strides = [1, 1]} : vector<22x22xf32> to vector<22x16xf32>
      %376 = vector.extract_strided_slice %257 {offsets = [0, 2], sizes = [22, 16], strides = [1, 1]} : vector<22x22xf32> to vector<22x16xf32>
      %377 = vector.extract_strided_slice %375 {offsets = [0, 0], sizes = [16, 16], strides = [1, 1]} : vector<22x16xf32> to vector<16x16xf32>
      %378 = vector.broadcast %158 : f32 to vector<16x16xf32>
      %379 = arith.mulf %378, %377 : vector<16x16xf32>
      %380 = arith.addf %374, %379 : vector<16x16xf32>
      %381 = vector.extract_strided_slice %376 {offsets = [0, 0], sizes = [16, 16], strides = [1, 1]} : vector<22x16xf32> to vector<16x16xf32>
      %382 = vector.broadcast %207 : f32 to vector<16x16xf32>
      %383 = arith.mulf %382, %381 : vector<16x16xf32>
      %384 = arith.addf %380, %383 : vector<16x16xf32>
      %385 = vector.extract_strided_slice %375 {offsets = [1, 0], sizes = [16, 16], strides = [1, 1]} : vector<22x16xf32> to vector<16x16xf32>
      %386 = vector.broadcast %165 : f32 to vector<16x16xf32>
      %387 = arith.mulf %386, %385 : vector<16x16xf32>
      %388 = arith.addf %384, %387 : vector<16x16xf32>
      %389 = vector.extract_strided_slice %376 {offsets = [1, 0], sizes = [16, 16], strides = [1, 1]} : vector<22x16xf32> to vector<16x16xf32>
      %390 = vector.broadcast %214 : f32 to vector<16x16xf32>
      %391 = arith.mulf %390, %389 : vector<16x16xf32>
      %392 = arith.addf %388, %391 : vector<16x16xf32>
      %393 = vector.extract_strided_slice %375 {offsets = [2, 0], sizes = [16, 16], strides = [1, 1]} : vector<22x16xf32> to vector<16x16xf32>
      %394 = vector.broadcast %172 : f32 to vector<16x16xf32>
      %395 = arith.mulf %394, %393 : vector<16x16xf32>
      %396 = arith.addf %392, %395 : vector<16x16xf32>
      %397 = vector.extract_strided_slice %376 {offsets = [2, 0], sizes = [16, 16], strides = [1, 1]} : vector<22x16xf32> to vector<16x16xf32>
      %398 = vector.broadcast %221 : f32 to vector<16x16xf32>
      %399 = arith.mulf %398, %397 : vector<16x16xf32>
      %400 = arith.addf %396, %399 : vector<16x16xf32>
      %401 = vector.extract_strided_slice %375 {offsets = [3, 0], sizes = [16, 16], strides = [1, 1]} : vector<22x16xf32> to vector<16x16xf32>
      %402 = vector.broadcast %179 : f32 to vector<16x16xf32>
      %403 = arith.mulf %402, %401 : vector<16x16xf32>
      %404 = arith.addf %400, %403 : vector<16x16xf32>
      %405 = vector.extract_strided_slice %376 {offsets = [3, 0], sizes = [16, 16], strides = [1, 1]} : vector<22x16xf32> to vector<16x16xf32>
      %406 = vector.broadcast %228 : f32 to vector<16x16xf32>
      %407 = arith.mulf %406, %405 : vector<16x16xf32>
      %408 = arith.addf %404, %407 : vector<16x16xf32>
      %409 = vector.extract_strided_slice %375 {offsets = [4, 0], sizes = [16, 16], strides = [1, 1]} : vector<22x16xf32> to vector<16x16xf32>
      %410 = vector.broadcast %186 : f32 to vector<16x16xf32>
      %411 = arith.mulf %410, %409 : vector<16x16xf32>
      %412 = arith.addf %408, %411 : vector<16x16xf32>
      %413 = vector.extract_strided_slice %376 {offsets = [4, 0], sizes = [16, 16], strides = [1, 1]} : vector<22x16xf32> to vector<16x16xf32>
      %414 = vector.broadcast %235 : f32 to vector<16x16xf32>
      %415 = arith.mulf %414, %413 : vector<16x16xf32>
      %416 = arith.addf %412, %415 : vector<16x16xf32>
      %417 = vector.extract_strided_slice %375 {offsets = [5, 0], sizes = [16, 16], strides = [1, 1]} : vector<22x16xf32> to vector<16x16xf32>
      %418 = vector.broadcast %193 : f32 to vector<16x16xf32>
      %419 = arith.mulf %418, %417 : vector<16x16xf32>
      %420 = arith.addf %416, %419 : vector<16x16xf32>
      %421 = vector.extract_strided_slice %376 {offsets = [5, 0], sizes = [16, 16], strides = [1, 1]} : vector<22x16xf32> to vector<16x16xf32>
      %422 = vector.broadcast %242 : f32 to vector<16x16xf32>
      %423 = arith.mulf %422, %421 : vector<16x16xf32>
      %424 = arith.addf %420, %423 : vector<16x16xf32>
      %425 = vector.extract_strided_slice %375 {offsets = [6, 0], sizes = [16, 16], strides = [1, 1]} : vector<22x16xf32> to vector<16x16xf32>
      %426 = vector.broadcast %200 : f32 to vector<16x16xf32>
      %427 = arith.mulf %426, %425 : vector<16x16xf32>
      %428 = arith.addf %424, %427 : vector<16x16xf32>
      %429 = vector.extract_strided_slice %376 {offsets = [6, 0], sizes = [16, 16], strides = [1, 1]} : vector<22x16xf32> to vector<16x16xf32>
      %430 = vector.broadcast %249 : f32 to vector<16x16xf32>
      %431 = arith.mulf %430, %429 : vector<16x16xf32>
      %432 = arith.addf %428, %431 : vector<16x16xf32>
      %433 = vector.extract_strided_slice %255 {offsets = [0, 3], sizes = [22, 16], strides = [1, 1]} : vector<22x22xf32> to vector<22x16xf32>
      %434 = vector.extract_strided_slice %257 {offsets = [0, 3], sizes = [22, 16], strides = [1, 1]} : vector<22x22xf32> to vector<22x16xf32>
      %435 = vector.extract_strided_slice %433 {offsets = [0, 0], sizes = [16, 16], strides = [1, 1]} : vector<22x16xf32> to vector<16x16xf32>
      %436 = vector.broadcast %159 : f32 to vector<16x16xf32>
      %437 = arith.mulf %436, %435 : vector<16x16xf32>
      %438 = arith.addf %432, %437 : vector<16x16xf32>
      %439 = vector.extract_strided_slice %434 {offsets = [0, 0], sizes = [16, 16], strides = [1, 1]} : vector<22x16xf32> to vector<16x16xf32>
      %440 = vector.broadcast %208 : f32 to vector<16x16xf32>
      %441 = arith.mulf %440, %439 : vector<16x16xf32>
      %442 = arith.addf %438, %441 : vector<16x16xf32>
      %443 = vector.extract_strided_slice %433 {offsets = [1, 0], sizes = [16, 16], strides = [1, 1]} : vector<22x16xf32> to vector<16x16xf32>
      %444 = vector.broadcast %166 : f32 to vector<16x16xf32>
      %445 = arith.mulf %444, %443 : vector<16x16xf32>
      %446 = arith.addf %442, %445 : vector<16x16xf32>
      %447 = vector.extract_strided_slice %434 {offsets = [1, 0], sizes = [16, 16], strides = [1, 1]} : vector<22x16xf32> to vector<16x16xf32>
      %448 = vector.broadcast %215 : f32 to vector<16x16xf32>
      %449 = arith.mulf %448, %447 : vector<16x16xf32>
      %450 = arith.addf %446, %449 : vector<16x16xf32>
      %451 = vector.extract_strided_slice %433 {offsets = [2, 0], sizes = [16, 16], strides = [1, 1]} : vector<22x16xf32> to vector<16x16xf32>
      %452 = vector.broadcast %173 : f32 to vector<16x16xf32>
      %453 = arith.mulf %452, %451 : vector<16x16xf32>
      %454 = arith.addf %450, %453 : vector<16x16xf32>
      %455 = vector.extract_strided_slice %434 {offsets = [2, 0], sizes = [16, 16], strides = [1, 1]} : vector<22x16xf32> to vector<16x16xf32>
      %456 = vector.broadcast %222 : f32 to vector<16x16xf32>
      %457 = arith.mulf %456, %455 : vector<16x16xf32>
      %458 = arith.addf %454, %457 : vector<16x16xf32>
      %459 = vector.extract_strided_slice %433 {offsets = [3, 0], sizes = [16, 16], strides = [1, 1]} : vector<22x16xf32> to vector<16x16xf32>
      %460 = vector.broadcast %180 : f32 to vector<16x16xf32>
      %461 = arith.mulf %460, %459 : vector<16x16xf32>
      %462 = arith.addf %458, %461 : vector<16x16xf32>
      %463 = vector.extract_strided_slice %434 {offsets = [3, 0], sizes = [16, 16], strides = [1, 1]} : vector<22x16xf32> to vector<16x16xf32>
      %464 = vector.broadcast %229 : f32 to vector<16x16xf32>
      %465 = arith.mulf %464, %463 : vector<16x16xf32>
      %466 = arith.addf %462, %465 : vector<16x16xf32>
      %467 = vector.extract_strided_slice %433 {offsets = [4, 0], sizes = [16, 16], strides = [1, 1]} : vector<22x16xf32> to vector<16x16xf32>
      %468 = vector.broadcast %187 : f32 to vector<16x16xf32>
      %469 = arith.mulf %468, %467 : vector<16x16xf32>
      %470 = arith.addf %466, %469 : vector<16x16xf32>
      %471 = vector.extract_strided_slice %434 {offsets = [4, 0], sizes = [16, 16], strides = [1, 1]} : vector<22x16xf32> to vector<16x16xf32>
      %472 = vector.broadcast %236 : f32 to vector<16x16xf32>
      %473 = arith.mulf %472, %471 : vector<16x16xf32>
      %474 = arith.addf %470, %473 : vector<16x16xf32>
      %475 = vector.extract_strided_slice %433 {offsets = [5, 0], sizes = [16, 16], strides = [1, 1]} : vector<22x16xf32> to vector<16x16xf32>
      %476 = vector.broadcast %194 : f32 to vector<16x16xf32>
      %477 = arith.mulf %476, %475 : vector<16x16xf32>
      %478 = arith.addf %474, %477 : vector<16x16xf32>
      %479 = vector.extract_strided_slice %434 {offsets = [5, 0], sizes = [16, 16], strides = [1, 1]} : vector<22x16xf32> to vector<16x16xf32>
      %480 = vector.broadcast %243 : f32 to vector<16x16xf32>
      %481 = arith.mulf %480, %479 : vector<16x16xf32>
      %482 = arith.addf %478, %481 : vector<16x16xf32>
      %483 = vector.extract_strided_slice %433 {offsets = [6, 0], sizes = [16, 16], strides = [1, 1]} : vector<22x16xf32> to vector<16x16xf32>
      %484 = vector.broadcast %201 : f32 to vector<16x16xf32>
      %485 = arith.mulf %484, %483 : vector<16x16xf32>
      %486 = arith.addf %482, %485 : vector<16x16xf32>
      %487 = vector.extract_strided_slice %434 {offsets = [6, 0], sizes = [16, 16], strides = [1, 1]} : vector<22x16xf32> to vector<16x16xf32>
      %488 = vector.broadcast %250 : f32 to vector<16x16xf32>
      %489 = arith.mulf %488, %487 : vector<16x16xf32>
      %490 = arith.addf %486, %489 : vector<16x16xf32>
      %491 = vector.extract_strided_slice %255 {offsets = [0, 4], sizes = [22, 16], strides = [1, 1]} : vector<22x22xf32> to vector<22x16xf32>
      %492 = vector.extract_strided_slice %257 {offsets = [0, 4], sizes = [22, 16], strides = [1, 1]} : vector<22x22xf32> to vector<22x16xf32>
      %493 = vector.extract_strided_slice %491 {offsets = [0, 0], sizes = [16, 16], strides = [1, 1]} : vector<22x16xf32> to vector<16x16xf32>
      %494 = vector.broadcast %160 : f32 to vector<16x16xf32>
      %495 = arith.mulf %494, %493 : vector<16x16xf32>
      %496 = arith.addf %490, %495 : vector<16x16xf32>
      %497 = vector.extract_strided_slice %492 {offsets = [0, 0], sizes = [16, 16], strides = [1, 1]} : vector<22x16xf32> to vector<16x16xf32>
      %498 = vector.broadcast %209 : f32 to vector<16x16xf32>
      %499 = arith.mulf %498, %497 : vector<16x16xf32>
      %500 = arith.addf %496, %499 : vector<16x16xf32>
      %501 = vector.extract_strided_slice %491 {offsets = [1, 0], sizes = [16, 16], strides = [1, 1]} : vector<22x16xf32> to vector<16x16xf32>
      %502 = vector.broadcast %167 : f32 to vector<16x16xf32>
      %503 = arith.mulf %502, %501 : vector<16x16xf32>
      %504 = arith.addf %500, %503 : vector<16x16xf32>
      %505 = vector.extract_strided_slice %492 {offsets = [1, 0], sizes = [16, 16], strides = [1, 1]} : vector<22x16xf32> to vector<16x16xf32>
      %506 = vector.broadcast %216 : f32 to vector<16x16xf32>
      %507 = arith.mulf %506, %505 : vector<16x16xf32>
      %508 = arith.addf %504, %507 : vector<16x16xf32>
      %509 = vector.extract_strided_slice %491 {offsets = [2, 0], sizes = [16, 16], strides = [1, 1]} : vector<22x16xf32> to vector<16x16xf32>
      %510 = vector.broadcast %174 : f32 to vector<16x16xf32>
      %511 = arith.mulf %510, %509 : vector<16x16xf32>
      %512 = arith.addf %508, %511 : vector<16x16xf32>
      %513 = vector.extract_strided_slice %492 {offsets = [2, 0], sizes = [16, 16], strides = [1, 1]} : vector<22x16xf32> to vector<16x16xf32>
      %514 = vector.broadcast %223 : f32 to vector<16x16xf32>
      %515 = arith.mulf %514, %513 : vector<16x16xf32>
      %516 = arith.addf %512, %515 : vector<16x16xf32>
      %517 = vector.extract_strided_slice %491 {offsets = [3, 0], sizes = [16, 16], strides = [1, 1]} : vector<22x16xf32> to vector<16x16xf32>
      %518 = vector.broadcast %181 : f32 to vector<16x16xf32>
      %519 = arith.mulf %518, %517 : vector<16x16xf32>
      %520 = arith.addf %516, %519 : vector<16x16xf32>
      %521 = vector.extract_strided_slice %492 {offsets = [3, 0], sizes = [16, 16], strides = [1, 1]} : vector<22x16xf32> to vector<16x16xf32>
      %522 = vector.broadcast %230 : f32 to vector<16x16xf32>
      %523 = arith.mulf %522, %521 : vector<16x16xf32>
      %524 = arith.addf %520, %523 : vector<16x16xf32>
      %525 = vector.extract_strided_slice %491 {offsets = [4, 0], sizes = [16, 16], strides = [1, 1]} : vector<22x16xf32> to vector<16x16xf32>
      %526 = vector.broadcast %188 : f32 to vector<16x16xf32>
      %527 = arith.mulf %526, %525 : vector<16x16xf32>
      %528 = arith.addf %524, %527 : vector<16x16xf32>
      %529 = vector.extract_strided_slice %492 {offsets = [4, 0], sizes = [16, 16], strides = [1, 1]} : vector<22x16xf32> to vector<16x16xf32>
      %530 = vector.broadcast %237 : f32 to vector<16x16xf32>
      %531 = arith.mulf %530, %529 : vector<16x16xf32>
      %532 = arith.addf %528, %531 : vector<16x16xf32>
      %533 = vector.extract_strided_slice %491 {offsets = [5, 0], sizes = [16, 16], strides = [1, 1]} : vector<22x16xf32> to vector<16x16xf32>
      %534 = vector.broadcast %195 : f32 to vector<16x16xf32>
      %535 = arith.mulf %534, %533 : vector<16x16xf32>
      %536 = arith.addf %532, %535 : vector<16x16xf32>
      %537 = vector.extract_strided_slice %492 {offsets = [5, 0], sizes = [16, 16], strides = [1, 1]} : vector<22x16xf32> to vector<16x16xf32>
      %538 = vector.broadcast %244 : f32 to vector<16x16xf32>
      %539 = arith.mulf %538, %537 : vector<16x16xf32>
      %540 = arith.addf %536, %539 : vector<16x16xf32>
      %541 = vector.extract_strided_slice %491 {offsets = [6, 0], sizes = [16, 16], strides = [1, 1]} : vector<22x16xf32> to vector<16x16xf32>
      %542 = vector.broadcast %202 : f32 to vector<16x16xf32>
      %543 = arith.mulf %542, %541 : vector<16x16xf32>
      %544 = arith.addf %540, %543 : vector<16x16xf32>
      %545 = vector.extract_strided_slice %492 {offsets = [6, 0], sizes = [16, 16], strides = [1, 1]} : vector<22x16xf32> to vector<16x16xf32>
      %546 = vector.broadcast %251 : f32 to vector<16x16xf32>
      %547 = arith.mulf %546, %545 : vector<16x16xf32>
      %548 = arith.addf %544, %547 : vector<16x16xf32>
      %549 = vector.extract_strided_slice %255 {offsets = [0, 5], sizes = [22, 16], strides = [1, 1]} : vector<22x22xf32> to vector<22x16xf32>
      %550 = vector.extract_strided_slice %257 {offsets = [0, 5], sizes = [22, 16], strides = [1, 1]} : vector<22x22xf32> to vector<22x16xf32>
      %551 = vector.extract_strided_slice %549 {offsets = [0, 0], sizes = [16, 16], strides = [1, 1]} : vector<22x16xf32> to vector<16x16xf32>
      %552 = vector.broadcast %161 : f32 to vector<16x16xf32>
      %553 = arith.mulf %552, %551 : vector<16x16xf32>
      %554 = arith.addf %548, %553 : vector<16x16xf32>
      %555 = vector.extract_strided_slice %550 {offsets = [0, 0], sizes = [16, 16], strides = [1, 1]} : vector<22x16xf32> to vector<16x16xf32>
      %556 = vector.broadcast %210 : f32 to vector<16x16xf32>
      %557 = arith.mulf %556, %555 : vector<16x16xf32>
      %558 = arith.addf %554, %557 : vector<16x16xf32>
      %559 = vector.extract_strided_slice %549 {offsets = [1, 0], sizes = [16, 16], strides = [1, 1]} : vector<22x16xf32> to vector<16x16xf32>
      %560 = vector.broadcast %168 : f32 to vector<16x16xf32>
      %561 = arith.mulf %560, %559 : vector<16x16xf32>
      %562 = arith.addf %558, %561 : vector<16x16xf32>
      %563 = vector.extract_strided_slice %550 {offsets = [1, 0], sizes = [16, 16], strides = [1, 1]} : vector<22x16xf32> to vector<16x16xf32>
      %564 = vector.broadcast %217 : f32 to vector<16x16xf32>
      %565 = arith.mulf %564, %563 : vector<16x16xf32>
      %566 = arith.addf %562, %565 : vector<16x16xf32>
      %567 = vector.extract_strided_slice %549 {offsets = [2, 0], sizes = [16, 16], strides = [1, 1]} : vector<22x16xf32> to vector<16x16xf32>
      %568 = vector.broadcast %175 : f32 to vector<16x16xf32>
      %569 = arith.mulf %568, %567 : vector<16x16xf32>
      %570 = arith.addf %566, %569 : vector<16x16xf32>
      %571 = vector.extract_strided_slice %550 {offsets = [2, 0], sizes = [16, 16], strides = [1, 1]} : vector<22x16xf32> to vector<16x16xf32>
      %572 = vector.broadcast %224 : f32 to vector<16x16xf32>
      %573 = arith.mulf %572, %571 : vector<16x16xf32>
      %574 = arith.addf %570, %573 : vector<16x16xf32>
      %575 = vector.extract_strided_slice %549 {offsets = [3, 0], sizes = [16, 16], strides = [1, 1]} : vector<22x16xf32> to vector<16x16xf32>
      %576 = vector.broadcast %182 : f32 to vector<16x16xf32>
      %577 = arith.mulf %576, %575 : vector<16x16xf32>
      %578 = arith.addf %574, %577 : vector<16x16xf32>
      %579 = vector.extract_strided_slice %550 {offsets = [3, 0], sizes = [16, 16], strides = [1, 1]} : vector<22x16xf32> to vector<16x16xf32>
      %580 = vector.broadcast %231 : f32 to vector<16x16xf32>
      %581 = arith.mulf %580, %579 : vector<16x16xf32>
      %582 = arith.addf %578, %581 : vector<16x16xf32>
      %583 = vector.extract_strided_slice %549 {offsets = [4, 0], sizes = [16, 16], strides = [1, 1]} : vector<22x16xf32> to vector<16x16xf32>
      %584 = vector.broadcast %189 : f32 to vector<16x16xf32>
      %585 = arith.mulf %584, %583 : vector<16x16xf32>
      %586 = arith.addf %582, %585 : vector<16x16xf32>
      %587 = vector.extract_strided_slice %550 {offsets = [4, 0], sizes = [16, 16], strides = [1, 1]} : vector<22x16xf32> to vector<16x16xf32>
      %588 = vector.broadcast %238 : f32 to vector<16x16xf32>
      %589 = arith.mulf %588, %587 : vector<16x16xf32>
      %590 = arith.addf %586, %589 : vector<16x16xf32>
      %591 = vector.extract_strided_slice %549 {offsets = [5, 0], sizes = [16, 16], strides = [1, 1]} : vector<22x16xf32> to vector<16x16xf32>
      %592 = vector.broadcast %196 : f32 to vector<16x16xf32>
      %593 = arith.mulf %592, %591 : vector<16x16xf32>
      %594 = arith.addf %590, %593 : vector<16x16xf32>
      %595 = vector.extract_strided_slice %550 {offsets = [5, 0], sizes = [16, 16], strides = [1, 1]} : vector<22x16xf32> to vector<16x16xf32>
      %596 = vector.broadcast %245 : f32 to vector<16x16xf32>
      %597 = arith.mulf %596, %595 : vector<16x16xf32>
      %598 = arith.addf %594, %597 : vector<16x16xf32>
      %599 = vector.extract_strided_slice %549 {offsets = [6, 0], sizes = [16, 16], strides = [1, 1]} : vector<22x16xf32> to vector<16x16xf32>
      %600 = vector.broadcast %203 : f32 to vector<16x16xf32>
      %601 = arith.mulf %600, %599 : vector<16x16xf32>
      %602 = arith.addf %598, %601 : vector<16x16xf32>
      %603 = vector.extract_strided_slice %550 {offsets = [6, 0], sizes = [16, 16], strides = [1, 1]} : vector<22x16xf32> to vector<16x16xf32>
      %604 = vector.broadcast %252 : f32 to vector<16x16xf32>
      %605 = arith.mulf %604, %603 : vector<16x16xf32>
      %606 = arith.addf %602, %605 : vector<16x16xf32>
      %607 = vector.extract_strided_slice %255 {offsets = [0, 6], sizes = [22, 16], strides = [1, 1]} : vector<22x22xf32> to vector<22x16xf32>
      %608 = vector.extract_strided_slice %257 {offsets = [0, 6], sizes = [22, 16], strides = [1, 1]} : vector<22x22xf32> to vector<22x16xf32>
      %609 = vector.extract_strided_slice %607 {offsets = [0, 0], sizes = [16, 16], strides = [1, 1]} : vector<22x16xf32> to vector<16x16xf32>
      %610 = vector.broadcast %162 : f32 to vector<16x16xf32>
      %611 = arith.mulf %610, %609 : vector<16x16xf32>
      %612 = arith.addf %606, %611 : vector<16x16xf32>
      %613 = vector.extract_strided_slice %608 {offsets = [0, 0], sizes = [16, 16], strides = [1, 1]} : vector<22x16xf32> to vector<16x16xf32>
      %614 = vector.broadcast %211 : f32 to vector<16x16xf32>
      %615 = arith.mulf %614, %613 : vector<16x16xf32>
      %616 = arith.addf %612, %615 : vector<16x16xf32>
      %617 = vector.extract_strided_slice %607 {offsets = [1, 0], sizes = [16, 16], strides = [1, 1]} : vector<22x16xf32> to vector<16x16xf32>
      %618 = vector.broadcast %169 : f32 to vector<16x16xf32>
      %619 = arith.mulf %618, %617 : vector<16x16xf32>
      %620 = arith.addf %616, %619 : vector<16x16xf32>
      %621 = vector.extract_strided_slice %608 {offsets = [1, 0], sizes = [16, 16], strides = [1, 1]} : vector<22x16xf32> to vector<16x16xf32>
      %622 = vector.broadcast %218 : f32 to vector<16x16xf32>
      %623 = arith.mulf %622, %621 : vector<16x16xf32>
      %624 = arith.addf %620, %623 : vector<16x16xf32>
      %625 = vector.extract_strided_slice %607 {offsets = [2, 0], sizes = [16, 16], strides = [1, 1]} : vector<22x16xf32> to vector<16x16xf32>
      %626 = vector.broadcast %176 : f32 to vector<16x16xf32>
      %627 = arith.mulf %626, %625 : vector<16x16xf32>
      %628 = arith.addf %624, %627 : vector<16x16xf32>
      %629 = vector.extract_strided_slice %608 {offsets = [2, 0], sizes = [16, 16], strides = [1, 1]} : vector<22x16xf32> to vector<16x16xf32>
      %630 = vector.broadcast %225 : f32 to vector<16x16xf32>
      %631 = arith.mulf %630, %629 : vector<16x16xf32>
      %632 = arith.addf %628, %631 : vector<16x16xf32>
      %633 = vector.extract_strided_slice %607 {offsets = [3, 0], sizes = [16, 16], strides = [1, 1]} : vector<22x16xf32> to vector<16x16xf32>
      %634 = vector.broadcast %183 : f32 to vector<16x16xf32>
      %635 = arith.mulf %634, %633 : vector<16x16xf32>
      %636 = arith.addf %632, %635 : vector<16x16xf32>
      %637 = vector.extract_strided_slice %608 {offsets = [3, 0], sizes = [16, 16], strides = [1, 1]} : vector<22x16xf32> to vector<16x16xf32>
      %638 = vector.broadcast %232 : f32 to vector<16x16xf32>
      %639 = arith.mulf %638, %637 : vector<16x16xf32>
      %640 = arith.addf %636, %639 : vector<16x16xf32>
      %641 = vector.extract_strided_slice %607 {offsets = [4, 0], sizes = [16, 16], strides = [1, 1]} : vector<22x16xf32> to vector<16x16xf32>
      %642 = vector.broadcast %190 : f32 to vector<16x16xf32>
      %643 = arith.mulf %642, %641 : vector<16x16xf32>
      %644 = arith.addf %640, %643 : vector<16x16xf32>
      %645 = vector.extract_strided_slice %608 {offsets = [4, 0], sizes = [16, 16], strides = [1, 1]} : vector<22x16xf32> to vector<16x16xf32>
      %646 = vector.broadcast %239 : f32 to vector<16x16xf32>
      %647 = arith.mulf %646, %645 : vector<16x16xf32>
      %648 = arith.addf %644, %647 : vector<16x16xf32>
      %649 = vector.extract_strided_slice %607 {offsets = [5, 0], sizes = [16, 16], strides = [1, 1]} : vector<22x16xf32> to vector<16x16xf32>
      %650 = vector.broadcast %197 : f32 to vector<16x16xf32>
      %651 = arith.mulf %650, %649 : vector<16x16xf32>
      %652 = arith.addf %648, %651 : vector<16x16xf32>
      %653 = vector.extract_strided_slice %608 {offsets = [5, 0], sizes = [16, 16], strides = [1, 1]} : vector<22x16xf32> to vector<16x16xf32>
      %654 = vector.broadcast %246 : f32 to vector<16x16xf32>
      %655 = arith.mulf %654, %653 : vector<16x16xf32>
      %656 = arith.addf %652, %655 : vector<16x16xf32>
      %657 = vector.extract_strided_slice %607 {offsets = [6, 0], sizes = [16, 16], strides = [1, 1]} : vector<22x16xf32> to vector<16x16xf32>
      %658 = vector.broadcast %204 : f32 to vector<16x16xf32>
      %659 = arith.mulf %658, %657 : vector<16x16xf32>
      %660 = arith.addf %656, %659 : vector<16x16xf32>
      %661 = vector.extract_strided_slice %608 {offsets = [6, 0], sizes = [16, 16], strides = [1, 1]} : vector<22x16xf32> to vector<16x16xf32>
      %662 = vector.broadcast %253 : f32 to vector<16x16xf32>
      %663 = arith.mulf %662, %661 : vector<16x16xf32>
      %664 = arith.addf %660, %663 : vector<16x16xf32>
      %665 = arith.negf %664 : vector<16x16xf32>
      %666 = math.exp %665 : vector<16x16xf32>
      %cst_129 = arith.constant 1.000000e+00 : f32
      %667 = vector.broadcast %cst_129 : f32 to vector<16x16xf32>
      %668 = arith.addf %667, %666 : vector<16x16xf32>
      %669 = arith.divf %667, %668 : vector<16x16xf32>
      %c0_130 = arith.constant 0 : index
      %c0_131 = arith.constant 0 : index
      %c0_132 = arith.constant 0 : index
      %c0_133 = arith.constant 0 : index
      %670 = vector.load %arg4[%c0_130, %c0_131, %c0_132, %c0_133] : memref<1x1x16x16xf32, #tpu.memory_space<vmem>>, vector<1x1x16x16xf32>
      %671 = vector.shape_cast %670 : vector<1x1x16x16xf32> to vector<16x16xf32>
      %672 = vector.shape_cast %669 : vector<16x16xf32> to vector<1x1x16x16xf32>
      tpu.vector_store %arg4[%c0_130, %c0_131, %c0_132, %c0_133], %672 {strides = array<i32>} : memref<1x1x16x16xf32, #tpu.memory_space<vmem>>, vector<1x1x16x16xf32>,
    } else {
    }
    return
  }
  func.func @transform_0(%arg0: i32, %arg1: i32) -> i32 {
    %c0_i32 = arith.constant 0 : i32
    %c0_i32_0 = arith.constant 0 : i32
    return %c0_i32 : i32
  }
  func.func @transform_1(%arg0: i32, %arg1: i32) -> (i32, i32, i32) {
    %c0_i32 = arith.constant 0 : i32
    %c0_i32_0 = arith.constant 0 : i32
    return %arg0, %arg1, %c0_i32 : i32, i32, i32
  }
  func.func @transform_2(%arg0: i32, %arg1: i32) -> (i32, i32, i32, i32) {
    %c0_i32 = arith.constant 0 : i32
    %c0_i32_0 = arith.constant 0 : i32
    %c0_i32_1 = arith.constant 0 : i32
    %c0_i32_2 = arith.constant 0 : i32
    return %arg0, %c0_i32, %c0_i32_0, %c0_i32_1 : i32, i32, i32, i32
  }
}

</mosaic_0001>

<bundles_post_ra>
// kernel: tpu_custom_call.1
= control target key start
LH: loop header
LB: loop body
LE: loop exit
PB: predicated region body
PF: predicated region fallthrough
CT: control target
= control target key end

     0   :  { %7 = vsyncpa [#allocation8], 0  ;;  %s4251_s0 = inlined_call_operand.hbm [shape: f32[98], index: 0, kind: input, shape index: {}]   ;;  %s4252_s1 = inlined_call_operand.hbm [shape: f32[2,4,256], index: 1, kind: input, shape index: {}]   ;;  %s4253_s2 = inlined_call_operand.hbm [shape: f32[2,1,16,16], index: 2, kind: output, shape index: {}]  }
   0x1   :  { %8 = vsyncpa [#allocation6], 0 }
   0x2   :  { %10 = vsyncpa [#allocation6 + $0x1], 0 }
   0x3   :  { %11 = vsyncpa [#allocation7], 0 }
   0x4   :  { %13 = vsyncpa [#allocation7 + $0x1], 0  ;;  %s2944_s9 = smov 0   ;;  %s2946_s10 = smov 0  }
   0x5   :  { %s2948_s11 = smov 0   ;;  %s2950_s12 = smov 0  }
   0x6   :  { %s2952_s13 = smov 0   ;;  %s2954_s14 = smov 0  }
   0x7 LB: > { %s2534_s15 = sadd.s32 4294967295, %s2901_s14   ;;  %s2535_s16 = sadd.s32 4294967294, %s2901_s14   ;;  %s2901_s14 = sphi %s2954_s14, %s19_s14   ;;  %s2897_s13 = sphi %s2952_s13, %s4294_s13   ;;  %s2893_s12 = sphi %s2950_s12, %s4293_s12   ;;  %s2889_s11 = sphi %s2948_s11, %s4292_s11   ;;  %s2885_s10 = sphi %s2946_s10, %s4291_s10   ;;  %s2881_s9 = sphi %s2944_s9, %s4290_s9  }
   0x8   : > { %p74_p0 = scmp.ne.s32.totalorder %s2885_s10, %s2881_s9  ;;  %p2978_p1 = scmp.eq.s32.totalorder %s2534_s15, 0 }
   0x9   : > { %p2982_p2 = scmp.eq.s32.totalorder %s2534_s15, 1  ;;  %p104_p3 = scmp.eq.s32.totalorder %s2535_s16, 1 }
   0xa   : > { %p2988_p4 = por %p2978_p1, %p74_p0  ;;  %p2536_p5 = scmp.ge.s32.totalorder %s2901_s14, 1 }
   0xb   : > { %p2993_p6 = por %p104_p3, %p74_p0  ;;  %p111_p7 = scmp.lt.s32.totalorder %s2901_s14, 3 }
   0xc   : > { %s123_s23 = sshll.u32 %s4251_s0, 4  ;;  %s31_s25 = sadd.s32 1, %s2897_s13  ;;  %s124_s23 = int_to_ptr.hbm [resolvable:$true] %s123_s23 }
   0xd   : > { %p3001_p8 = pnand %p2536_p5, %p111_p7  ;;  %s61_s26 = sadd.s32 1, %s2889_s11 }
   0xe   : > { %p33_p12 = scmp.ge.s32.totalorder %s31_s25, 2  ;;  %s2903_s27 = smov [#allocation5]  }
   0xf   : > { %p2660_p10 = pneg %p3001_p8  ;;  %p68_p13 = scmp.ne.s32.totalorder %s2889_s11, %s2885_s10 }
  0x10   : > { %s4296_s25 = smov (%p33_p12, %s31_s25), 0  ;;  %p69_p0 = scmp.eq.s32.totalorder %s2901_s14, 0 }
  0x11   : > { %p2661_p11 = pnand %p2660_p10, %p2978_p1  ;;  %s56_s28 = ssub.s32 %s2897_s13, %s4296_s25 }
  0x12   : > { %p2673_p3 = scmp.lt.s32.totalorder %s2901_s14, 2  ;;  %p59_p5 = scmp.eq.s32.totalorder %s56_s28, 0 }
  0x13   : > { %2663 = dma.hbm_to_smem (!%p2661_p11), %s124_s23, 16, %s2903_s27, [#allocation8]  }
  0x14   : > { %p70_p7 = por %p69_p0, %p68_p13  ;;  %p3022_p9 = por %p2982_p2, %p68_p13 }
  0x15   : > { %s134_s30 = sand.u32 1, %s2889_s11   ;;  %s2650_s5 = sshll.u32 %s2897_s13, 3 }
  0x16   : > { %s3028_s3 = scalar_select %p59_p5, %s2889_s11, %s61_s26  }
  0x17   : > { %s2539_s4 = sshll.u32 %s134_s30, 3  ;;  %s145_s8 = scalar_lea.hbm %s4252_s1, %s2650_s5 }
  0x18   : > { %s138_s15 = scalar_lea.vmem [#allocation9], %s2539_s4  ;;  %s147_s21 = sshll.u32 %s145_s8, 4  ;;  %s148_s21 = int_to_ptr.hbm [resolvable:$true] %s147_s21 }
  0x19   : > { %s149_s16 = sshll.u32 %s138_s15, 4  ;;  %p2665_p10 = pnand %p2673_p3, %p70_p7  ;;  %s150_s16 = int_to_ptr.vmem [resolvable:$true] %s149_s16 }
  0x1a   : > { %s135_s18 = scalar_lea.sflag [#allocation6], %s134_s30  ;;  %158 = sbr.rel (%p3001_p8) target bundleno = 972 (0x3cc), region = 28 }
  0x1b   : > { %2667 = dma.hbm_to_vmem [thread:$0]  (!%p2665_p10), %s148_s21, 128, %s150_s16, %s135_s18  }
  0x1f   : > { %2868 = dma.done.wait (%p2978_p1), [#allocation8], 16  }
  0x20   : > { %2870 = vsyncadd (%p2978_p1), [#allocation8], 4294967280  ;;  %s3043_s22 = sand.u32 1, %s2885_s10  }
  0x21   : > { %s2544_s23 = sshll.u32 %s3043_s22, 3  ;;  %s166_s26 = scalar_lea.sflag [#allocation6], %s3043_s22 }
  0x22   : > { %s169_s27 = scalar_lea.vmem [#allocation9], %s2544_s23 }
  0x23   : > { %2872 = dma.done.wait (%p2988_p4), %s166_s26, 128  }
  0x24   : > { %2874 = vsyncadd (%p2988_p4), %s166_s26, 4294967168 }
  0x25   : > { %175 = sfence }
  0x26   : > { %v192_v0 = vld [vmem:[%s169_s27] sm:$0xff]  ;;  %v239_v1 = vlaneseq  ;;  %v2904_v3 = vmov 0.0   ;;  %vm199_vm1 = vcmask 1043456   ;;  %v2905_v12 = vmov -inf   ;;  %s2906_s17 = smov 99   ;;  %s2907_s19 = smov 115  }
  0x27   : > { %194 = vst [vmem:[#allocation1] ss:$2 sm:$0xff] %v192_v0  ;;  %vm249_vm2 = vcmask 1040384   ;;  %s2908_s24 = smov 3   ;;  %s2909_s28 = smov 67   ;;  %vm272_vm3 = vcmask 179200  }
  0x28   : > { %vm3051_vm0 = vcmp.lt.s32.totalorder %v239_v1, 256  ;;  %s2910_s30 = smov 51   ;;  %s2911_s4 = smov 83   ;;  %273 = vst.msk [vmem:[#allocation4] sm:$0xff] %vm272_vm3, %v2904_v3  ;;  %vm285_vm4 = vcmask 147480   ;;  %vm275_vm5 = vcmask 177152  }
  0x29   : > { %243 = vst.msk [vmem:[#allocation2] sm:$0x3] %vm3051_vm0, %v2904_v3  ;;  %s2912_s5 = smov 19   ;;  %s2913_s6 = smov 35   ;;  %vm595_vm6 = vcmask 1046528   ;;  %vm661_vm7 = vcmask 1044480  }
  0x2a   : > { %244 = vst.msk [vmem:[#allocation3] sm:$0x3] %vm3051_vm0, %v2905_v12  ;;  %s2914_s7 = smov 112   ;;  %s2915_s8 = smov 96   ;;  %vm628_vm8 = vcmask 1045504   ;;  %vm726_vm9 = vcmask 1042432  }
  0x2b   : > { %274 = vst.msk [vmem:[#allocation4 + $0x8] sm:$0xff] %vm272_vm3, %v2904_v3  ;;  %s2916_s15 = smov 80   ;;  %s2917_s16 = smov 64   ;;  %vm759_vm10 = vcmask 1041408   ;;  %vm2419_vm14 = vcmask 130048  }
  0x2c   : > { %277 = vst.msk [vmem:[#allocation4 + $0x18] sm:$0xff] %vm272_vm3, %v2904_v3  ;;  %s2918_s21 = smov 48   ;;  %s2919_s18 = smov 32  }
  0x2d   : > { %278 = vst.msk [vmem:[#allocation4 + $0x20] sm:$0xff] %vm272_vm3, %v2904_v3  ;;  %s2920_s23 = smov 16   ;;  %s3104_s26 = sld [smem:[#allocation5 + $0x3]] }
  0x2e   : > { %v195_v4 = vld.sshfl [vmem:[#allocation1] sm:$0xff pattern:$0x75316420]  ;;  %v196_v5 = vld.sshfl [vmem:[#allocation1 + $0x8] sm:$0xff pattern:$0x75316420] }
  0x2f   : > { %v200_v6 = vsel %vm199_vm1, %v195_v4, 0.0  ;;  %v207_v7 = vsel %vm199_vm1, %v196_v5, 0.0  ;;  %216 = vst [vmem:[#allocation1] ss:$2 sm:$0xff] %v192_v0  ;;  %s3108_s27 = sld [smem:[#allocation5 + $0x2]] }
  0x30   : > { %v201_v8 = vrot.slane %v200_v6, 4  ;;  %v208_v9 = vrot.slane %v207_v7, 4  ;;  %v245_v29 = vld [vmem:[#allocation2] sm:$0x3]  ;;  %276 = vst.msk [vmem:[#allocation4 + $0x10] sm:$0x3f] %vm275_vm5, %v2904_v3 }
  0x31   : > { %v258_v41 = vld [vmem:[#allocation3] sm:$0x3]  ;;  %279 = vst.msk [vmem:[#allocation4 + $0x28] sm:$0x3f] %vm275_vm5, %v2904_v3 }
  0x32   : > { %v202_v10 = vadd.f32 %v201_v8, %v200_v6  ;;  %v209_v11 = vadd.f32 %v208_v9, %v207_v7 }
  0x34   : > { %v203_v13 = vrot.slane %v202_v10, 2  ;;  %v210_v14 = vrot.slane %v209_v11, 2 }
  0x36   : > { %v204_v15 = vadd.f32 %v203_v13, %v202_v10  ;;  %v211_v16 = vadd.f32 %v210_v14, %v209_v11  ;;  %v217_v17 = vld.sshfl [vmem:[#allocation1] sm:$0xff pattern:$0x75316420]  ;;  %v218_v18 = vld.sshfl [vmem:[#allocation1 + $0x8] sm:$0xff pattern:$0x75316420] }
  0x37   : > { %v221_v19 = vsel %vm199_vm1, %v217_v17, -inf  ;;  %v228_v20 = vsel %vm199_vm1, %v218_v18, -inf }
  0x38   : > { %v205_v21 = vrot.slane %v204_v15, 1  ;;  %v212_v22 = vrot.slane %v211_v16, 1  ;;  %v222_v23 = vrot.slane %v221_v19, 4  ;;  %v229_v24 = vrot.slane %v228_v20, 4 }
  0x3a   : > { %v206_v25 = vadd.f32 %v205_v21, %v204_v15  ;;  %v213_v26 = vadd.f32 %v212_v22, %v211_v16  ;;  %v223_v27 = vmax.f32 %v221_v19, %v222_v23  ;;  %v230_v28 = vmax.f32 %v228_v20, %v229_v24 }
  0x3c   : > { %v248_v30 = vrot.slane %v213_v26, 7  ;;  %v224_v31 = vrot.slane %v223_v27, 2  ;;  %v231_v32 = vrot.slane %v230_v28, 2 }
  0x3e   : > { %v250_v33 = vsel %vm249_vm2, %v206_v25, %v248_v30  ;;  %v225_v34 = vmax.f32 %v223_v27, %v224_v31  ;;  %v232_v35 = vmax.f32 %v230_v28, %v231_v32 }
  0x3f   : > { %v252_v36 = vadd.f32 %v250_v33, %v245_v29 }
  0x40   : > { %v226_v37 = vrot.slane %v225_v34, 1  ;;  %v233_v38 = vrot.slane %v232_v35, 1 }
  0x41   : > { %257 = vst.msk [vmem:[#allocation2] sm:$0x3] %vm3051_vm0, %v252_v36 }
  0x42   : > { %v227_v39 = vmax.f32 %v225_v34, %v226_v37  ;;  %v234_v40 = vmax.f32 %v232_v35, %v233_v38 }
  0x44   : > { %v261_v42 = vrot.slane %v234_v40, 7 }
  0x46   : > { %v262_v43 = vsel %vm249_vm2, %v227_v39, %v261_v42 }
  0x47   : > { %v264_v44 = vmax.f32 %v258_v41, %v262_v43 }
  0x48   : > { %v269_v45 = vld [vmem:[#allocation2] sm:$0x3] }
  0x49   : > { %v270_v46 = vmul.f32 0.25, %v269_v45  ;;  %265 = vst.msk [vmem:[#allocation3] sm:$0x3] %vm3051_vm0, %v264_v44  ;;  %v1317_v44 = vstv %s3104_s26  ;;  %s2554_s26 = sld [smem:[#allocation5 + $0x9]] }
  0x4b   : > { %v281_v47 = vperm.slane %v270_v46, 0  ;;  %v350_v48 = vrot.slane %v270_v46, 1 }
  0x4d   : > { %302 = vrot.lane.b32.xlu2 %v281_v47, %s2906_s17  ;;  %294 = vrot.lane.b32.xlu1 %v281_v47, %s2907_s19  ;;  %v351_v49 = vperm.slane %v350_v48, 0 }
  0x4e   : > { %282 = vrot.lane.b32.xlu0 %v281_v47, %s2908_s24 }
  0x50   : > { %v271_v50 = vld [vmem:[#allocation3] sm:$0x3] }
  0x51   : > { %v288_v51 = vperm.slane %v271_v50, 0  ;;  %v356_v52 = vrot.slane %v271_v50, 1 }
  0x53   : > { %v357_v53 = vperm.slane %v356_v52, 0  ;;  %v1051_v52 = vstv %s3108_s27  ;;  %s2582_s27 = sld [smem:[#allocation5 + $0x25]] }
  0x55   : > { %318 = vrot.lane.b32.xlu2 %v281_v47, %s2909_s28  ;;  %326 = vrot.lane.b32.xlu1 %v281_v47, %s2910_s30 }
  0x56   : > { %310 = vrot.lane.b32.xlu0 %v281_v47, %s2911_s4 }
  0x5d   : > { %342 = vrot.lane.b32.xlu2 %v281_v47, %s2912_s5  ;;  %352 = vrot.lane.b32.xlu1 %v351_v49, %s2908_s24 }
  0x5e   : > { %334 = vrot.lane.b32.xlu0 %v281_v47, %s2913_s6 }
  0x65   : > { %306 = vrot.lane.b32.xlu2 %v288_v51, %s2906_s17  ;;  %298 = vrot.lane.b32.xlu1 %v288_v51, %s2907_s19  ;;  %s3113_s17 = sld [smem:[#allocation5 + $0x32]]  ;;  %s2921_s19 = smov 125  }
  0x66   : > { %289 = vrot.lane.b32.xlu0 %v288_v51, %s2908_s24 }
  0x6d   : > { %330 = vrot.lane.b32.xlu2 %v288_v51, %s2910_s30  ;;  %314 = vrot.lane.b32.xlu1 %v288_v51, %s2911_s4  ;;  %s2922_s30 = smov 126   ;;  %s2923_s4 = smov 127  }
  0x6e   : > { %322 = vrot.lane.b32.xlu0 %v288_v51, %s2909_s28  ;;  %s3125_s28 = sld [smem:[#allocation5 + $0x34]] }
  0x75   : > { %358 = vrot.lane.b32.xlu2 %v357_v53, %s2908_s24  ;;  %338 = vrot.lane.b32.xlu1 %v288_v51, %s2913_s6  ;;  %v798_v53 = vstv %s3113_s17  ;;  %s3143_s6 = sld [smem:[#allocation5 + $0x33]] }
  0x76   : > { %346 = vrot.lane.b32.xlu0 %v288_v51, %s2912_s5  ;;  %s3135_s5 = sld [smem:[#allocation5 + $0x1]] }
  0x77   : > { %s2623_s17 = sld [smem:[#allocation5 + $0x4e]] }
  0x7d   : > { %370 = vrot.lane.b32.xlu2 %v271_v50, %s2914_s7  ;;  %378 = vrot.lane.b32.xlu1 %v270_v46, %s2915_s8 }
  0x7e   : > { %362 = vrot.lane.b32.xlu0 %v270_v46, %s2914_s7  ;;  %s2567_s7 = sld [smem:[#allocation5 + $0x16]] }
  0x85   : > { %394 = vrot.lane.b32.xlu2 %v270_v46, %s2916_s15  ;;  %402 = vrot.lane.b32.xlu1 %v271_v50, %s2916_s15  ;;  %s2574_s15 = sld [smem:[#allocation5 + $0x1d]] }
  0x86   : > { %386 = vrot.lane.b32.xlu0 %v271_v50, %s2915_s8  ;;  %s2560_s8 = sld [smem:[#allocation5 + $0xf]] }
  0x8d   : > { %418 = vrot.lane.b32.xlu2 %v271_v50, %s2917_s16  ;;  %426 = vrot.lane.b32.xlu1 %v270_v46, %s2918_s21 }
  0x8e   : > { %410 = vrot.lane.b32.xlu0 %v270_v46, %s2917_s16  ;;  %s2588_s16 = sld [smem:[#allocation5 + $0x2b]] }
  0x95   : > { %442 = vrot.lane.b32.xlu2 %v270_v46, %s2919_s18  ;;  %450 = vrot.lane.b32.xlu1 %v271_v50, %s2919_s18  ;;  %s2561_s18 = sld [smem:[#allocation5 + $0x10]] }
  0x96   : > { %434 = vrot.lane.b32.xlu0 %v271_v50, %s2918_s21  ;;  %s2581_s21 = sld [smem:[#allocation5 + $0x24]] }
  0x9d   : > { %466 = vrot.lane.b32.xlu2 %v271_v50, %s2920_s23 }
  0x9e   : > { %458 = vrot.lane.b32.xlu0 %v270_v46, %s2920_s23  ;;  %s2568_s23 = sld [smem:[#allocation5 + $0x17]] }
  0xa7   : > { %v303_v54 = vpop.permute.xlu2 %302 }
  0xa8   : > { %305 = vst.msk [vmem:[#allocation4 + $0x5] sm:$0x1] %vm285_vm4, %v303_v54 }
  0xaf   : > { %v319_v55 = vpop.permute.xlu2 %318 }
  0xb0   : > { %321 = vst.msk [vmem:[#allocation4 + $0x7] sm:$0x1] %vm285_vm4, %v319_v55 }
  0xb7   : > { %v343_v56 = vpop.permute.xlu2 %342 }
  0xb8   : > { %345 = vst.msk [vmem:[#allocation4 + $0xa] sm:$0x1] %vm285_vm4, %v343_v56 }
  0xbf   : > { %v307_v57 = vpop.permute.xlu2 %306  ;;  %v295_v58 = vpop.permute.xlu1 %294 }
  0xc0   : > { %309 = vst.msk [vmem:[#allocation4 + $0x1d] sm:$0x1] %vm285_vm4, %v307_v57  ;;  %v283_v59 = vpop.permute.xlu0 %282 }
  0xc1   : > { %297 = vst.msk [vmem:[#allocation4 + $0x4] sm:$0x1] %vm285_vm4, %v295_v58  ;;  %v1330_v58 = vstv %s3125_s28  ;;  %s2630_s28 = sld [smem:[#allocation5 + $0x55]] }
  0xc2   : > { %286 = vst.msk [vmem:[#allocation4 + $0x3] sm:$0x1] %vm285_vm4, %v283_v59 }
  0xc7   : > { %v331_v60 = vpop.permute.xlu2 %330  ;;  %v327_v61 = vpop.permute.xlu1 %326 }
  0xc8   : > { %333 = vst.msk [vmem:[#allocation4 + $0x20] sm:$0x1] %vm285_vm4, %v331_v60  ;;  %v311_v62 = vpop.permute.xlu0 %310 }
  0xc9   : > { %329 = vst.msk [vmem:[#allocation4 + $0x8] sm:$0x1] %vm285_vm4, %v327_v61  ;;  %v785_v61 = vstv %s3135_s5  ;;  %s2589_s5 = sld [smem:[#allocation5 + $0x2c]] }
  0xca   : > { %313 = vst.msk [vmem:[#allocation4 + $0x6] sm:$0x1] %vm285_vm4, %v311_v62 }
  0xcf   : > { %v359_v63 = vpop.permute.xlu2 %358  ;;  %v353_v0 = vpop.permute.xlu1 %352 }
  0xd0   : > { %361 = vst.msk [vmem:[#allocation4 + $0x23] sm:$0x1] %vm285_vm4, %v359_v63  ;;  %v335_v1 = vpop.permute.xlu0 %334  ;;  %v1064_v63 = vstv %s3143_s6  ;;  %s2637_s6 = sld [smem:[#allocation5 + $0x5c]] }
  0xd1   : > { %355 = vst.msk [vmem:[#allocation4 + $0xb] sm:$0x1] %vm285_vm4, %v353_v0  ;;  %v3110_v43 = vld [vmem:[#allocation4] sm:$0xff] }
  0xd2   : > { %337 = vst.msk [vmem:[#allocation4 + $0x9] sm:$0x1] %vm285_vm4, %v335_v1  ;;  %v1318_v48 = vmul.f32 %v1317_v44, %v3110_v43  ;;  %v1052_v54 = vmul.f32 %v1051_v52, %v3110_v43  ;;  %v786_v62 = vmul.f32 %v785_v61, %v3110_v43 }
  0xd7   : > { %v371_v2 = vpop.permute.xlu2 %370  ;;  %v299_v4 = vpop.permute.xlu1 %298 }
  0xd8   : > { %301 = vst.msk [vmem:[#allocation4 + $0x1c] sm:$0x1] %vm285_vm4, %v299_v4  ;;  %v290_v5 = vpop.permute.xlu0 %289  ;;  %v372_v23 = vrot.slane %v371_v2, 1 }
  0xd9   : > { %293 = vst.msk [vmem:[#allocation4 + $0x1b] sm:$0x1] %vm285_vm4, %v290_v5 }
  0xda   : > { %v373_v25 = vperm.slane %v372_v23, 0  ;;  %v891_v23 = vstv %s2567_s7  ;;  %s2555_s7 = sld [smem:[#allocation5 + $0xa]] }
  0xdf   : > { %v395_v6 = vpop.permute.xlu2 %394  ;;  %v315_v7 = vpop.permute.xlu1 %314 }
  0xe0   : > { %v396_v8 = vrot.slane %v395_v6, 1  ;;  %317 = vst.msk [vmem:[#allocation4 + $0x1e] sm:$0x1] %vm285_vm4, %v315_v7  ;;  %v323_v9 = vpop.permute.xlu0 %322 }
  0xe1   : > { %325 = vst.msk [vmem:[#allocation4 + $0x1f] sm:$0x1] %vm285_vm4, %v323_v9 }
  0xe2   : > { %v397_v10 = vperm.slane %v396_v8, 0 }
  0xe4   : > { %398 = vrot.lane.b32.xlu0 %v397_v10, %s2908_s24 }
  0xe7   : > { %v419_v11 = vpop.permute.xlu2 %418  ;;  %v339_v12 = vpop.permute.xlu1 %338 }
  0xe8   : > { %341 = vst.msk [vmem:[#allocation4 + $0x21] sm:$0x1] %vm285_vm4, %v339_v12  ;;  %v347_v13 = vpop.permute.xlu0 %346  ;;  %v420_v27 = vrot.slane %v419_v11, 1  ;;  %v3121_v50 = vld [vmem:[#allocation4 + $0x18] sm:$0xff] }
  0xe9   : > { %349 = vst.msk [vmem:[#allocation4 + $0x22] sm:$0x1] %vm285_vm4, %v347_v13  ;;  %v799_v55 = vmul.f32 %v798_v53, %v3121_v50  ;;  %v1331_v59 = vmul.f32 %v1330_v58, %v3121_v50  ;;  %v1065_v0 = vmul.f32 %v1064_v63, %v3121_v50 }
  0xea   : > { %v421_v29 = vperm.slane %v420_v27, 0 }
  0xef   : > { %v443_v14 = vpop.permute.xlu2 %442  ;;  %v379_v15 = vpop.permute.xlu1 %378 }
  0xf0   : > { %v444_v16 = vrot.slane %v443_v14, 1  ;;  %v380_v17 = vrot.slane %v379_v15, 1  ;;  %v363_v18 = vpop.permute.xlu0 %362 }
  0xf1   : > { %v364_v19 = vrot.slane %v363_v18, 1 }
  0xf2   : > { %v445_v20 = vperm.slane %v444_v16, 0  ;;  %v381_v21 = vperm.slane %v380_v17, 0 }
  0xf3   : > { %v365_v22 = vperm.slane %v364_v19, 0 }
  0xf4   : > { %446 = vrot.lane.b32.xlu0 %v445_v20, %s2908_s24  ;;  %382 = vrot.lane.b32.xlu2 %v381_v21, %s2908_s24 }
  0xf5   : > { %366 = vrot.lane.b32.xlu1 %v365_v22, %s2908_s24 }
  0xf7   : > { %v403_v24 = vpop.permute.xlu1 %402  ;;  %v467_v33 = vpop.permute.xlu2 %466 }
  0xf8   : > { %v387_v26 = vpop.permute.xlu0 %386  ;;  %v404_v36 = vrot.slane %v403_v24, 1  ;;  %v468_v37 = vrot.slane %v467_v33, 1 }
  0xf9   : > { %v388_v51 = vrot.slane %v387_v26, 1 }
  0xfa   : > { %v405_v38 = vperm.slane %v404_v36, 0  ;;  %v469_v39 = vperm.slane %v468_v37, 0  ;;  %v931_v37 = vstv %s2574_s15  ;;  %s2609_s15 = sld [smem:[#allocation5 + $0x40]] }
  0xfb   : > { %v389_v56 = vperm.slane %v388_v51, 0 }
  0xfc   : > { %374 = vrot.lane.b32.xlu0 %v373_v25, %s2908_s24  ;;  %v851_v25 = vstv %s2560_s8  ;;  %s2562_s8 = sld [smem:[#allocation5 + $0x11]] }
  0xff   : > { %v427_v28 = vpop.permute.xlu1 %426 }
 0x100   : > { %v428_v30 = vrot.slane %v427_v28, 1  ;;  %v411_v31 = vpop.permute.xlu0 %410 }
 0x101   : > { %v412_v32 = vrot.slane %v411_v31, 1 }
 0x102   : > { %v429_v34 = vperm.slane %v428_v30, 0 }
 0x103   : > { %v413_v35 = vperm.slane %v412_v32, 0 }
 0x104   : > { %430 = vrot.lane.b32.xlu2 %v429_v34, %s2908_s24  ;;  %422 = vrot.lane.b32.xlu0 %v421_v29, %s2908_s24 }
 0x105   : > { %414 = vrot.lane.b32.xlu1 %v413_v35, %s2908_s24 }
 0x107   : > { %v451_v41 = vpop.permute.xlu1 %450 }
 0x108   : > { %v435_v40 = vpop.permute.xlu0 %434  ;;  %v452_v42 = vrot.slane %v451_v41, 1 }
 0x109   : > { %v436_v57 = vrot.slane %v435_v40, 1 }
 0x10a   : > { %v453_v45 = vperm.slane %v452_v42, 0  ;;  %v932_v42 = vmul.f32 %v931_v37, %v3110_v43 }
 0x10b   : > { %v437_v60 = vperm.slane %v436_v57, 0 }
 0x10c   : > { %406 = vrot.lane.b32.xlu2 %v405_v38, %s2908_s24  ;;  %470 = vrot.lane.b32.xlu0 %v469_v39, %s2908_s24 }
 0x110   : > { %v459_v46 = vpop.permute.xlu0 %458 }
 0x111   : > { %v460_v47 = vrot.slane %v459_v46, 1  ;;  %v852_v46 = vmul.f32 %v851_v25, %v3110_v43 }
 0x113   : > { %v461_v49 = vperm.slane %v460_v47, 0  ;;  %v858_v51 = vrot.slane %v852_v46, 2 }
 0x114   : > { %454 = vrot.lane.b32.xlu2 %v453_v45, %s2908_s24  ;;  %1322 = vrot.lane.b32.xlu0 %v1318_v48, %s2921_s19  ;;  %v938_v48 = vrot.slane %v932_v42, 4 }
 0x115   : > { %462 = vrot.lane.b32.xlu1 %v461_v49, %s2908_s24 }
 0x11c   : > { %1056 = vrot.lane.b32.xlu2 %v1052_v54, %s2922_s30  ;;  %803 = vrot.lane.b32.xlu0 %v799_v55, %s2923_s4  ;;  %v971_v54 = vstv %s2581_s21  ;;  %s2616_s21 = sld [smem:[#allocation5 + $0x47]] }
 0x11d   : > { %390 = vrot.lane.b32.xlu1 %v389_v56, %s2908_s24 }
 0x124   : > { %1335 = vrot.lane.b32.xlu2 %v1331_v59, %s2921_s19 }
 0x125   : > { %438 = vrot.lane.b32.xlu1 %v437_v60, %s2908_s24  ;;  %s2553_s24 = sld [smem:[#allocation5 + $0x8]] }
 0x12b   : > { %v811_v16 = vstv %s2553_s24  ;;  %s2575_s24 = sld [smem:[#allocation5 + $0x1e]] }
 0x12c   : > { %v812_v18 = vmul.f32 %v811_v16, %v3110_v43 }
 0x12d   : > { %790 = vrot.lane.b32.xlu1 %v786_v62, %s2923_s4 }
 0x12e   : > { %v818_v21 = vrot.slane %v812_v18, 1 }
 0x135   : > { %1069 = vrot.lane.b32.xlu1 %v1065_v0, %s2922_s30 }
 0x14e   : > { %v383_v1 = vpop.permute.xlu2 %382 }
 0x14f   : > { %385 = vst.msk [vmem:[#allocation4 + $0xd] sm:$0x1] %vm285_vm4, %v383_v1 }
 0x156   : > { %v399_v2 = vpop.permute.xlu0 %398 }
 0x157   : > { %401 = vst.msk [vmem:[#allocation4 + $0xe] sm:$0x1] %vm285_vm4, %v399_v2 }
 0x15e   : > { %v431_v4 = vpop.permute.xlu2 %430 }
 0x15f   : > { %433 = vst.msk [vmem:[#allocation4 + $0x10] sm:$0x1] %vm285_vm4, %v431_v4 }
 0x166   : > { %v407_v5 = vpop.permute.xlu2 %406  ;;  %v447_v6 = vpop.permute.xlu0 %446 }
 0x167   : > { %409 = vst.msk [vmem:[#allocation4 + $0x26] sm:$0x1] %vm285_vm4, %v407_v5  ;;  %v367_v3 = vpop.permute.xlu1 %366 }
 0x168   : > { %369 = vst.msk [vmem:[#allocation4 + $0xc] sm:$0x1] %vm285_vm4, %v367_v3  ;;  %v1117_v3 = vstv %s2561_s18  ;;  %s2603_s18 = sld [smem:[#allocation5 + $0x3a]] }
 0x169   : > { %449 = vst.msk [vmem:[#allocation4 + $0x11] sm:$0x1] %vm285_vm4, %v447_v6  ;;  %v1118_v42 = vmul.f32 %v1117_v3, %v3110_v43 }
 0x16e   : > { %v455_v7 = vpop.permute.xlu2 %454  ;;  %v375_v8 = vpop.permute.xlu0 %374 }
 0x16f   : > { %457 = vst.msk [vmem:[#allocation4 + $0x29] sm:$0x1] %vm285_vm4, %v455_v7 }
 0x170   : > { %377 = vst.msk [vmem:[#allocation4 + $0x24] sm:$0x1] %vm285_vm4, %v375_v8 }
 0x176   : > { %v423_v9 = vpop.permute.xlu0 %422 }
 0x177   : > { %v415_v10 = vpop.permute.xlu1 %414  ;;  %425 = vst.msk [vmem:[#allocation4 + $0x27] sm:$0x1] %vm285_vm4, %v423_v9 }
 0x178   : > { %417 = vst.msk [vmem:[#allocation4 + $0xf] sm:$0x1] %vm285_vm4, %v415_v10 }
 0x17e   : > { %v471_v11 = vpop.permute.xlu0 %470 }
 0x17f   : > { %v3164_v12 = vld [vmem:[#allocation4 + $0x8] sm:$0xff]  ;;  %473 = vst.msk [vmem:[#allocation4 + $0x2a] sm:$0x1] %vm285_vm4, %v471_v11 }
 0x180   : > { %v1319_v13 = vmul.f32 %v1317_v44, %v3164_v12  ;;  %v1053_v14 = vmul.f32 %v1051_v52, %v3164_v12  ;;  %v787_v15 = vmul.f32 %v785_v61, %v3164_v12  ;;  %v813_v17 = vmul.f32 %v811_v16, %v3164_v12 }
 0x181   : > { %v893_v24 = vmul.f32 %v891_v23, %v3164_v12  ;;  %v853_v26 = vmul.f32 %v851_v25, %v3164_v12  ;;  %v933_v41 = vmul.f32 %v931_v37, %v3164_v12  ;;  %v892_v44 = vmul.f32 %v891_v23, %v3110_v43 }
 0x182   : > { %1324 = vrot.lane.b32.xlu1 %v1319_v13, %s2921_s19  ;;  %1058 = vrot.lane.b32.xlu0 %v1053_v14, %s2922_s30  ;;  %v819_v19 = vrot.slane %v813_v17, 1  ;;  %v1011_v52 = vstv %s2588_s16  ;;  %v973_v0 = vmul.f32 %v971_v54, %v3164_v12  ;;  %v1119_v11 = vmul.f32 %v1117_v3, %v3164_v12  ;;  %s2602_s16 = sld [smem:[#allocation5 + $0x39]] }
 0x183   : > { %792 = vrot.lane.b32.xlu2 %v787_v15, %s2923_s4  ;;  %v899_v32 = vrot.slane %v893_v24, 3  ;;  %v859_v34 = vrot.slane %v853_v26, 2  ;;  %v939_v47 = vrot.slane %v933_v41, 4  ;;  %v898_v49 = vrot.slane %v892_v44, 3 }
 0x184   : > { %v820_v22 = vsel %vm595_vm6, %v818_v21, %v819_v19  ;;  %v1013_v62 = vmul.f32 %v1011_v52, %v3164_v12  ;;  %v979_v6 = vrot.slane %v973_v0, 5  ;;  %v1012_v13 = vmul.f32 %v1011_v52, %v3110_v43 }
 0x185   : > { %v940_v55 = vsel %vm199_vm1, %v938_v48, %v939_v47  ;;  %v900_v56 = vsel %vm661_vm7, %v898_v49, %v899_v32  ;;  %v860_v60 = vsel %vm628_vm8, %v858_v51, %v859_v34  ;;  %v972_v14 = vmul.f32 %v971_v54, %v3110_v43 }
 0x186   : > { %v1019_v5 = vrot.slane %v1013_v62, 6  ;;  %v1018_v17 = vrot.slane %v1012_v13, 6  ;;  %v1277_v48 = vstv %s2589_s5  ;;  %v1197_v49 = vstv %s2575_s24  ;;  %s3363_s5 = sld [smem:[#allocation5]] }
 0x187   : > { %v463_v20 = vpop.permute.xlu1 %462  ;;  %v978_v18 = vrot.slane %v972_v14, 5  ;;  %s3369_s24 = sld [smem:[#allocation5 + $0x7]] }
 0x188   : > { %465 = vst.msk [vmem:[#allocation4 + $0x12] sm:$0x1] %vm285_vm4, %v463_v20  ;;  %v1077_v20 = vstv %s2554_s26  ;;  %s2617_s26 = sld [smem:[#allocation5 + $0x48]] }
 0x189   : > { %v1079_v26 = vmul.f32 %v1077_v20, %v3164_v12 }
 0x18b   : > { %823 = vrot.lane.b32.xlu2 %v820_v22, %s2923_s4  ;;  %v1020_v22 = vsel %vm759_vm10, %v1018_v17, %v1019_v5  ;;  %v3264_v17 = vstv %s2562_s8  ;;  %s3380_s8 = sld [smem:[#allocation5 + $0x15]] }
 0x18f   : > { %v3182_v27 = vld [vmem:[#allocation4 + $0x10] sm:$0x3f]  ;;  %v391_v28 = vpop.permute.xlu1 %390 }
 0x190   : > { %393 = vst.msk [vmem:[#allocation4 + $0x25] sm:$0x1] %vm285_vm4, %v391_v28  ;;  %v894_v29 = vmul.f32 %v891_v23, %v3182_v27  ;;  %v854_v30 = vmul.f32 %v851_v25, %v3182_v27  ;;  %v814_v31 = vmul.f32 %v811_v16, %v3182_v27  ;;  %v1014_v57 = vmul.f32 %v1011_v52, %v3182_v27 }
 0x191   : > { %v974_v59 = vmul.f32 %v971_v54, %v3182_v27  ;;  %v934_v61 = vmul.f32 %v931_v37, %v3182_v27  ;;  %v1120_v9 = vmul.f32 %v1117_v3, %v3182_v27  ;;  %v1125_v16 = vrot.slane %v1119_v11, 2 }
 0x192   : > { %v901_v33 = vrot.slane %v894_v29, 3  ;;  %v861_v35 = vrot.slane %v854_v30, 2  ;;  %v821_v36 = vrot.slane %v814_v31, 1  ;;  %v1021_v1 = vrot.slane %v1014_v57, 6 }
 0x193   : > { %v981_v2 = vrot.slane %v974_v59, 5  ;;  %v941_v4 = vrot.slane %v934_v61, 4  ;;  %v1127_v15 = vrot.slane %v1120_v9, 2  ;;  %v1080_v24 = vmul.f32 %v1077_v20, %v3182_v27 }
 0x194   : > { %v902_v38 = vsel %vm661_vm7, %v899_v32, %v901_v33  ;;  %v862_v39 = vsel %vm628_vm8, %v859_v34, %v861_v35  ;;  %v822_v40 = vsel %vm595_vm6, %v819_v19, %v821_v36  ;;  %v1022_v7 = vsel %vm759_vm10, %v1019_v5, %v1021_v1 }
 0x195   : > { %905 = vrot.lane.b32.xlu2 %v902_v38, %s2923_s4  ;;  %865 = vrot.lane.b32.xlu1 %v862_v39, %s2923_s4  ;;  %v982_v8 = vsel %vm726_vm9, %v979_v6, %v981_v2  ;;  %v942_v10 = vsel %vm199_vm1, %v939_v47, %v941_v4  ;;  %v1157_v19 = vstv %s2568_s23  ;;  %v1128_v21 = vsel %vm628_vm8, %v1125_v16, %v1127_v15  ;;  %s2610_s23 = sld [smem:[#allocation5 + $0x41]] }
 0x196   : > { %825 = vrot.lane.b32.xlu0 %v822_v40, %s2923_s4  ;;  %v1159_v23 = vmul.f32 %v1157_v19, %v3164_v12  ;;  %v980_v25 = vsel %vm726_vm9, %v978_v18, %v979_v6  ;;  %v1158_v28 = vmul.f32 %v1157_v19, %v3110_v43  ;;  %v1078_v29 = vmul.f32 %v1077_v20, %v3110_v43 }
 0x197   : > { %v439_v45 = vpop.permute.xlu1 %438  ;;  %v1087_v31 = vrot.slane %v1080_v24, 1  ;;  %v1085_v32 = vrot.slane %v1079_v26, 1  ;;  %v1237_v35 = vstv %s2582_s27  ;;  %v1160_v40 = vmul.f32 %v1157_v19, %v3182_v27  ;;  %s2624_s27 = sld [smem:[#allocation5 + $0x4f]] }
 0x198   : > { %441 = vst.msk [vmem:[#allocation4 + $0x28] sm:$0x1] %vm285_vm4, %v439_v45  ;;  %v1165_v30 = vrot.slane %v1159_v23, 3  ;;  %v1164_v33 = vrot.slane %v1158_v28, 3  ;;  %v1084_v34 = vrot.slane %v1078_v29, 1  ;;  %v1240_v38 = vmul.f32 %v1237_v35, %v3182_v27 }
 0x199   : > { %v1088_v37 = vsel %vm595_vm6, %v1085_v32, %v1087_v31  ;;  %v1239_v41 = vmul.f32 %v1237_v35, %v3164_v12  ;;  %v1167_v45 = vrot.slane %v1160_v40, 3  ;;  %v1124_v47 = vrot.slane %v1118_v42, 2 }
 0x19a   : > { %v1166_v36 = vsel %vm661_vm7, %v1164_v33, %v1165_v30  ;;  %v1086_v39 = vsel %vm595_vm6, %v1084_v34, %v1085_v32  ;;  %v1247_v44 = vrot.slane %v1240_v38, 5  ;;  %v1279_v54 = vmul.f32 %v1277_v48, %v3164_v12 }
 0x19b   : > { %v1245_v46 = vrot.slane %v1239_v41, 5  ;;  %v1126_v52 = vsel %vm628_vm8, %v1124_v47, %v1125_v16  ;;  %v1199_v57 = vmul.f32 %v1197_v49, %v3164_v12  ;;  %v1278_v59 = vmul.f32 %v1277_v48, %v3110_v43  ;;  %v3262_v16 = vpop.permute.xlu2 %1056 }
 0x19c   : > { %v1285_v61 = vrot.slane %v1279_v54, 6  ;;  %v1343_v4 = vstv %s2555_s7  ;;  %v3270_v20 = vmul.f32 %v3264_v17, %v3164_v12  ;;  %v871_v33 = vstv %s2609_s15  ;;  %s3373_s7 = sld [smem:[#allocation5 + $0xe]] }
 0x19d   : > { %943 = vrot.lane.b32.xlu2 %v940_v55, %s2923_s4  ;;  %903 = vrot.lane.b32.xlu1 %v900_v56, %s2923_s4  ;;  %v1248_v51 = vsel %vm726_vm9, %v1245_v46, %v1247_v44  ;;  %v1200_v55 = vmul.f32 %v1197_v49, %v3182_v27  ;;  %v1168_v56 = vsel %vm661_vm7, %v1165_v30, %v1167_v45  ;;  %v1205_v0 = vrot.slane %v1199_v57, 4  ;;  %s3386_s15 = sld [smem:[#allocation5 + $0x23]] }
 0x19e   : > { %863 = vrot.lane.b32.xlu0 %v860_v60, %s2923_s4  ;;  %v1198_v60 = vmul.f32 %v1197_v49, %v3110_v43  ;;  %v1284_v1 = vrot.slane %v1278_v59, 6  ;;  %v1346_v3 = vmul.f32 %v1343_v4, %v3182_v27  ;;  %v1345_v9 = vmul.f32 %v1343_v4, %v3164_v12 }
 0x19f   : > { %v1207_v62 = vrot.slane %v1200_v55, 4  ;;  %v1344_v23 = vmul.f32 %v1343_v4, %v3110_v43  ;;  %v4254_v24 = vrot.slane %v3270_v20, 2  ;;  %v3282_v26 = vld [vmem:[#allocation4 + $0x28] sm:$0x3f]  ;;  %v831_v40 = vstv %s2602_s16  ;;  %s2631_s16 = sld [smem:[#allocation5 + $0x56]] }
 0x1a0   : > { %v1204_v2 = vrot.slane %v1198_v60, 4  ;;  %v1286_v5 = vsel %vm759_vm10, %v1284_v1, %v1285_v61  ;;  %v1353_v11 = vrot.slane %v1346_v3, 1  ;;  %v1351_v14 = vrot.slane %v1345_v9, 1 }
 0x1a1   : > { %v1208_v6 = vsel %vm199_vm1, %v1205_v0, %v1207_v62  ;;  %v1350_v29 = vrot.slane %v1344_v23, 1  ;;  %v911_v42 = vstv %s2616_s21  ;;  %v834_v44 = vmul.f32 %v831_v40, %v3282_v26  ;;  %s3388_s21 = sld [smem:[#allocation5 + $0x2a]] }
 0x1a2   : > { %v1354_v18 = vsel %vm595_vm6, %v1351_v14, %v1353_v11  ;;  %v912_v47 = vmul.f32 %v911_v42, %v3121_v50  ;;  %v914_v57 = vmul.f32 %v911_v42, %v3282_v26  ;;  %v991_v59 = vstv %s2630_s28  ;;  %s3394_s28 = sld [smem:[#allocation5 + $0x31]] }
 0x1a3   : > { %v1352_v31 = vsel %vm595_vm6, %v1350_v29, %v1351_v14  ;;  %v3291_v34 = vpop.permute.xlu2 %1335  ;;  %v841_v49 = vrot.slane %v834_v44, 1  ;;  %v872_v62 = vmul.f32 %v871_v33, %v3121_v50  ;;  %v951_v3 = vstv %s2623_s17  ;;  %s3400_s17 = sld [smem:[#allocation5 + $0x38]] }
 0x1a4   : > { %4264 = vst [vmem:[#allocation14_spill] sm:$0xff] %v3291_v34  ;;  %v918_v54 = vrot.slane %v912_v47, 3  ;;  %v954_v11 = vmul.f32 %v951_v3, %v3282_v26  ;;  %v1137_v47 = vstv %s2610_s23  ;;  %s3415_s23 = sld [smem:[#allocation5 + $0x4d]] }
 0x1a5   : > { %1025 = vrot.lane.b32.xlu2 %v1022_v7, %s2923_s4  ;;  %985 = vrot.lane.b32.xlu1 %v982_v8, %s2923_s4  ;;  %v1206_v7 = vsel %vm199_vm1, %v1204_v2, %v1205_v0  ;;  %v1280_v8 = vmul.f32 %v1277_v48, %v3182_v27  ;;  %v921_v2 = vrot.slane %v914_v57, 3 }
 0x1a6   : > { %945 = vrot.lane.b32.xlu0 %v942_v10, %s2923_s4  ;;  %v1238_v10 = vmul.f32 %v1237_v35, %v3110_v43  ;;  %v874_v35 = vmul.f32 %v871_v33, %v3282_v26 }
 0x1a7   : > { %v1287_v13 = vrot.slane %v1280_v8, 6 }
 0x1a8   : > { %v1244_v15 = vrot.slane %v1238_v10, 5 }
 0x1aa   : > { %v1246_v19 = vsel %vm726_vm9, %v1244_v15, %v1245_v46 }
 0x1ad   : > { %1131 = vrot.lane.b32.xlu2 %v1128_v21, %s2922_s30  ;;  %1023 = vrot.lane.b32.xlu1 %v1020_v22, %s2923_s4  ;;  %v1288_v21 = vsel %vm759_vm10, %v1285_v61, %v1287_v13  ;;  %v1384_v22 = vmul.f32 %v3264_v17, %v3110_v43  ;;  %v994_v61 = vmul.f32 %v991_v59, %v3282_v26  ;;  %v3331_v13 = vpop.permute.xlu1 %790 }
 0x1ae   : > { %983 = vrot.lane.b32.xlu0 %v980_v25, %s2923_s4  ;;  %v3280_v25 = vld [vmem:[#allocation4 + $0x20] sm:$0xff] }
 0x1af   : > { %v1390_v28 = vrot.slane %v1384_v22, 2  ;;  %v1332_v32 = vmul.f32 %v1330_v58, %v3280_v25  ;;  %v1066_v38 = vmul.f32 %v1064_v63, %v3280_v25  ;;  %v800_v58 = vmul.f32 %v798_v53, %v3280_v25 }
 0x1b0   : > { %v833_v41 = vmul.f32 %v831_v40, %v3280_v25  ;;  %v913_v63 = vmul.f32 %v911_v42, %v3280_v25  ;;  %v832_v53 = vmul.f32 %v831_v40, %v3121_v50  ;;  %v993_v1 = vmul.f32 %v991_v59, %v3280_v25 }
 0x1b1   : > { %v1392_v30 = vsel %vm628_vm8, %v1390_v28, %v4254_v24  ;;  %v1001_v4 = vrot.slane %v994_v61, 5  ;;  %v953_v10 = vmul.f32 %v951_v3, %v3280_v25  ;;  %v961_v28 = vrot.slane %v954_v11, 4 }
 0x1b2   : > { %v839_v48 = vrot.slane %v833_v41, 1 }
 0x1b3   : > { %v959_v23 = vrot.slane %v953_v10, 4 }
 0x1b5   : > { %1169 = vrot.lane.b32.xlu2 %v1166_v36, %s2922_s30  ;;  %1091 = vrot.lane.b32.xlu1 %v1088_v37, %s2922_s30  ;;  %v873_v36 = vmul.f32 %v871_v33, %v3280_v25  ;;  %v881_v37 = vrot.slane %v874_v35, 2  ;;  %v962_v33 = vsel %vm199_vm1, %v959_v23, %v961_v28 }
 0x1b6   : > { %1089 = vrot.lane.b32.xlu0 %v1086_v39, %s2922_s30 }
 0x1b7   : > { %v879_v39 = vrot.slane %v873_v36, 2  ;;  %v1097_v36 = vstv %s2603_s18  ;;  %s3411_s18 = sld [smem:[#allocation5 + $0x46]] }
 0x1b8   : > { %v1099_v41 = vmul.f32 %v1097_v36, %v3280_v25 }
 0x1b9   : > { %v882_v46 = vsel %vm628_vm8, %v879_v39, %v881_v37 }
 0x1bd   : > { %1251 = vrot.lane.b32.xlu2 %v1248_v51, %s2922_s30  ;;  %1129 = vrot.lane.b32.xlu1 %v1126_v52, %s2922_s30  ;;  %v919_v51 = vrot.slane %v913_v63, 3  ;;  %v838_v52 = vrot.slane %v832_v53, 1  ;;  %v1105_v53 = vrot.slane %v1099_v41, 1  ;;  %v588_v41 = vstv %s3369_s24  ;;  %s3477_s24 = sld [smem:[#allocation5 + $0x42]] }
 0x1be   : > { %1171 = vrot.lane.b32.xlu0 %v1168_v56, %s2922_s30  ;;  %v842_v56 = vsel %vm595_vm6, %v839_v48, %v841_v49 }
 0x1bf   : > { %v840_v55 = vsel %vm595_vm6, %v838_v52, %v839_v48  ;;  %v920_v60 = vsel %vm661_vm7, %v918_v54, %v919_v51  ;;  %v922_v8 = vsel %vm661_vm7, %v919_v51, %v921_v2  ;;  %v1140_v51 = vmul.f32 %v1137_v47, %v3282_v26 }
 0x1c0   : > { %v1139_v54 = vmul.f32 %v1137_v47, %v3280_v25 }
 0x1c1   : > { %v1147_v61 = vrot.slane %v1140_v51, 2 }
 0x1c5   : > { %1289 = vrot.lane.b32.xlu2 %v1286_v5, %s2922_s30  ;;  %1211 = vrot.lane.b32.xlu1 %v1208_v6, %s2922_s30  ;;  %v878_v5 = vrot.slane %v872_v62, 2  ;;  %v999_v6 = vrot.slane %v993_v1, 5  ;;  %v1145_v62 = vrot.slane %v1139_v54, 2  ;;  %v583_v54 = vstv %s3394_s28  ;;  %s3720_s28 = sld [smem:[#allocation5 + $0x2d]] }
 0x1c6   : > { %1209 = vrot.lane.b32.xlu0 %v1206_v7, %s2922_s30  ;;  %v1031_v7 = vstv %s2637_s6  ;;  %s3404_s6 = sld [smem:[#allocation5 + $0x3f]]  ;;  %v585_v24 = vmul.f32 %v583_v54, %v3280_v25 }
 0x1c7   : > { %v880_v9 = vsel %vm628_vm8, %v878_v5, %v879_v39  ;;  %v1002_v14 = vsel %vm726_vm9, %v999_v6, %v1001_v4  ;;  %v1033_v15 = vmul.f32 %v1031_v7, %v3280_v25  ;;  %v1032_v22 = vmul.f32 %v1031_v7, %v3121_v50  ;;  %v3353_v39 = vpop.permute.xlu1 %1069 }
 0x1c8   : > { %v1034_v35 = vmul.f32 %v1031_v7, %v3282_v26  ;;  %4266 = vst [vmem:[#allocation16_spill] sm:$0xff] %v3353_v39  ;;  %v1177_v4 = vstv %s2617_s26  ;;  %v1217_v5 = vstv %s2624_s27  ;;  %s3417_s26 = sld [smem:[#allocation5 + $0x5d]] }
 0x1c9   : > { %v1039_v29 = vrot.slane %v1033_v15, 6  ;;  %v1179_v7 = vmul.f32 %v1177_v4, %v3280_v25  ;;  %v1220_v10 = vmul.f32 %v1217_v5, %v3282_v26  ;;  %v1178_v11 = vmul.f32 %v1177_v4, %v3121_v50  ;;  %s3419_s27 = sld [smem:[#allocation5 + $0x3b]] }
 0x1ca   : > { %v1041_v44 = vrot.slane %v1034_v35, 6 }
 0x1cc   : > { %v1042_v48 = vsel %vm759_vm10, %v1039_v29, %v1041_v44  ;;  %v3431_v44 = vstv %s3373_s7  ;;  %s3504_s7 = sld [smem:[#allocation5 + $0x18]] }
 0x1cd   : > { %1357 = vrot.lane.b32.xlu2 %v1354_v18, %s2921_s19  ;;  %1249 = vrot.lane.b32.xlu1 %v1246_v19, %s2922_s30  ;;  %v3337_v18 = vpop.permute.xlu0 %1322  ;;  %v952_v19 = vmul.f32 %v951_v3, %v3121_v50 }
 0x1ce   : > { %1291 = vrot.lane.b32.xlu0 %v1288_v21, %s2922_s30  ;;  %4265 = vst [vmem:[#allocation15_spill] sm:$0xff] %v3337_v18  ;;  %v623_v18 = vmul.f32 %v3431_v44, %v3164_v12 }
 0x1d5   : > { %1395 = vrot.lane.b32.xlu2 %v1392_v30, %s2921_s19  ;;  %1355 = vrot.lane.b32.xlu1 %v1352_v31, %s2921_s19  ;;  %v958_v30 = vrot.slane %v952_v19, 4  ;;  %v1038_v31 = vrot.slane %v1032_v22, 6  ;;  %v3358_v42 = vpop.permute.xlu0 %803  ;;  %v1219_v19 = vmul.f32 %v1217_v5, %v3280_v25 }
 0x1d6   : > { %1337 = vrot.lane.b32.xlu0 %v1332_v32, %s2921_s19 }
 0x1d7   : > { %v960_v32 = vsel %vm199_vm1, %v958_v30, %v959_v23  ;;  %v1040_v37 = vsel %vm759_vm10, %v1038_v31, %v1039_v29  ;;  %v1185_v23 = vrot.slane %v1179_v7, 3  ;;  %v1227_v29 = vrot.slane %v1220_v10, 4 }
 0x1d8   : > { %v1184_v30 = vrot.slane %v1178_v11, 3  ;;  %v1225_v31 = vrot.slane %v1219_v19, 4  ;;  %v1363_v19 = vstv %s3419_s27  ;;  %s2924_s27 = smov 124  }
 0x1dd   : > { %v3306_v45 = vpop.permute.xlu2 %792  ;;  %1071 = vrot.lane.b32.xlu2 %v1066_v38, %s2922_s30  ;;  %805 = vrot.lane.b32.xlu1 %v800_v58, %s2923_s4  ;;  %v1100_v38 = vmul.f32 %v1097_v36, %v3282_v26  ;;  %v992_v58 = vmul.f32 %v991_v59, %v3121_v50  ;;  %v1138_v59 = vmul.f32 %v1137_v47, %v3121_v50  ;;  %v3442_v47 = vstv %s3386_s15  ;;  %s3639_s15 = sld [smem:[#allocation5 + $0x54]] }
 0x1de   : > { %885 = vrot.lane.b32.xlu0 %v882_v46, %s2923_s4 }
 0x1df   : > { %v1107_v46 = vrot.slane %v1100_v38, 1  ;;  %v998_v63 = vrot.slane %v992_v58, 5  ;;  %v1144_v2 = vrot.slane %v1138_v59, 2  ;;  %v1228_v38 = vsel %vm199_vm1, %v1225_v31, %v1227_v29 }
 0x1e0   : > { %v3455_v59 = vstv %s3404_s6  ;;  %s3780_s6 = sld [smem:[#allocation5 + $0x4]] }
 0x1e1   : > { %v1000_v49 = vsel %vm726_vm9, %v998_v63, %v999_v6  ;;  %v1108_v52 = vsel %vm595_vm6, %v1105_v53, %v1107_v46  ;;  %v1148_v6 = vsel %vm628_vm8, %v1145_v62, %v1147_v61  ;;  %v3434_v46 = vstv %s3380_s8  ;;  %s3517_s8 = sld [smem:[#allocation5 + $0x49]] }
 0x1e2   : > { %v1218_v63 = vmul.f32 %v1217_v5, %v3121_v50 }
 0x1e4   : > { %v1224_v7 = vrot.slane %v1218_v63, 4  ;;  %v1364_v63 = vmul.f32 %v1363_v19, %v3121_v50 }
 0x1e5   : > { %843 = vrot.lane.b32.xlu1 %v840_v55, %s2923_s4  ;;  %845 = vrot.lane.b32.xlu2 %v842_v56, %s2923_s4  ;;  %v3324_v0 = vpop.permute.xlu2 %823  ;;  %v1098_v55 = vmul.f32 %v1097_v36, %v3121_v50 }
 0x1e6   : > { %923 = vrot.lane.b32.xlu0 %v920_v60, %s2923_s4 }
 0x1e7   : > { %v1104_v1 = vrot.slane %v1098_v55, 1  ;;  %v605_v55 = vstv %s3400_s17  ;;  %s3724_s17 = sld [smem:[#allocation5 + $0x5e]] }
 0x1e9   : > { %v1106_v3 = vsel %vm595_vm6, %v1104_v1, %v1105_v53  ;;  %v3460_v1 = vmul.f32 %v588_v41, %v3110_v43 }
 0x1ed   : > { %925 = vrot.lane.b32.xlu1 %v922_v8, %s2923_s4  ;;  %883 = vrot.lane.b32.xlu2 %v880_v9, %s2923_s4  ;;  %v1180_v8 = vmul.f32 %v1177_v4, %v3282_v26  ;;  %v1146_v9 = vsel %vm628_vm8, %v1144_v2, %v1145_v62  ;;  %v3463_v2 = vstv %s3411_s18  ;;  %v3466_v4 = vstv %s3415_s23  ;;  %s2556_s18 = sld [smem:[#allocation5 + $0xb]] }
 0x1ee   : > { %1005 = vrot.lane.b32.xlu0 %v1002_v14, %s2923_s4  ;;  %s3793_s23 = sld [smem:[#allocation5 + $0x35]] }
 0x1ef   : > { %v3341_v21 = vpop.permute.xlu2 %905  ;;  %v1187_v28 = vrot.slane %v1180_v8, 3  ;;  %v1297_v8 = vstv %s3417_s26  ;;  %s2605_s26 = sld [smem:[#allocation5 + $0x3c]] }
 0x1f0   : > { %v1299_v29 = vmul.f32 %v1297_v8, %v3280_v25 }
 0x1f1   : > { %v1188_v35 = vsel %vm661_vm7, %v1185_v23, %v1187_v28  ;;  %v1226_v28 = vsel %vm199_vm1, %v1224_v7, %v1225_v31  ;;  %v606_v31 = vmul.f32 %v605_v55, %v3121_v50 }
 0x1f4   : > { %v3375_v56 = vpop.permute.xlu1 %1324  ;;  %v3382_v60 = vpop.permute.xlu0 %1058 }
 0x1f5   : > { %963 = vrot.lane.b32.xlu1 %v960_v32, %s2923_s4  ;;  %965 = vrot.lane.b32.xlu2 %v962_v33, %s2923_s4  ;;  %4267 = vst [vmem:[#allocation17_spill] sm:$0xff] %v3375_v56  ;;  %v1257_v32 = vstv %s2631_s16  ;;  %v1186_v33 = vsel %vm661_vm7, %v1184_v30, %v1185_v23  ;;  %v1300_v30 = vmul.f32 %v1297_v8, %v3282_v26  ;;  %v1370_v56 = vrot.slane %v1364_v63, 1  ;;  %s3671_s16 = sld [smem:[#allocation5 + $0x57]] }
 0x1f6   : > { %1043 = vrot.lane.b32.xlu0 %v1040_v37, %s2923_s4  ;;  %4268 = vst [vmem:[#allocation18_spill] sm:$0xff] %v3382_v60  ;;  %v1260_v36 = vmul.f32 %v1257_v32, %v3282_v26  ;;  %v4255_v37 = vstv %s3363_s5  ;;  %v1259_v58 = vmul.f32 %v1257_v32, %v3280_v25  ;;  %v641_v60 = vmul.f32 %v3455_v59, %v3282_v26 }
 0x1f7   : > { %v3355_v40 = vpop.permute.xlu2 %943 }
 0x1f8   : > { %v1267_v62 = vrot.slane %v1260_v36, 5  ;;  %v1265_v5 = vrot.slane %v1259_v58, 5  ;;  %v3497_v36 = vmul.f32 %v1363_v19, %v3280_v25  ;;  %v590_v58 = vmul.f32 %v588_v41, %v3164_v12 }
 0x1fa   : > { %v1268_v23 = vsel %vm726_vm9, %v1265_v5, %v1267_v62  ;;  %v607_v62 = vmul.f32 %v605_v55, %v3280_v25  ;;  %v597_v34 = vrot.slane %v590_v58, 1 }
 0x1fd   : > { %1045 = vrot.lane.b32.xlu1 %v1042_v48, %s2923_s4  ;;  %1003 = vrot.lane.b32.xlu2 %v1000_v49, %s2923_s4  ;;  %s3384_s4 = sld [smem:[#allocation5 + $0x1c]]  ;;  %v3445_v48 = vstv %s3388_s21 }
 0x1fe   : > { %1111 = vrot.lane.b32.xlu0 %v1108_v52, %s2922_s30  ;;  %v1258_v52 = vmul.f32 %v1257_v32, %v3121_v50  ;;  %v596_v32 = vrot.slane %v3460_v1, 1  ;;  %v591_v1 = vmul.f32 %v588_v41, %v3182_v27  ;;  %v1307_v41 = vrot.slane %v1300_v30, 6  ;;  %s3689_s21 = sld [smem:[#allocation5 + $0x5b]] }
 0x1ff   : > { %v3377_v57 = vpop.permute.xlu2 %1025  ;;  %v1366_v30 = vmul.f32 %v1363_v19, %v3282_v26 }
 0x200   : > { %v1264_v11 = vrot.slane %v1258_v52, 5  ;;  %v3508_v52 = vmul.f32 %v3442_v47, %v3110_v43  ;;  %v599_v39 = vrot.slane %v591_v1, 1  ;;  %v624_v1 = vmul.f32 %v3431_v44, %v3182_v27 }
 0x203   : > { %v3439_v53 = vstv %s3384_s4  ;;  %s3621_s4 = sld [smem:[#allocation5 + $0x50]] }
 0x204   : > { %v3484_v10 = vmul.f32 %v3439_v53, %v3110_v43 }
 0x205   : > { %1151 = vrot.lane.b32.xlu1 %v1148_v6, %s2922_s30  ;;  %1109 = vrot.lane.b32.xlu2 %v1106_v3, %s2922_s30  ;;  %v3470_v6 = vmul.f32 %v3431_v44, %v3110_v43  ;;  %v3474_v3 = vmul.f32 %v3434_v46, %v3110_v43  ;;  %v600_v44 = vsel %vm595_vm6, %v597_v34, %v599_v39 }
 0x206   : > { %1149 = vrot.lane.b32.xlu0 %v1146_v9, %s2922_s30  ;;  %v579_v9 = vmul.f32 %v4255_v37, %v3110_v43  ;;  %v1371_v37 = vrot.slane %v3497_v36, 1  ;;  %v612_v36 = vrot.slane %v606_v31, 1 }
 0x207   : > { %v3406_v14 = vpop.permute.xlu2 %1131  ;;  %v3408_v15 = vpop.permute.xlu1 %865 }
 0x208   : > { %4269 = vst [vmem:[#allocation19_spill] sm:$0xff] %v3406_v14  ;;  %v3413_v22 = vpop.permute.xlu0 %825  ;;  %v1372_v63 = vsel %vm595_vm6, %v1370_v56, %v1371_v37  ;;  %v639_v56 = vmul.f32 %v3455_v59, %v3121_v50 }
 0x20d   : > { %1189 = vrot.lane.b32.xlu1 %v1186_v33, %s2922_s30  ;;  %1191 = vrot.lane.b32.xlu2 %v1188_v35, %s2922_s30  ;;  %v1266_v33 = vsel %vm726_vm9, %v1264_v11, %v1265_v5  ;;  %v1298_v35 = vmul.f32 %v1297_v8, %v3121_v50  ;;  %v608_v5 = vmul.f32 %v605_v55, %v3282_v26 }
 0x20e   : > { %1231 = vrot.lane.b32.xlu0 %v1228_v38, %s2922_s30  ;;  %v584_v11 = vmul.f32 %v583_v54, %v3121_v50 }
 0x20f   : > { %v3447_v49 = vpop.permute.xlu2 %1169  ;;  %v3449_v51 = vpop.permute.xlu1 %903  ;;  %v1304_v38 = vrot.slane %v1298_v35, 6 }
 0x210   : > { %4270 = vst [vmem:[#allocation20_spill] sm:$0xff] %v3447_v49  ;;  %v3457_v61 = vpop.permute.xlu0 %863  ;;  %v613_v49 = vrot.slane %v607_v62, 1  ;;  %v1386_v62 = vmul.f32 %v3264_v17, %v3182_v27 }
 0x212   : > { %v614_v31 = vsel %vm595_vm6, %v612_v36, %v613_v49  ;;  %v1393_v36 = vrot.slane %v1386_v62, 2 }
 0x215   : > { %1271 = vrot.lane.b32.xlu1 %v1268_v23, %s2922_s30  ;;  %1229 = vrot.lane.b32.xlu2 %v1226_v28, %s2922_s30  ;;  %v3522_v23 = vmul.f32 %v3445_v48, %v3110_v43  ;;  %v4272_v43 = vstv %s3363_s5  ;;  %s3615_s5 = sld [smem:[#allocation5 + $0x26]] }
 0x216   : > { %1269 = vrot.lane.b32.xlu0 %v1266_v33, %s2922_s30  ;;  %v1305_v33 = vrot.slane %v1299_v29, 6  ;;  %v580_v14 = vmul.f32 %v4272_v43, %v3164_v12  ;;  %v615_v29 = vrot.slane %v608_v5, 1  ;;  %v1373_v43 = vrot.slane %v1366_v30, 1 }
 0x217   : > { %v3513_v7 = vpop.permute.xlu2 %1251  ;;  %v3515_v8 = vpop.permute.xlu1 %985 }
 0x218   : > { %4271 = vst [vmem:[#allocation21_spill] sm:$0xff] %v3513_v7  ;;  %v3524_v28 = vpop.permute.xlu0 %945  ;;  %v1403_v7 = vstv %s3477_s24  ;;  %v1306_v55 = vsel %vm759_vm10, %v1304_v38, %v1305_v33  ;;  %v1308_v54 = vsel %vm759_vm10, %v1305_v33, %v1307_v41  ;;  %v587_v58 = vadd.f32 %v585_v24, %v580_v14  ;;  %s2612_s24 = sld [smem:[#allocation5 + $0x43]] }
 0x219   : > { %v1406_v35 = vmul.f32 %v1403_v7, %v3282_v26  ;;  %v598_v38 = vsel %vm595_vm6, %v596_v32, %v597_v34  ;;  %v3549_v19 = vmul.f32 %v1403_v7, %v3280_v25  ;;  %v3552_v24 = vstv %s3504_s7  ;;  %s2570_s7 = sld [smem:[#allocation5 + $0x19]] }
 0x21a   : > { %v586_v14 = vadd.f32 %v584_v11, %v579_v9  ;;  %v3562_v32 = vstv %s3517_s8  ;;  %v616_v33 = vsel %vm595_vm6, %v613_v49, %v615_v29  ;;  %v630_v11 = vrot.slane %v623_v18, 2  ;;  %s3845_s8 = sld [smem:[#allocation5 + $0x20]] }
 0x21b   : > { %v1411_v34 = vrot.slane %v3549_v19, 2  ;;  %v1404_v29 = vmul.f32 %v1403_v7, %v3121_v50  ;;  %v1444_v30 = vmul.f32 %v3562_v32, %v3121_v50  ;;  %v656_v18 = vmul.f32 %v3434_v46, %v3164_v12 }
 0x21c   : > { %v603_v9 = vadd.f32 %v598_v38, %v586_v14  ;;  %v3584_v62 = vmul.f32 %v3562_v32, %v3280_v25  ;;  %v4274_v38 = vrot.slane %v3470_v6, 2  ;;  %v4275_v50 = vrot.slane %v3270_v20, 2 }
 0x21d   : > { %1309 = vrot.lane.b32.xlu1 %v1306_v55, %s2922_s30  ;;  %1311 = vrot.lane.b32.xlu2 %v1308_v54, %s2922_s30  ;;  %v1413_v55 = vrot.slane %v1406_v35, 2  ;;  %s3568_s30 = sld [smem:[#allocation5 + $0x1f]]  ;;  %v604_v54 = vadd.f32 %v600_v44, %v587_v58  ;;  %v1374_v35 = vsel %vm595_vm6, %v1371_v37, %v1373_v43  ;;  %v3597_v37 = vmul.f32 %v3552_v24, %v3164_v12  ;;  %v3603_v44 = vld [vmem:[#allocation4 + $0x18] sm:$0xff] }
 0x21e   : > { %1375 = vrot.lane.b32.xlu0 %v1372_v63, %s2921_s19  ;;  %v640_v63 = vmul.f32 %v3455_v59, %v3280_v25  ;;  %v619_v39 = vadd.f32 %v614_v31, %v603_v9  ;;  %v631_v7 = vsel %vm628_vm8, %v4274_v38, %v630_v11  ;;  %v648_v31 = vrot.slane %v641_v60, 2 }
 0x21f   : > { %v3557_v5 = vpop.permute.xlu2 %1289  ;;  %v3559_v17 = vpop.permute.xlu1 %1023  ;;  %v620_v49 = vadd.f32 %v616_v33, %v604_v54  ;;  %v1414_v58 = vsel %vm628_vm8, %v1411_v34, %v1413_v55  ;;  %v657_v6 = vmul.f32 %v3434_v46, %v3182_v27  ;;  %v672_v20 = vmul.f32 %v3603_v44, %v3463_v2  ;;  %v3611_v54 = vld [vmem:[#allocation4] sm:$0xff] }
 0x220   : > { %4273 = vst [vmem:[#allocation22_spill] sm:$0xff] %v3557_v5  ;;  %v3566_v41 = vpop.permute.xlu0 %983  ;;  %v632_v5 = vrot.slane %v624_v1, 2  ;;  %v1394_v1 = vsel %vm628_vm8, %v4275_v50, %v1393_v36  ;;  %v646_v19 = vrot.slane %v640_v63, 2  ;;  %v636_v33 = vadd.f32 %v631_v7, %v619_v39 }
 0x221   : > { %v1424_v60 = vmul.f32 %v3611_v54, %v3552_v24  ;;  %v645_v46 = vrot.slane %v639_v56, 2  ;;  %v1451_v36 = vrot.slane %v3584_v62, 3  ;;  %v663_v39 = vrot.slane %v656_v18, 3 }
 0x222   : > { %v633_v14 = vsel %vm628_vm8, %v630_v11, %v632_v5  ;;  %v1410_v11 = vrot.slane %v1404_v29, 2  ;;  %v649_v7 = vsel %vm628_vm8, %v646_v19, %v648_v31  ;;  %v665_v56 = vrot.slane %v657_v6, 3 }
 0x223   : > { %v637_v43 = vadd.f32 %v633_v14, %v620_v49  ;;  %v1463_v63 = vstv %s3568_s30  ;;  %v673_v49 = vmul.f32 %v3463_v2, %v3280_v25  ;;  %v647_v38 = vsel %vm628_vm8, %v645_v46, %v646_v19  ;;  %s2619_s30 = sld [smem:[#allocation5 + $0x4a]] }
 0x224   : > { %v674_v29 = vmul.f32 %v3463_v2, %v3282_v26  ;;  %v652_v50 = vadd.f32 %v647_v38, %v636_v33  ;;  %v1430_v18 = vrot.slane %v1424_v60, 3  ;;  %v1412_v59 = vsel %vm628_vm8, %v1410_v11, %v1411_v34 }
 0x225   : > { %1377 = vrot.lane.b32.xlu1 %v1374_v35, %s2921_s19  ;;  %1417 = vrot.lane.b32.xlu2 %v1414_v58, %s2921_s19  ;;  %v1431_v35 = vrot.slane %v3597_v37, 3  ;;  %v1450_v58 = vrot.slane %v1444_v30, 3  ;;  %v653_v14 = vadd.f32 %v649_v7, %v637_v43  ;;  %v1426_v37 = vmul.f32 %v3552_v24, %v3182_v27 }
 0x226   : > { %1397 = vrot.lane.b32.xlu0 %v1394_v1, %s2921_s19  ;;  %v689_v1 = vmul.f32 %v3439_v53, %v3164_v12  ;;  %v1466_v19 = vmul.f32 %v1463_v63, %v3182_v27  ;;  %v4276_v2 = vrot.slane %v3474_v3, 3  ;;  %v679_v6 = vrot.slane %v673_v49, 3 }
 0x227   : > { %v3607_v55 = vpop.permute.xlu2 %1357  ;;  %v3609_v9 = vpop.permute.xlu1 %1091  ;;  %v1452_v30 = vsel %vm661_vm7, %v1450_v58, %v1451_v36  ;;  %v1432_v34 = vsel %vm661_vm7, %v1430_v18, %v1431_v35  ;;  %v1446_v33 = vmul.f32 %v3562_v32, %v3282_v26  ;;  %v666_v24 = vsel %vm661_vm7, %v663_v39, %v665_v56 }
 0x228   : > { %v3617_v5 = vpop.permute.xlu0 %1089  ;;  %v664_v31 = vsel %vm661_vm7, %v4276_v2, %v663_v39  ;;  %v681_v43 = vrot.slane %v674_v29, 3  ;;  %v690_v3 = vmul.f32 %v3439_v53, %v3182_v27  ;;  %v3654_v60 = vmul.f32 %v1463_v63, %v3164_v12 }
 0x229   : > { %v704_v46 = vmul.f32 %v3603_v44, %v3466_v4  ;;  %v669_v11 = vadd.f32 %v664_v31, %v652_v50  ;;  %v670_v49 = vadd.f32 %v666_v24, %v653_v14  ;;  %v1433_v38 = vrot.slane %v1426_v37, 3 }
 0x22a   : > { %v1473_v7 = vrot.slane %v1466_v19, 4  ;;  %v1483_v27 = vstv %s3621_s4  ;;  %v3666_v53 = vstv %s3615_s5  ;;  %v695_v56 = vrot.slane %v689_v1, 4  ;;  %s2626_s5 = sld [smem:[#allocation5 + $0x51]] }
 0x22b   : > { %v1453_v29 = vrot.slane %v1446_v33, 3  ;;  %v682_v50 = vsel %vm661_vm7, %v679_v6, %v681_v43  ;;  %v697_v14 = vrot.slane %v690_v3, 4  ;;  %v706_v18 = vmul.f32 %v3466_v4, %v3282_v26  ;;  %s2584_s4 = sld [smem:[#allocation5 + $0x27]] }
 0x22c   : > { %v686_v19 = vadd.f32 %v682_v50, %v670_v49  ;;  %v1464_v2 = vmul.f32 %v3611_v54, %v1463_v63  ;;  %v1504_v1 = vmul.f32 %v3611_v54, %v3666_v53  ;;  %v1434_v31 = vsel %vm661_vm7, %v1431_v35, %v1433_v38 }
 0x22d   : > { %1415 = vrot.lane.b32.xlu1 %v1412_v59, %s2921_s19  ;;  %1455 = vrot.lane.b32.xlu2 %v1452_v30, %s2921_s19  ;;  %v678_v59 = vrot.slane %v672_v20, 3  ;;  %v705_v20 = vmul.f32 %v3466_v4, %v3280_v25  ;;  %v1471_v30 = vrot.slane %v3654_v60, 4  ;;  %v1484_v33 = vmul.f32 %v3603_v44, %v1483_v27 }
 0x22e   : > { %1435 = vrot.lane.b32.xlu0 %v1432_v34, %s2921_s19  ;;  %v736_v24 = vstv %s3639_s15  ;;  %v4278_v63 = vrot.slane %v3484_v10, 4  ;;  %v1454_v35 = vsel %vm661_vm7, %v1451_v36, %v1453_v29  ;;  %v3701_v3 = vmul.f32 %v1483_v27, %v3280_v25  ;;  %v3708_v36 = vld [vmem:[#allocation4 + $0x10] sm:$0x3f]  ;;  %s2633_s15 = sld [smem:[#allocation5 + $0x58]] }
 0x22f   : > { %v3658_v58 = vpop.permute.xlu2 %1395  ;;  %v3660_v32 = vpop.permute.xlu1 %1129  ;;  %v680_v12 = vsel %vm661_vm7, %v678_v59, %v679_v6  ;;  %v1474_v34 = vsel %vm199_vm1, %v1471_v30, %v1473_v7  ;;  %v3683_v6 = vld [vmem:[#allocation4 + $0x8] sm:$0xff]  ;;  %v711_v60 = vrot.slane %v705_v20, 4  ;;  %v713_v10 = vrot.slane %v706_v18, 4 }
 0x230   : > { %4277 = vst [vmem:[#allocation23_spill] sm:$0xff] %v3658_v58  ;;  %v3662_v39 = vpop.permute.xlu0 %1171  ;;  %v685_v37 = vadd.f32 %v680_v12, %v669_v11  ;;  %v3687_v4 = vmul.f32 %v3683_v6, %v3666_v53  ;;  %v696_v43 = vsel %vm199_vm1, %v4278_v63, %v695_v56  ;;  %v721_v59 = vmul.f32 %v3683_v6, %v3442_v47 }
 0x231   : > { %v698_v11 = vsel %vm199_vm1, %v695_v56, %v697_v14  ;;  %v727_v49 = vrot.slane %v3508_v52, 5  ;;  %v722_v7 = vmul.f32 %v3708_v36, %v3442_v47  ;;  %v710_v29 = vrot.slane %v704_v46, 4 }
 0x232   : > { %v701_v62 = vadd.f32 %v696_v43, %v685_v37  ;;  %v702_v38 = vadd.f32 %v698_v11, %v686_v19  ;;  %v737_v56 = vmul.f32 %v3603_v44, %v736_v24  ;;  %v1470_v14 = vrot.slane %v1464_v2, 4 }
 0x233   : > { %v1511_v52 = vrot.slane %v3687_v4, 5  ;;  %v1490_v18 = vrot.slane %v1484_v33, 4  ;;  %v1491_v37 = vrot.slane %v3701_v3, 4  ;;  %v1510_v19 = vrot.slane %v1504_v1, 5 }
 0x234   : > { %v1523_v47 = vstv %s3671_s16  ;;  %v728_v46 = vrot.slane %v721_v59, 5  ;;  %v714_v63 = vsel %vm199_vm1, %v711_v60, %v713_v10  ;;  %v730_v4 = vrot.slane %v722_v7, 5  ;;  %s2591_s16 = sld [smem:[#allocation5 + $0x2e]] }
 0x235   : > { %1437 = vrot.lane.b32.xlu1 %v1434_v31, %s2921_s19  ;;  %1477 = vrot.lane.b32.xlu2 %v1474_v34, %s2921_s19  ;;  %v712_v31 = vsel %vm199_vm1, %v710_v29, %v711_v60  ;;  %v738_v34 = vmul.f32 %v736_v24, %v3280_v25  ;;  %v718_v43 = vadd.f32 %v714_v63, %v702_v38  ;;  %v760_v29 = vrot.slane %v3522_v23, 6 }
 0x236   : > { %1457 = vrot.lane.b32.xlu0 %v1454_v35, %s2921_s19  ;;  %v717_v2 = vadd.f32 %v712_v31, %v701_v62  ;;  %v739_v35 = vmul.f32 %v736_v24, %v3282_v26  ;;  %v1472_v33 = vsel %vm199_vm1, %v1470_v14, %v1471_v30  ;;  %v1512_v1 = vsel %vm726_vm9, %v1510_v19, %v1511_v52 }
 0x237   : > { %v3712_v12 = vpop.permute.xlu1 %1211  ;;  %v3714_v20 = vpop.permute.xlu2 %1071  ;;  %v1486_v3 = vmul.f32 %v1483_v27, %v3282_v26  ;;  %v1526_v11 = vmul.f32 %v1523_v47, %v3282_v26  ;;  %v769_v59 = vstv %s3689_s21  ;;  %v1492_v60 = vsel %vm199_vm1, %v1490_v18, %v1491_v37  ;;  %s2640_s21 = sld [smem:[#allocation5 + $0x5f]] }
 0x238   : > { %v3717_v50 = vpop.permute.xlu0 %1209  ;;  %v1506_v24 = vmul.f32 %v3708_v36, %v3666_v53  ;;  %v729_v30 = vsel %vm726_vm9, %v727_v49, %v728_v46  ;;  %v744_v10 = vrot.slane %v738_v34, 5  ;;  %v754_v27 = vmul.f32 %v3683_v6, %v3445_v48 }
 0x239   : > { %v1525_v23 = vmul.f32 %v1523_v47, %v3280_v25  ;;  %v734_v62 = vadd.f32 %v729_v30, %v717_v2  ;;  %v731_v38 = vsel %vm726_vm9, %v728_v46, %v730_v4  ;;  %v746_v7 = vrot.slane %v739_v35, 5 }
 0x23a   : > { %v755_v14 = vmul.f32 %v3708_v36, %v3445_v48  ;;  %v743_v18 = vrot.slane %v737_v56, 5  ;;  %v735_v19 = vadd.f32 %v731_v38, %v718_v43  ;;  %v1493_v34 = vrot.slane %v1486_v3, 4 }
 0x23b   : > { %v1533_v63 = vrot.slane %v1526_v11, 5  ;;  %v1543_v2 = vstv %s3720_s28  ;;  %v761_v4 = vrot.slane %v754_v27, 6  ;;  %v771_v48 = vmul.f32 %v769_v59, %v3280_v25  ;;  %s3937_s28 = sld [smem:[#allocation5 + $0x5]] }
 0x23c   : > { %v745_v46 = vsel %vm726_vm9, %v743_v18, %v744_v10  ;;  %v1531_v35 = vrot.slane %v1525_v23, 5  ;;  %v747_v58 = vsel %vm726_vm9, %v744_v10, %v746_v7  ;;  %v763_v56 = vrot.slane %v755_v14, 6 }
 0x23d   : > { %1475 = vrot.lane.b32.xlu1 %v1472_v33, %s2921_s19  ;;  %1515 = vrot.lane.b32.xlu2 %v1512_v1, %s2921_s19  ;;  %v770_v33 = vmul.f32 %v3603_v44, %v769_v59  ;;  %v1513_v1 = vrot.slane %v1506_v24, 5  ;;  %v750_v30 = vadd.f32 %v745_v46, %v734_v62  ;;  %v772_v43 = vmul.f32 %v769_v59, %v3282_v26 }
 0x23e   : > { %1495 = vrot.lane.b32.xlu0 %v1492_v60, %s2921_s19  ;;  %v1563_v60 = vstv %s3724_s17  ;;  %v751_v38 = vadd.f32 %v747_v58, %v735_v19  ;;  %v1494_v3 = vsel %vm199_vm1, %v1491_v37, %v1493_v34  ;;  %v1534_v11 = vsel %vm726_vm9, %v1531_v35, %v1533_v63  ;;  %s2557_s17 = sld [smem:[#allocation5 + $0xc]] }
 0x23f   : > { %v3749_v53 = vpop.permute.xlu1 %1249  ;;  %v3751_v49 = vpop.permute.xlu2 %845  ;;  %v1565_v24 = vmul.f32 %v1563_v60, %v3280_v25  ;;  %v1514_v27 = vsel %vm726_vm9, %v1511_v52, %v1513_v1  ;;  %v1545_v23 = vmul.f32 %v3683_v6, %v1543_v2  ;;  %v762_v10 = vsel %vm759_vm10, %v760_v29, %v761_v4 }
 0x240   : > { %v3753_v31 = vpop.permute.xlu0 %1291  ;;  %v777_v62 = vrot.slane %v771_v48, 6  ;;  %v1524_v58 = vmul.f32 %v3603_v44, %v1523_v47  ;;  %v1564_v37 = vmul.f32 %v3603_v44, %v1563_v60  ;;  %v767_v59 = vadd.f32 %v762_v10, %v750_v30 }
 0x241   : > { %v764_v25 = vsel %vm759_vm10, %v761_v4, %v763_v56  ;;  %v779_v7 = vrot.slane %v772_v43, 6  ;;  %v1544_v18 = vmul.f32 %v3611_v54, %v1543_v2  ;;  %v776_v19 = vrot.slane %v770_v33, 6 }
 0x242   : > { %v768_v34 = vadd.f32 %v764_v25, %v751_v38  ;;  %v1571_v29 = vrot.slane %v1565_v24, 6  ;;  %v1551_v1 = vrot.slane %v1545_v23, 6  ;;  %v1530_v47 = vrot.slane %v1524_v58, 5 }
 0x243   : > { %v778_v46 = vsel %vm759_vm10, %v776_v19, %v777_v62  ;;  %v1570_v48 = vrot.slane %v1564_v37, 6  ;;  %v780_v4 = vsel %vm759_vm10, %v777_v62, %v779_v7  ;;  %v1550_v56 = vrot.slane %v1544_v18, 6 }
 0x244   : > { %v783_v30 = vadd.f32 %v778_v46, %v767_v59  ;;  %v784_v43 = vadd.f32 %v780_v4, %v768_v34  ;;  %v1546_v38 = vmul.f32 %v3708_v36, %v1543_v2  ;;  %v1566_v24 = vmul.f32 %v1563_v60, %v3282_v26 }
 0x245   : > { %1497 = vrot.lane.b32.xlu1 %v1494_v3, %s2921_s19  ;;  %1537 = vrot.lane.b32.xlu2 %v1534_v11, %s2921_s19  ;;  %v1532_v3 = vsel %vm726_vm9, %v1530_v47, %v1531_v35  ;;  %v1572_v33 = vsel %vm759_vm10, %v1570_v48, %v1571_v29  ;;  %v1552_v11 = vsel %vm759_vm10, %v1550_v56, %v1551_v1  ;;  %v1583_v25 = vstv %s3780_s6  ;;  %s3955_s6 = sld [smem:[#allocation5 + $0x36]] }
 0x246   : > { %1517 = vrot.lane.b32.xlu0 %v1514_v27, %s2921_s19  ;;  %v797_v27 = vadd.f32 %v3306_v45, %v784_v43  ;;  %v796_v35 = vadd.f32 %v3331_v13, %v783_v30  ;;  %v1553_v2 = vrot.slane %v1546_v38, 6  ;;  %v1573_v37 = vrot.slane %v1566_v24, 6 }
 0x247   : > { %v3774_v14 = vpop.permute.xlu1 %1355  ;;  %v884_v52 = vpop.permute.xlu2 %883  ;;  %v1585_v7 = vmul.f32 %v3683_v6, %v1583_v25  ;;  %v1609_v60 = vstv %s2556_s18  ;;  %v1596_v56 = vstv %s3793_s23  ;;  %s2606_s18 = sld [smem:[#allocation5 + $0x3d]]  ;;  %s2925_s23 = smov 123  }
 0x248   : > { %v3777_v63 = vpop.permute.xlu0 %1337  ;;  %v809_v45 = vadd.f32 %v3358_v42, %v796_v35  ;;  %v1554_v19 = vsel %vm759_vm10, %v1551_v1, %v1553_v2  ;;  %v1611_v13 = vmul.f32 %v3683_v6, %v1609_v60  ;;  %v1574_v34 = vsel %vm759_vm10, %v1571_v29, %v1573_v37 }
 0x249   : > { %v1610_v42 = vmul.f32 %v3611_v54, %v1609_v60  ;;  %v1612_v24 = vmul.f32 %v3708_v36, %v1609_v60 }
 0x24a   : > { %v1617_v4 = vrot.slane %v1611_v13, 1 }
 0x24b   : > { %v1616_v43 = vrot.slane %v1610_v42, 1 }
 0x24d   : > { %1535 = vrot.lane.b32.xlu1 %v1532_v3, %s2921_s19  ;;  %1575 = vrot.lane.b32.xlu2 %v1572_v33, %s2921_s19  ;;  %v1584_v3 = vmul.f32 %v3611_v54, %v1583_v25  ;;  %v1597_v33 = vmul.f32 %v3603_v44, %v1596_v56  ;;  %v1618_v38 = vsel %vm595_vm6, %v1616_v43, %v1617_v4 }
 0x24e   : > { %1555 = vrot.lane.b32.xlu0 %v1552_v11, %s2921_s19 }
 0x24f   : > { %v806_v23 = vpop.permute.xlu1 %805  ;;  %v966_v10 = vpop.permute.xlu2 %965 }
 0x250   : > { %v810_v62 = vadd.f32 %v806_v23, %v797_v27  ;;  %v886_v58 = vpop.permute.xlu0 %885 }
 0x252   : > { %v830_v59 = vadd.f32 %v3413_v22, %v810_v62  ;;  %v829_v22 = vadd.f32 %v3324_v0, %v809_v45  ;;  %v1629_v0 = vstv %s2605_s26  ;;  %s2564_s26 = sld [smem:[#allocation5 + $0x13]] }
 0x253   : > { %v1632_v11 = vmul.f32 %v1629_v0, %v3282_v26 }
 0x254   : > { %v850_v18 = vadd.f32 %v3751_v49, %v830_v59  ;;  %v1619_v59 = vrot.slane %v1612_v24, 1 }
 0x255   : > { %1557 = vrot.lane.b32.xlu1 %v1554_v19, %s2921_s19  ;;  %1590 = vrot.lane.b32.xlu2 %v1585_v7, %s2924_s27  ;;  %v1639_v37 = vrot.slane %v1632_v11, 1 }
 0x256   : > { %v870_v46 = vadd.f32 %v3408_v15, %v850_v18  ;;  %1577 = vrot.lane.b32.xlu0 %v1574_v34, %s2921_s19  ;;  %s2563_s19 = sld [smem:[#allocation5 + $0x12]]  ;;  %v1620_v13 = vsel %vm595_vm6, %v1617_v4, %v1619_v59 }
 0x257   : > { %v844_v49 = vpop.permute.xlu1 %843  ;;  %v3809_v1 = vpop.permute.xlu2 %1003 }
 0x258   : > { %v890_v47 = vadd.f32 %v886_v58, %v870_v46  ;;  %v849_v48 = vadd.f32 %v844_v49, %v829_v22  ;;  %v924_v30 = vpop.permute.xlu0 %923 }
 0x25a   : > { %v869_v29 = vadd.f32 %v3457_v61, %v849_v48  ;;  %v910_v61 = vadd.f32 %v3341_v21, %v890_v47 }
 0x25c   : > { %v889_v15 = vadd.f32 %v884_v52, %v869_v29  ;;  %v3823_v52 = vld [vmem:[#allocation4 + $0x20] sm:$0xff]  ;;  %v1649_v18 = vstv %s2563_s19  ;;  %s2620_s19 = sld [smem:[#allocation5 + $0x4b]] }
 0x25d   : > { %1588 = vrot.lane.b32.xlu1 %v1584_v3, %s2924_s27  ;;  %1621 = vrot.lane.b32.xlu2 %v1618_v38, %s2924_s27  ;;  %v1631_v23 = vmul.f32 %v3823_v52, %v1629_v0  ;;  %v1598_v21 = vmul.f32 %v3823_v52, %v1596_v56  ;;  %v1651_v34 = vmul.f32 %v3683_v6, %v1649_v18 }
 0x25e   : > { %v909_v27 = vadd.f32 %v3449_v51, %v889_v15  ;;  %1601 = vrot.lane.b32.xlu0 %v1597_v33, %s2924_s27  ;;  %v1669_v51 = vstv %s2612_s24  ;;  %v1650_v47 = vmul.f32 %v3611_v54, %v1649_v18  ;;  %v1689_v15 = vstv %s2570_s7  ;;  %s2613_s24 = sld [smem:[#allocation5 + $0x44]] }
 0x25f   : > { %v926_v35 = vpop.permute.xlu1 %925  ;;  %v3826_v62 = vpop.permute.xlu2 %1109  ;;  %v1637_v7 = vrot.slane %v1631_v23, 1  ;;  %v1671_v19 = vmul.f32 %v3823_v52, %v1669_v51  ;;  %v1670_v46 = vmul.f32 %v3603_v44, %v1669_v51  ;;  %v1657_v29 = vrot.slane %v1651_v34, 2  ;;  %s2578_s7 = sld [smem:[#allocation5 + $0x21]] }
 0x260   : > { %v929_v26 = vadd.f32 %v924_v30, %v909_v27  ;;  %v930_v58 = vadd.f32 %v926_v35, %v910_v61  ;;  %v1006_v2 = vpop.permute.xlu0 %1005  ;;  %v1656_v3 = vrot.slane %v1650_v47, 2  ;;  %v1692_v24 = vmul.f32 %v3708_v36, %v1689_v15  ;;  %v3855_v61 = vld [vmem:[#allocation4 + $0x28] sm:$0x3f] }
 0x261   : > { %v1640_v45 = vsel %vm595_vm6, %v1637_v7, %v1639_v37  ;;  %v1677_v56 = vrot.slane %v1671_v19, 2  ;;  %v1672_v27 = vmul.f32 %v3855_v61, %v1669_v51  ;;  %v1691_v35 = vmul.f32 %v3683_v6, %v1689_v15 }
 0x262   : > { %v950_v25 = vadd.f32 %v3524_v28, %v930_v58  ;;  %v949_v28 = vadd.f32 %v3355_v40, %v929_v26  ;;  %v1729_v19 = vstv %s3845_s8  ;;  %s2627_s8 = sld [smem:[#allocation5 + $0x52]] }
 0x264   : > { %v970_v60 = vadd.f32 %v966_v10, %v950_v25  ;;  %v1630_v10 = vmul.f32 %v3603_v44, %v1629_v0  ;;  %v1652_v0 = vmul.f32 %v3708_v36, %v1649_v18  ;;  %v1709_v18 = vstv %s2619_s30  ;;  %s2585_s30 = sld [smem:[#allocation5 + $0x28]] }
 0x265   : > { %1603 = vrot.lane.b32.xlu1 %v1598_v21, %s2924_s27  ;;  %1643 = vrot.lane.b32.xlu2 %v1640_v45, %s2924_s27  ;;  %v1679_v21 = vrot.slane %v1672_v27, 2  ;;  %v1697_v45 = vrot.slane %v1691_v35, 3  ;;  %v1732_v35 = vmul.f32 %v3708_v36, %v1729_v19 }
 0x266   : > { %v990_v22 = vadd.f32 %v3515_v8, %v970_v60  ;;  %1623 = vrot.lane.b32.xlu0 %v1620_v13, %s2924_s27  ;;  %v1636_v43 = vrot.slane %v1630_v10, 1  ;;  %v1676_v8 = vrot.slane %v1670_v46, 2  ;;  %v4279_v60 = vld [vmem:[#allocation18_spill] sm:$0xff]  ;;  %v4280_v13 = vld [vmem:[#allocation16_spill] sm:$0xff]  ;;  %v1731_v10 = vmul.f32 %v3683_v6, %v1729_v19 }
 0x267   : > { %v964_v42 = vpop.permute.xlu1 %963  ;;  %v3841_v49 = vpop.permute.xlu2 %1191  ;;  %v1690_v46 = vmul.f32 %v3611_v54, %v1689_v15  ;;  %v4281_v15 = vld [vmem:[#allocation19_spill] sm:$0xff] }
 0x268   : > { %v1010_v48 = vadd.f32 %v1006_v2, %v990_v22  ;;  %v969_v30 = vadd.f32 %v964_v42, %v949_v28  ;;  %v1044_v4 = vpop.permute.xlu0 %1043  ;;  %v1638_v38 = vsel %vm595_vm6, %v1636_v43, %v1637_v7  ;;  %v1678_v11 = vsel %vm628_vm8, %v1676_v8, %v1677_v56 }
 0x269   : > { %v1659_v2 = vrot.slane %v1652_v0, 2  ;;  %v1699_v7 = vrot.slane %v1692_v24, 3  ;;  %v1711_v42 = vmul.f32 %v3823_v52, %v1709_v18  ;;  %v1737_v8 = vrot.slane %v1731_v10, 4 }
 0x26a   : > { %v989_v40 = vadd.f32 %v3566_v41, %v969_v30  ;;  %v1658_v41 = vsel %vm628_vm8, %v1656_v3, %v1657_v29  ;;  %v1030_v23 = vadd.f32 %v3377_v57, %v1010_v48  ;;  %v1696_v3 = vrot.slane %v1690_v46, 3 }
 0x26b   : > { %v1700_v22 = vsel %vm661_vm7, %v1697_v45, %v1699_v7  ;;  %v1717_v0 = vrot.slane %v1711_v42, 3  ;;  %v1712_v24 = vmul.f32 %v3855_v61, %v1709_v18 }
 0x26c   : > { %v1009_v33 = vadd.f32 %v3809_v1, %v989_v40 }
 0x26d   : > { %1641 = vrot.lane.b32.xlu1 %v1638_v38, %s2924_s27  ;;  %1681 = vrot.lane.b32.xlu2 %v1678_v11, %s2924_s27  ;;  %v1698_v38 = vsel %vm661_vm7, %v1696_v3, %v1697_v45 }
 0x26e   : > { %v1029_v1 = vadd.f32 %v3559_v17, %v1009_v33  ;;  %1661 = vrot.lane.b32.xlu0 %v1658_v41, %s2924_s27  ;;  %v1660_v17 = vsel %vm628_vm8, %v1657_v29, %v1659_v2  ;;  %v1710_v29 = vmul.f32 %v3603_v44, %v1709_v18  ;;  %v1749_v41 = vstv %s2626_s5  ;;  %v4282_v2 = vld [vmem:[#allocation20_spill] sm:$0xff]  ;;  %s2592_s5 = sld [smem:[#allocation5 + $0x2f]] }
 0x26f   : > { %v1046_v26 = vpop.permute.xlu1 %1045  ;;  %v3862_v58 = vpop.permute.xlu2 %1229 }
 0x270   : > { %v1049_v37 = vadd.f32 %v1044_v4, %v1029_v1  ;;  %v1050_v59 = vadd.f32 %v1046_v26, %v1030_v23  ;;  %v1112_v25 = vpop.permute.xlu0 %1111  ;;  %v1716_v11 = vrot.slane %v1710_v29, 3  ;;  %v1752_v1 = vmul.f32 %v3855_v61, %v1749_v41 }
 0x272   : > { %v1062_v51 = vadd.f32 %v3262_v16, %v1049_v37  ;;  %v1063_v57 = vadd.f32 %v4279_v60, %v1050_v59  ;;  %v1680_v16 = vsel %vm628_vm8, %v1677_v56, %v1679_v21  ;;  %v1751_v59 = vmul.f32 %v3823_v52, %v1749_v41 }
 0x273   : > { %v1719_v21 = vrot.slane %v1712_v24, 3  ;;  %v1759_v45 = vrot.slane %v1752_v1, 4  ;;  %v4285_v1 = vld [vmem:[#allocation22_spill] sm:$0xff] }
 0x274   : > { %v1075_v34 = vadd.f32 %v4280_v13, %v1062_v51  ;;  %v1076_v28 = vadd.f32 %v3714_v20, %v1063_v57  ;;  %v1730_v20 = vmul.f32 %v3611_v54, %v1729_v19  ;;  %v1757_v19 = vrot.slane %v1751_v59, 4 }
 0x275   : > { %1663 = vrot.lane.b32.xlu1 %v1660_v17, %s2924_s27  ;;  %1703 = vrot.lane.b32.xlu2 %v1700_v22, %s2924_s27  ;;  %v1739_v17 = vrot.slane %v1732_v35, 4  ;;  %v1720_v13 = vsel %vm661_vm7, %v1717_v0, %v1719_v21 }
 0x276   : > { %v1095_v47 = vadd.f32 %v3617_v5, %v1075_v34  ;;  %v1096_v48 = vadd.f32 %v3609_v9, %v1076_v28  ;;  %1683 = vrot.lane.b32.xlu0 %v1680_v16, %s2924_s27  ;;  %v1736_v33 = vrot.slane %v1730_v20, 4  ;;  %v1769_v34 = vstv %s2584_s4  ;;  %s2634_s4 = sld [smem:[#allocation5 + $0x59]] }
 0x277   : > { %v1152_v30 = vpop.permute.xlu1 %1151  ;;  %v3881_v4 = vpop.permute.xlu2 %1311  ;;  %v1789_v28 = vstv %s2633_s15  ;;  %v1760_v16 = vsel %vm199_vm1, %v1757_v19, %v1759_v45  ;;  %v1740_v46 = vsel %vm199_vm1, %v1737_v8, %v1739_v17  ;;  %v1770_v29 = vmul.f32 %v3611_v54, %v1769_v34  ;;  %v4287_v17 = vld [vmem:[#allocation14_spill] sm:$0xff]  ;;  %s2641_s15 = sld [smem:[#allocation5 + $0x60]] }
 0x278   : > { %v1115_v56 = vadd.f32 %v3826_v62, %v1095_v47  ;;  %v1116_v40 = vadd.f32 %v1112_v25, %v1096_v48  ;;  %v1150_v43 = vpop.permute.xlu0 %1149  ;;  %v1738_v23 = vsel %vm199_vm1, %v1736_v33, %v1737_v8  ;;  %v4283_v47 = vld [vmem:[#allocation21_spill] sm:$0xff]  ;;  %v1809_v33 = vstv %s2591_s16  ;;  %s4084_s16 = sld [smem:[#allocation5 + $0x37]] }
 0x279   : > { %v1772_v24 = vmul.f32 %v3708_v36, %v1769_v34 }
 0x27a   : > { %v1135_v5 = vadd.f32 %v3660_v32, %v1115_v56  ;;  %v1136_v9 = vadd.f32 %v4281_v15, %v1116_v40  ;;  %v1718_v32 = vsel %vm661_vm7, %v1716_v11, %v1717_v0 }
 0x27c   : > { %v1156_v27 = vadd.f32 %v1152_v30, %v1136_v9  ;;  %v1155_v62 = vadd.f32 %v1150_v43, %v1135_v5  ;;  %v1776_v9 = vrot.slane %v1770_v29, 5 }
 0x27d   : > { %1701 = vrot.lane.b32.xlu1 %v1698_v38, %s2924_s27  ;;  %1741 = vrot.lane.b32.xlu2 %v1738_v23, %s2924_s27 }
 0x27e   : > { %v1176_v26 = vadd.f32 %v3662_v39, %v1156_v27  ;;  %v1175_v37 = vadd.f32 %v4282_v2, %v1155_v62  ;;  %1721 = vrot.lane.b32.xlu0 %v1718_v32, %s2924_s27  ;;  %v4284_v62 = vld [vmem:[#allocation17_spill] sm:$0xff] }
 0x27f   : > { %v1190_v25 = vpop.permute.xlu1 %1189  ;;  %v3899_v7 = vpop.permute.xlu2 %1417 }
 0x280   : > { %v1196_v51 = vadd.f32 %v3841_v49, %v1176_v26  ;;  %v1195_v60 = vadd.f32 %v1190_v25, %v1175_v37  ;;  %v1232_v57 = vpop.permute.xlu0 %1231  ;;  %v1791_v49 = vmul.f32 %v3823_v52, %v1789_v28  ;;  %v1779_v25 = vrot.slane %v1772_v24, 5 }
 0x281   : > { %v1895_v24 = vstv %s2606_s18  ;;  %s2926_s18 = smov 122  }
 0x282   : > { %v1216_v18 = vadd.f32 %v3712_v12, %v1196_v51  ;;  %v1215_v39 = vadd.f32 %v3717_v50, %v1195_v60  ;;  %v1750_v12 = vmul.f32 %v3603_v44, %v1749_v41  ;;  %v1771_v50 = vmul.f32 %v3683_v6, %v1769_v34  ;;  %v4286_v60 = vld [vmem:[#allocation15_spill] sm:$0xff] }
 0x283   : > { %v1797_v43 = vrot.slane %v1791_v49, 5  ;;  %v1812_v41 = vmul.f32 %v3708_v36, %v1809_v33 }
 0x284   : > { %v1235_v22 = vadd.f32 %v3862_v58, %v1215_v39  ;;  %v1236_v10 = vadd.f32 %v1232_v57, %v1216_v18  ;;  %v1790_v58 = vmul.f32 %v3603_v44, %v1789_v28  ;;  %v1756_v3 = vrot.slane %v1750_v12, 4 }
 0x285   : > { %1723 = vrot.lane.b32.xlu1 %v1720_v13, %s2924_s27  ;;  %1763 = vrot.lane.b32.xlu2 %v1760_v16, %s2924_s27  ;;  %v1777_v0 = vrot.slane %v1771_v50, 5  ;;  %v1819_v21 = vrot.slane %v1812_v41, 6  ;;  %v1829_v13 = vstv %s2640_s21  ;;  %s4086_s21 = sld [smem:[#allocation5 + $0x6]] }
 0x286   : > { %v1255_v42 = vadd.f32 %v3749_v53, %v1235_v22  ;;  %v1256_v48 = vadd.f32 %v4283_v47, %v1236_v10  ;;  %1743 = vrot.lane.b32.xlu0 %v1740_v46, %s2924_s27  ;;  %v1796_v53 = vrot.slane %v1790_v58, 5  ;;  %v1758_v15 = vsel %vm199_vm1, %v1756_v3, %v1757_v19 }
 0x287   : > { %v1272_v20 = vpop.permute.xlu1 %1271  ;;  %v3917_v30 = vpop.permute.xlu2 %1455  ;;  %v1778_v27 = vsel %vm726_vm9, %v1776_v9, %v1777_v0  ;;  %v1780_v39 = vsel %vm726_vm9, %v1777_v0, %v1779_v25  ;;  %v1831_v34 = vmul.f32 %v3823_v52, %v1829_v13  ;;  %v1810_v10 = vmul.f32 %v3611_v54, %v1809_v33 }
 0x288   : > { %v1276_v56 = vadd.f32 %v1272_v20, %v1256_v48  ;;  %v1270_v40 = vpop.permute.xlu0 %1269  ;;  %v1798_v11 = vsel %vm726_vm9, %v1796_v53, %v1797_v43  ;;  %v1830_v46 = vmul.f32 %v3603_v44, %v1829_v13  ;;  %v1849_v47 = vstv %s3937_s28  ;;  %s2558_s28 = sld [smem:[#allocation5 + $0xd]] }
 0x289   : > { %v1275_v8 = vadd.f32 %v1270_v40, %v1255_v42  ;;  %v1837_v48 = vrot.slane %v1831_v34, 6  ;;  %v1816_v20 = vrot.slane %v1810_v10, 6  ;;  %v1832_v40 = vmul.f32 %v3855_v61, %v1829_v13 }
 0x28a   : > { %v1296_v5 = vadd.f32 %v3753_v31, %v1276_v56  ;;  %v1792_v31 = vmul.f32 %v3855_v61, %v1789_v28  ;;  %v1898_v13 = vmul.f32 %v3855_v61, %v1895_v24 }
 0x28b   : > { %v1295_v32 = vadd.f32 %v4285_v1, %v1275_v8  ;;  %v4288_v8 = vld [vmem:[#allocation23_spill] sm:$0xff]  ;;  %v1896_v1 = vmul.f32 %v3603_v44, %v1895_v24 }
 0x28c   : > { %v1316_v38 = vadd.f32 %v3881_v4, %v1296_v5  ;;  %v1811_v4 = vmul.f32 %v3683_v6, %v1809_v33  ;;  %v1799_v51 = vrot.slane %v1792_v31, 5  ;;  %v1862_v33 = vstv %s3955_s6  ;;  %s2607_s6 = sld [smem:[#allocation5 + $0x3e]] }
 0x28d   : > { %1761 = vrot.lane.b32.xlu1 %v1758_v15, %s2924_s27  ;;  %1801 = vrot.lane.b32.xlu2 %v1798_v11, %s2924_s27  ;;  %v1839_v15 = vrot.slane %v1832_v40, 6  ;;  %v1875_v11 = vstv %s2557_s17  ;;  %v1851_v31 = vmul.f32 %v3683_v6, %v1849_v47  ;;  %s2565_s17 = sld [smem:[#allocation5 + $0x14]] }
 0x28e   : > { %v1329_v23 = vadd.f32 %v4284_v62, %v1316_v38  ;;  %1781 = vrot.lane.b32.xlu0 %v1778_v27, %s2924_s27  ;;  %v1817_v45 = vrot.slane %v1811_v4, 6  ;;  %v1864_v38 = vmul.f32 %v3823_v52, %v1862_v33  ;;  %v1897_v62 = vmul.f32 %v3823_v52, %v1895_v24 }
 0x28f   : > { %v1310_v35 = vpop.permute.xlu1 %1309  ;;  %v3934_v26 = vpop.permute.xlu2 %1477  ;;  %v1840_v27 = vsel %vm759_vm10, %v1837_v48, %v1839_v15  ;;  %v1975_v24 = vstv %s2620_s19  ;;  %s2586_s19 = sld [smem:[#allocation5 + $0x29]] }
 0x290   : > { %v1342_v2 = vadd.f32 %v3777_v63, %v1329_v23  ;;  %v1315_v37 = vadd.f32 %v1310_v35, %v1295_v32  ;;  %v1376_v59 = vpop.permute.xlu0 %1375  ;;  %v1820_v19 = vsel %vm759_vm10, %v1817_v45, %v1819_v21  ;;  %v1800_v63 = vsel %vm726_vm9, %v1797_v43, %v1799_v51 }
 0x291   : > { %v1818_v56 = vsel %vm759_vm10, %v1816_v20, %v1817_v45  ;;  %v1877_v23 = vmul.f32 %v3683_v6, %v1875_v11  ;;  %v1902_v21 = vrot.slane %v1896_v1, 1  ;;  %v1863_v51 = vmul.f32 %v3603_v44, %v1862_v33 }
 0x292   : > { %v1328_v57 = vadd.f32 %v4286_v60, %v1315_v37  ;;  %v1362_v28 = vadd.f32 %v3607_v55, %v1342_v2  ;;  %v1836_v55 = vrot.slane %v1830_v46, 6  ;;  %v1903_v37 = vrot.slane %v1897_v62, 1 }
 0x293   : > { %v1977_v1 = vmul.f32 %v3823_v52, %v1975_v24 }
 0x294   : > { %v1341_v18 = vadd.f32 %v4287_v17, %v1328_v57  ;;  %v1838_v43 = vsel %vm759_vm10, %v1836_v55, %v1837_v48  ;;  %v1915_v57 = vstv %s2564_s26  ;;  %v1904_v17 = vsel %vm595_vm6, %v1902_v21, %v1903_v37  ;;  %s2572_s26 = sld [smem:[#allocation5 + $0x1b]] }
 0x295   : > { %1783 = vrot.lane.b32.xlu1 %v1780_v39, %s2924_s27  ;;  %1823 = vrot.lane.b32.xlu2 %v1820_v19, %s2924_s27  ;;  %v1918_v39 = vmul.f32 %v3708_v36, %v1915_v57  ;;  %v1917_v44 = vmul.f32 %v3683_v6, %v1915_v57  ;;  %v1983_v21 = vrot.slane %v1977_v1, 3 }
 0x296   : > { %v1361_v22 = vadd.f32 %v3774_v14, %v1341_v18  ;;  %1803 = vrot.lane.b32.xlu0 %v1800_v63, %s2924_s27  ;;  %v1850_v14 = vmul.f32 %v3611_v54, %v1849_v47  ;;  %v1878_v18 = vmul.f32 %v3708_v36, %v1875_v11 }
 0x297   : > { %v1378_v16 = vpop.permute.xlu1 %1377  ;;  %v3951_v49 = vpop.permute.xlu2 %1515  ;;  %v1925_v10 = vrot.slane %v1918_v39, 2 }
 0x298   : > { %v1381_v12 = vadd.f32 %v1376_v59, %v1361_v22  ;;  %v1382_v50 = vadd.f32 %v1378_v16, %v1362_v28  ;;  %v1398_v42 = vpop.permute.xlu0 %1397  ;;  %v1883_v59 = vrot.slane %v1877_v23, 1  ;;  %v1885_v22 = vrot.slane %v1878_v18, 1 }
 0x299   : > { %v1905_v16 = vrot.slane %v1898_v13, 1 }
 0x29a   : > { %v1402_v58 = vadd.f32 %v1398_v42, %v1382_v50  ;;  %v1401_v3 = vadd.f32 %v4288_v8, %v1381_v12  ;;  %v1923_v12 = vrot.slane %v1917_v44, 2  ;;  %v1935_v50 = vstv %s2613_s24  ;;  %s2579_s24 = sld [smem:[#allocation5 + $0x22]] }
 0x29b   : > { %v1886_v48 = vsel %vm595_vm6, %v1883_v59, %v1885_v22  ;;  %v1906_v55 = vsel %vm595_vm6, %v1903_v37, %v1905_v16 }
 0x29c   : > { %v1422_v29 = vadd.f32 %v3899_v7, %v1402_v58  ;;  %v1926_v58 = vsel %vm628_vm8, %v1923_v12, %v1925_v10 }
 0x29d   : > { %1821 = vrot.lane.b32.xlu1 %v1818_v56, %s2924_s27  ;;  %1854 = vrot.lane.b32.xlu2 %v1850_v14, %s2925_s23  ;;  %v1916_v14 = vmul.f32 %v3611_v54, %v1915_v57 }
 0x29e   : > { %1841 = vrot.lane.b32.xlu0 %v1838_v43, %s2924_s27  ;;  %v4008_v43 = vld [vmem:[#allocation4 + $0x18] sm:$0xff] }
 0x29f   : > { %v1416_v0 = vpop.permute.xlu1 %1415  ;;  %v3966_v5 = vpop.permute.xlu2 %1537  ;;  %v1936_v8 = vmul.f32 %v4008_v43, %v1935_v50  ;;  %v1976_v13 = vmul.f32 %v4008_v43, %v1975_v24 }
 0x2a0   : > { %v1421_v53 = vadd.f32 %v1416_v0, %v1401_v3  ;;  %v1436_v7 = vpop.permute.xlu0 %1435 }
 0x2a2   : > { %v1441_v9 = vadd.f32 %v1436_v7, %v1421_v53  ;;  %v1922_v7 = vrot.slane %v1916_v14, 2 }
 0x2a4   : > { %v1461_v41 = vadd.f32 %v3917_v30, %v1441_v9  ;;  %v1876_v30 = vmul.f32 %v3611_v54, %v1875_v11  ;;  %v1942_v11 = vrot.slane %v1936_v8, 2 }
 0x2a5   : > { %1843 = vrot.lane.b32.xlu1 %v1840_v27, %s2924_s27  ;;  %1869 = vrot.lane.b32.xlu2 %v1864_v38, %s2925_s23  ;;  %s2571_s27 = sld [smem:[#allocation5 + $0x1a]]  ;;  %v1924_v38 = vsel %vm628_vm8, %v1922_v7, %v1923_v12  ;;  %v1938_v27 = vmul.f32 %v3855_v61, %v1935_v50 }
 0x2a6   : > { %1856 = vrot.lane.b32.xlu0 %v1851_v31, %s2925_s23  ;;  %v1882_v60 = vrot.slane %v1876_v30, 1  ;;  %v1978_v31 = vmul.f32 %v3855_v61, %v1975_v24 }
 0x2a7   : > { %v1438_v32 = vpop.permute.xlu1 %1437  ;;  %v3979_v4 = vpop.permute.xlu2 %1575 }
 0x2a8   : > { %v1442_v35 = vadd.f32 %v1438_v32, %v1422_v29  ;;  %v1458_v2 = vpop.permute.xlu0 %1457  ;;  %v1884_v19 = vsel %vm595_vm6, %v1882_v60, %v1883_v59  ;;  %v1937_v29 = vmul.f32 %v3823_v52, %v1935_v50  ;;  %v1985_v37 = vrot.slane %v1978_v31, 3 }
 0x2a9   : > { %v2015_v60 = vstv %s2627_s8  ;;  %v1982_v50 = vrot.slane %v1976_v13, 3  ;;  %s2635_s8 = sld [smem:[#allocation5 + $0x5a]] }
 0x2aa   : > { %v1462_v25 = vadd.f32 %v1458_v2, %v1442_v35  ;;  %v1943_v15 = vrot.slane %v1937_v29, 2  ;;  %v1945_v2 = vrot.slane %v1938_v27, 2  ;;  %v2016_v44 = vmul.f32 %v4008_v43, %v2015_v60 }
 0x2ab   : > { %v1955_v42 = vstv %s2571_s27  ;;  %s2621_s27 = sld [smem:[#allocation5 + $0x4c]] }
 0x2ac   : > { %v1482_v45 = vadd.f32 %v3934_v26, %v1462_v25  ;;  %v1957_v20 = vmul.f32 %v3683_v6, %v1955_v42  ;;  %v1944_v62 = vsel %vm628_vm8, %v1942_v11, %v1943_v15  ;;  %v1958_v23 = vmul.f32 %v3708_v36, %v1955_v42 }
 0x2ad   : > { %1867 = vrot.lane.b32.xlu1 %v1863_v51, %s2925_s23  ;;  %1907 = vrot.lane.b32.xlu2 %v1904_v17, %s2925_s23  ;;  %v1995_v51 = vstv %s2578_s7  ;;  %v1946_v57 = vsel %vm628_vm8, %v1943_v15, %v1945_v2  ;;  %v2017_v17 = vmul.f32 %v3823_v52, %v2015_v60  ;;  %v2075_v11 = vstv %s2592_s5  ;;  %s2628_s7 = sld [smem:[#allocation5 + $0x53]] }
 0x2ae   : > { %1887 = vrot.lane.b32.xlu0 %v1884_v19, %s2925_s23  ;;  %v1963_v53 = vrot.slane %v1957_v20, 3  ;;  %v1965_v59 = vrot.slane %v1958_v23, 3  ;;  %v1997_v19 = vmul.f32 %v3683_v6, %v1995_v51  ;;  %v2022_v6 = vrot.slane %v2016_v44, 4  ;;  %v4077_v44 = vld [vmem:[#allocation4 + $0x10] sm:$0x3f]  ;;  %s2642_s5 = sld [smem:[#allocation5 + $0x61]] }
 0x2af   : > { %v1476_v63 = vpop.permute.xlu1 %1475  ;;  %v3993_v26 = vpop.permute.xlu2 %1590  ;;  %v2023_v16 = vrot.slane %v2017_v17, 4 }
 0x2b0   : > { %v1481_v34 = vadd.f32 %v1476_v63, %v1461_v41  ;;  %v1496_v28 = vpop.permute.xlu0 %1495  ;;  %v1966_v39 = vsel %vm661_vm7, %v1963_v53, %v1965_v59 }
 0x2b1   : > { %v2024_v20 = vsel %vm199_vm1, %v2022_v6, %v2023_v16 }
 0x2b2   : > { %v1501_v46 = vadd.f32 %v1496_v28, %v1481_v34  ;;  %v4037_v28 = vld [vmem:[#allocation4] sm:$0xff] }
 0x2b3   : > { %v2076_v1 = vmul.f32 %v4037_v28, %v2075_v11 }
 0x2b4   : > { %v1521_v47 = vadd.f32 %v3951_v49, %v1501_v46  ;;  %v1956_v49 = vmul.f32 %v3611_v54, %v1955_v42  ;;  %v2003_v46 = vrot.slane %v1997_v19, 4 }
 0x2b5   : > { %1889 = vrot.lane.b32.xlu1 %v1886_v48, %s2925_s23  ;;  %1929 = vrot.lane.b32.xlu2 %v1926_v58, %s2925_s23  ;;  %v2035_v48 = vstv %s2585_s30  ;;  %v1984_v58 = vsel %vm661_vm7, %v1982_v50, %v1983_v21  ;;  %s2593_s30 = sld [smem:[#allocation5 + $0x30]] }
 0x2b6   : > { %1909 = vrot.lane.b32.xlu0 %v1906_v55, %s2925_s23  ;;  %v1962_v33 = vrot.slane %v1956_v49, 3  ;;  %v2038_v55 = vmul.f32 %v3708_v36, %v2035_v48  ;;  %v2018_v49 = vmul.f32 %v3855_v61, %v2015_v60  ;;  %v2036_v23 = vmul.f32 %v4037_v28, %v2035_v48 }
 0x2b7   : > { %v1498_v56 = vpop.permute.xlu1 %1497  ;;  %v4006_v40 = vpop.permute.xlu2 %1621 }
 0x2b8   : > { %v1502_v3 = vadd.f32 %v1498_v56, %v1482_v45  ;;  %v1518_v0 = vpop.permute.xlu0 %1517  ;;  %v1964_v41 = vsel %vm661_vm7, %v1962_v33, %v1963_v53  ;;  %v1986_v45 = vsel %vm661_vm7, %v1983_v21, %v1985_v37  ;;  %v4050_v56 = vld [vmem:[#allocation4 + $0x8] sm:$0xff]  ;;  %v2045_v7 = vrot.slane %v2038_v55, 5 }
 0x2b9   : > { %v2037_v8 = vmul.f32 %v4050_v56, %v2035_v48  ;;  %v2025_v15 = vrot.slane %v2018_v49, 4  ;;  %v2042_v21 = vrot.slane %v2036_v23, 5 }
 0x2ba   : > { %v1522_v9 = vadd.f32 %v1518_v0, %v1502_v3 }
 0x2bb   : > { %v2043_v33 = vrot.slane %v2037_v8, 5  ;;  %v2026_v31 = vsel %vm199_vm1, %v2023_v16, %v2025_v15 }
 0x2bc   : > { %v1542_v54 = vadd.f32 %v3966_v5, %v1522_v9 }
 0x2bd   : > { %1927 = vrot.lane.b32.xlu1 %v1924_v38, %s2925_s23  ;;  %1967 = vrot.lane.b32.xlu2 %v1964_v41, %s2925_s23  ;;  %v2055_v38 = vstv %s2634_s4  ;;  %v2077_v41 = vmul.f32 %v4050_v56, %v2075_v11  ;;  %v2044_v17 = vsel %vm726_vm9, %v2042_v21, %v2043_v33  ;;  %s2545_s4 = sshll.u32 %s3043_s22, 4 }
 0x2be   : > { %1947 = vrot.lane.b32.xlu0 %v1944_v62, %s2925_s23  ;;  %v2057_v62 = vmul.f32 %v3823_v52, %v2055_v38 }
 0x2bf   : > { %v1536_v32 = vpop.permute.xlu1 %1535  ;;  %v4022_v5 = vpop.permute.xlu2 %1643  ;;  %v2083_v37 = vrot.slane %v2077_v41, 6 }
 0x2c0   : > { %v1541_v30 = vadd.f32 %v1536_v32, %v1521_v47  ;;  %v1556_v35 = vpop.permute.xlu0 %1555  ;;  %v1998_v47 = vmul.f32 %v3708_v36, %v1995_v51  ;;  %v2063_v59 = vrot.slane %v2057_v62, 5 }
 0x2c2   : > { %v1561_v25 = vadd.f32 %v1556_v35, %v1541_v30  ;;  %v2056_v35 = vmul.f32 %v4008_v43, %v2055_v38 }
 0x2c4   : > { %v1581_v18 = vadd.f32 %v3979_v4, %v1561_v25  ;;  %v1996_v4 = vmul.f32 %v4037_v28, %v1995_v51  ;;  %v2082_v51 = vrot.slane %v2076_v1, 6  ;;  %v2062_v60 = vrot.slane %v2056_v35, 5 }
 0x2c5   : > { %1949 = vrot.lane.b32.xlu1 %v1946_v57, %s2925_s23  ;;  %1989 = vrot.lane.b32.xlu2 %v1986_v45, %s2925_s23  ;;  %v2058_v57 = vmul.f32 %v3855_v61, %v2055_v38  ;;  %v2095_v45 = vstv %s2641_s15  ;;  %s2651_s15 = sshll.u32 %s2893_s12, 4  ;;  %s191_s12 = scalar_lea.vmem [#allocation10], %s2545_s4 }
 0x2c6   : > { %1969 = vrot.lane.b32.xlu0 %v1966_v39, %s2925_s23  ;;  %v2002_v42 = vrot.slane %v1996_v4, 4  ;;  %v2098_v39 = vmul.f32 %v3855_v61, %v2095_v45  ;;  %v2064_v13 = vsel %vm726_vm9, %v2062_v60, %v2063_v59  ;;  %v2097_v4 = vmul.f32 %v3823_v52, %v2095_v45 }
 0x2c7   : > { %v1558_v63 = vpop.permute.xlu1 %1557  ;;  %v4035_v34 = vpop.permute.xlu2 %1681  ;;  %v2096_v55 = vmul.f32 %v4008_v43, %v2095_v45 }
 0x2c8   : > { %v1562_v22 = vadd.f32 %v1558_v63, %v1542_v54  ;;  %v1578_v10 = vpop.permute.xlu0 %1577  ;;  %v2004_v29 = vsel %vm199_vm1, %v2002_v42, %v2003_v46  ;;  %v2046_v54 = vsel %vm726_vm9, %v2043_v33, %v2045_v7  ;;  %v2078_v63 = vmul.f32 %v4077_v44, %v2075_v11 }
 0x2c9   : > { %v2103_v42 = vrot.slane %v2097_v4, 6  ;;  %v2141_v7 = vstv %s2558_s28  ;;  %s2434_s28 = scalar_lea.hbm %s4253_s2, %s2651_s15 }
 0x2ca   : > { %v1582_v12 = vadd.f32 %v1578_v10, %v1562_v22  ;;  %v2085_v50 = vrot.slane %v2078_v63, 6  ;;  %v2144_v33 = vmul.f32 %v4077_v44, %v2141_v7  ;;  %v2143_v11 = vmul.f32 %v4050_v56, %v2141_v7 }
 0x2cc   : > { %v1595_v14 = vadd.f32 %v3993_v26, %v1582_v12  ;;  %v2005_v26 = vrot.slane %v1998_v47, 4  ;;  %v2105_v12 = vrot.slane %v2098_v39, 6  ;;  %v2149_v23 = vrot.slane %v2143_v11, 1 }
 0x2cd   : > { %1987 = vrot.lane.b32.xlu1 %v1984_v58, %s2925_s23  ;;  %2027 = vrot.lane.b32.xlu2 %v2024_v20, %s2925_s23  ;;  %v2086_v20 = vsel %vm759_vm10, %v2083_v37, %v2085_v50 }
 0x2ce   : > { %2007 = vrot.lane.b32.xlu0 %v2004_v29, %s2925_s23  ;;  %v2006_v24 = vsel %vm199_vm1, %v2003_v46, %v2005_v26  ;;  %v2106_v48 = vsel %vm759_vm10, %v2103_v42, %v2105_v12  ;;  %v2102_v26 = vrot.slane %v2096_v55, 6 }
 0x2cf   : > { %v1589_v3 = vpop.permute.xlu1 %1588  ;;  %v4053_v0 = vpop.permute.xlu2 %1703 }
 0x2d0   : > { %v1594_v36 = vadd.f32 %v1589_v3, %v1581_v18  ;;  %v1602_v53 = vpop.permute.xlu0 %1601  ;;  %v2084_v18 = vsel %vm759_vm10, %v2082_v51, %v2083_v37  ;;  %v2128_v3 = vstv %s4084_s16  ;;  %v2104_v15 = vsel %vm759_vm10, %v2102_v26, %v2103_v42 }
 0x2d1   : > { %v2130_v35 = vmul.f32 %v3823_v52, %v2128_v3 }
 0x2d2   : > { %v1607_v9 = vadd.f32 %v1602_v53, %v1594_v36  ;;  %v2115_v36 = vstv %s4086_s21 }
 0x2d3   : > { %v2117_v1 = vmul.f32 %v4050_v56, %v2115_v36 }
 0x2d4   : > { %v1627_v27 = vadd.f32 %v4006_v40, %v1607_v9  ;;  %v2116_v9 = vmul.f32 %v4037_v28, %v2115_v36  ;;  %v2221_v36 = vstv %s2572_s26 }
 0x2d5   : > { %2009 = vrot.lane.b32.xlu1 %v2006_v24, %s2925_s23  ;;  %2049 = vrot.lane.b32.xlu2 %v2046_v54, %s2925_s23 }
 0x2d6   : > { %2029 = vrot.lane.b32.xlu0 %v2026_v31, %s2925_s23  ;;  %v2151_v31 = vrot.slane %v2144_v33, 1  ;;  %v2223_v33 = vmul.f32 %v4050_v56, %v2221_v36 }
 0x2d7   : > { %v1604_v32 = vpop.permute.xlu1 %1603  ;;  %v4066_v30 = vpop.permute.xlu2 %1741 }
 0x2d8   : > { %v1608_v40 = vadd.f32 %v1604_v32, %v1595_v14  ;;  %v1624_v2 = vpop.permute.xlu0 %1623  ;;  %v2181_v32 = vstv %s2565_s17  ;;  %s2435_s17 = sshll.u32 %s191_s12, 4  ;;  %s2436_s17 = int_to_ptr.vmem [resolvable:$true] %s2435_s17 }
 0x2d9   : > { %v2182_v21 = vmul.f32 %v4037_v28, %v2181_v32 }
 0x2da   : > { %v1628_v25 = vadd.f32 %v1624_v2, %v1608_v40  ;;  %v2152_v40 = vsel %vm595_vm6, %v2149_v23, %v2151_v31  ;;  %v2183_v2 = vmul.f32 %v4050_v56, %v2181_v32 }
 0x2dc   : > { %v1648_v19 = vadd.f32 %v4022_v5, %v1628_v25  ;;  %v2065_v5 = vrot.slane %v2058_v57, 5  ;;  %v2142_v25 = vmul.f32 %v4037_v28, %v2141_v7 }
 0x2dd   : > { %2047 = vrot.lane.b32.xlu1 %v2044_v17, %s2925_s23  ;;  %2087 = vrot.lane.b32.xlu2 %v2084_v18, %s2925_s23 }
 0x2de   : > { %2067 = vrot.lane.b32.xlu0 %v2064_v13, %s2925_s23  ;;  %v2066_v47 = vsel %vm726_vm9, %v2063_v59, %v2065_v5  ;;  %v2188_v13 = vrot.slane %v2182_v21, 2 }
 0x2df   : > { %v1642_v22 = vpop.permute.xlu1 %1641  ;;  %v4082_v10 = vpop.permute.xlu2 %1763 }
 0x2e0   : > { %v1647_v16 = vadd.f32 %v1642_v22, %v1627_v27  ;;  %v1662_v46 = vpop.permute.xlu0 %1661 }
 0x2e2   : > { %v1667_v6 = vadd.f32 %v1662_v46, %v1647_v16 }
 0x2e4   : > { %v1687_v58 = vadd.f32 %v4035_v34, %v1667_v6  ;;  %v2129_v34 = vmul.f32 %v4008_v43, %v2128_v3  ;;  %v2184_v6 = vmul.f32 %v4077_v44, %v2181_v32  ;;  %v2241_v3 = vstv %s2621_s27 }
 0x2e5   : > { %2069 = vrot.lane.b32.xlu1 %v2066_v47, %s2925_s23  ;;  %2109 = vrot.lane.b32.xlu2 %v2106_v48, %s2925_s23  ;;  %v2244_v21 = vmul.f32 %v3855_v61, %v2241_v3 }
 0x2e6   : > { %2089 = vrot.lane.b32.xlu0 %v2086_v20, %s2925_s23 }
 0x2e7   : > { %v1664_v14 = vpop.permute.xlu1 %1663  ;;  %v4096_v29 = vpop.permute.xlu2 %1801 }
 0x2e8   : > { %v1668_v49 = vadd.f32 %v1664_v14, %v1648_v19  ;;  %v1684_v8 = vpop.permute.xlu0 %1683  ;;  %v2148_v19 = vrot.slane %v2142_v25, 1 }
 0x2ea   : > { %v1688_v53 = vadd.f32 %v1684_v8, %v1668_v49  ;;  %v2150_v16 = vsel %vm595_vm6, %v2148_v19, %v2149_v23 }
 0x2ec   : > { %v1708_v38 = vadd.f32 %v4053_v0, %v1688_v53  ;;  %v2161_v0 = vstv %s2607_s6  ;;  %s2437_s6 = sshll.u32 %s2434_s28, 4  ;;  %s2438_s6 = int_to_ptr.hbm [resolvable:$true] %s2437_s6 }
 0x2ed   : > { %2107 = vrot.lane.b32.xlu1 %v2104_v15, %s2925_s23  ;;  %2133 = vrot.lane.b32.xlu2 %v2129_v34, %s2926_s18  ;;  %s2614_s23 = sld [smem:[#allocation5 + $0x45]]  ;;  %v2163_v59 = vmul.f32 %v3823_v52, %v2161_v0  ;;  %v2162_v57 = vmul.f32 %v4008_v43, %v2161_v0  ;;  %v2164_v4 = vmul.f32 %v3855_v61, %v2161_v0 }
 0x2ee   : > { %2120 = vrot.lane.b32.xlu0 %v2116_v9, %s2926_s18  ;;  %v2243_v34 = vmul.f32 %v3823_v52, %v2241_v3 }
 0x2ef   : > { %v1702_v24 = vpop.permute.xlu1 %1701  ;;  %v4109_v54 = vpop.permute.xlu2 %1823  ;;  %v2169_v18 = vrot.slane %v2163_v59, 1  ;;  %v2168_v63 = vrot.slane %v2162_v57, 1  ;;  %v2171_v55 = vrot.slane %v2164_v4, 1  ;;  %v2281_v4 = vstv %s2628_s7 }
 0x2f0   : > { %v1707_v41 = vadd.f32 %v1702_v24, %v1687_v58  ;;  %v1722_v27 = vpop.permute.xlu0 %1721 }
 0x2f1   : > { %v2170_v50 = vsel %vm595_vm6, %v2168_v63, %v2169_v18  ;;  %v2172_v53 = vsel %vm595_vm6, %v2169_v18, %v2171_v55  ;;  %v2301_v63 = vstv %s2586_s19  ;;  %s2835_s19 = scalar_lea.hbm %s4253_s2, 32 }
 0x2f2   : > { %v1727_v62 = vadd.f32 %v1722_v27, %v1707_v41  ;;  %v2249_v27 = vrot.slane %v2243_v34, 3 }
 0x2f3   : > { %v2201_v22 = vstv %s2614_s23  ;;  %s2829_s23 = sshra.s32 %s2438_s6, 4  ;;  %s2830_s23 = int_to_ptr.hbm [resolvable:$true] %s2829_s23 }
 0x2f4   : > { %v1747_v37 = vadd.f32 %v4066_v30, %v1727_v62  ;;  %v2189_v30 = vrot.slane %v2183_v2, 2  ;;  %v2204_v5 = vmul.f32 %v3855_v61, %v2201_v22  ;;  %v2203_v42 = vmul.f32 %v3823_v52, %v2201_v22  ;;  %s2831_s26 = scalar_lea.hbm %s2830_s23, 16  ;;  %p2836_p8 = scmp.lt.s32.totalorder %s2830_s23, %s4253_s2 }
 0x2f5   : > { %2122 = vrot.lane.b32.xlu1 %v2117_v1, %s2926_s18  ;;  %2155 = vrot.lane.b32.xlu2 %v2152_v40, %s2926_s18  ;;  %v2202_v9 = vmul.f32 %v4008_v43, %v2201_v22  ;;  %v2222_v52 = vmul.f32 %v4037_v28, %v2221_v36  ;;  %v2229_v62 = vrot.slane %v2223_v33, 3  ;;  %v2224_v2 = vmul.f32 %v4077_v44, %v2221_v36  ;;  %p2832_p1 = scmp.ne.s32.totalorder %s2830_s23, %s2831_s26  ;;  %p2837_p11 = scmp.lt.s32.totalorder %s2835_s19, %s2831_s26 }
 0x2f6   : > { %2135 = vrot.lane.b32.xlu0 %v2130_v35, %s2926_s18  ;;  %v2190_v46 = vsel %vm628_vm8, %v2188_v13, %v2189_v30  ;;  %v2211_v14 = vrot.slane %v2204_v5, 2  ;;  %v2209_v8 = vrot.slane %v2203_v42, 2  ;;  %v2261_v35 = vstv %s2579_s24 }
 0x2f7   : > { %v1724_v51 = vpop.permute.xlu1 %1723  ;;  %v4122_v60 = vpop.permute.xlu2 %1854  ;;  %v2208_v31 = vrot.slane %v2202_v9, 2  ;;  %v2228_v32 = vrot.slane %v2222_v52, 3  ;;  %v2231_v18 = vrot.slane %v2224_v2, 3  ;;  %v2302_v42 = vmul.f32 %v4037_v28, %v2301_v63  ;;  %p2833_p2 = pnand %p2832_p1, %p3022_p9  ;;  %p2838_p12 = por %p2837_p11, %p2836_p8 }
 0x2f8   : > { %v1728_v45 = vadd.f32 %v1724_v51, %v1708_v38  ;;  %v1744_v17 = vpop.permute.xlu0 %1743  ;;  %v2212_v26 = vsel %vm628_vm8, %v2209_v8, %v2211_v14  ;;  %v2242_v38 = vmul.f32 %v4008_v43, %v2241_v3  ;;  %v2263_v51 = vmul.f32 %v4050_v56, %v2261_v35 }
 0x2f9   : > { %v2210_v0 = vsel %vm628_vm8, %v2208_v31, %v2209_v8  ;;  %v2230_v25 = vsel %vm661_vm7, %v2228_v32, %v2229_v62  ;;  %v2232_v22 = vsel %vm661_vm7, %v2229_v62, %v2231_v18  ;;  %v2308_v3 = vrot.slane %v2302_v42, 5  ;;  %p2834_p4 = pneg %p2833_p2 }
 0x2fa   : > { %v1748_v39 = vadd.f32 %v1744_v17, %v1728_v45  ;;  %v2248_v1 = vrot.slane %v2242_v38, 3  ;;  %v2269_v13 = vrot.slane %v2263_v51, 4  ;;  %v2361_v32 = vstv %s2642_s5 }
 0x2fb   : > { %p2839_p13 = pnand %p2838_p12, %p2834_p4 }
 0x2fc   : > { %v1768_v12 = vadd.f32 %v4082_v10, %v1748_v39  ;;  %v2191_v10 = vrot.slane %v2184_v6, 2  ;;  %v2250_v40 = vsel %vm661_vm7, %v2248_v1, %v2249_v27 }
 0x2fd   : > { %2153 = vrot.lane.b32.xlu1 %v2150_v16, %s2926_s18  ;;  %2193 = vrot.lane.b32.xlu2 %v2190_v46, %s2926_s18  ;;  %v2303_v16 = vmul.f32 %v4050_v56, %v2301_v63 }
 0x2fe   : > { %2173 = vrot.lane.b32.xlu0 %v2170_v50, %s2926_s18  ;;  %v2192_v15 = vsel %vm628_vm8, %v2189_v30, %v2191_v10  ;;  %v2768_v50 = vld [vmem:[#allocation4 + $0x20] sm:$0xff] }
 0x2ff   : > { %v1762_v47 = vpop.permute.xlu1 %1761  ;;  %v4136_v48 = vpop.permute.xlu2 %1869  ;;  %v2283_v6 = vmul.f32 %v2768_v50, %v2281_v4  ;;  %v2309_v14 = vrot.slane %v2303_v16, 5 }
 0x300   : > { %v1767_v58 = vadd.f32 %v1762_v47, %v1747_v37  ;;  %v1782_v20 = vpop.permute.xlu0 %1781  ;;  %v2264_v37 = vmul.f32 %v4077_v44, %v2261_v35 }
 0x301   : > { %v2310_v34 = vsel %vm726_vm9, %v2308_v3, %v2309_v14 }
 0x302   : > { %v1787_v49 = vadd.f32 %v1782_v20, %v1767_v58  ;;  %v2271_v39 = vrot.slane %v2264_v37, 4  ;;  %v2282_v20 = vmul.f32 %v4008_v43, %v2281_v4  ;;  %v2363_v37 = vmul.f32 %v2768_v50, %v2361_v32 }
 0x304   : > { %v1807_v7 = vadd.f32 %v4096_v29, %v1787_v49  ;;  %v2272_v61 = vsel %vm199_vm1, %v2269_v13, %v2271_v39  ;;  %v2289_v49 = vrot.slane %v2283_v6, 4 }
 0x305   : > { %2175 = vrot.lane.b32.xlu1 %v2172_v53, %s2926_s18  ;;  %2215 = vrot.lane.b32.xlu2 %v2212_v26, %s2926_s18  ;;  %v2288_v53 = vrot.slane %v2282_v20, 4  ;;  %v2321_v26 = vstv %s2635_s8 }
 0x306   : > { %2195 = vrot.lane.b32.xlu0 %v2192_v15, %s2926_s18  ;;  %v2323_v52 = vmul.f32 %v2768_v50, %v2321_v26  ;;  %v2322_v51 = vmul.f32 %v4008_v43, %v2321_v26 }
 0x307   : > { %v1784_v11 = vpop.permute.xlu1 %1783  ;;  %v4149_v24 = vpop.permute.xlu2 %1907  ;;  %v2290_v38 = vsel %vm199_vm1, %v2288_v53, %v2289_v49 }
 0x308   : > { %v1788_v29 = vadd.f32 %v1784_v11, %v1768_v12  ;;  %v1804_v41 = vpop.permute.xlu0 %1803  ;;  %v2262_v12 = vmul.f32 %v4037_v28, %v2261_v35  ;;  %v2304_v11 = vmul.f32 %v4077_v44, %v2301_v63  ;;  %v2341_v35 = vstv %s2593_s30 }
 0x309   : > { %v2344_v16 = vmul.f32 %v4077_v44, %v2341_v35 }
 0x30a   : > { %v1808_v23 = vadd.f32 %v1804_v41, %v1788_v29  ;;  %v2268_v10 = vrot.slane %v2262_v12, 4  ;;  %v2311_v1 = vrot.slane %v2304_v11, 5 }
 0x30b   : > { %v2351_v6 = vrot.slane %v2344_v16, 6 }
 0x30c   : > { %v1828_v59 = vadd.f32 %v4109_v54, %v1808_v23  ;;  %v2251_v54 = vrot.slane %v2244_v21, 3  ;;  %v2270_v36 = vsel %vm199_vm1, %v2268_v10, %v2269_v13  ;;  %v2343_v21 = vmul.f32 %v4050_v56, %v2341_v35 }
 0x30d   : > { %2213 = vrot.lane.b32.xlu1 %v2210_v0, %s2926_s18  ;;  %2253 = vrot.lane.b32.xlu2 %v2250_v40, %s2926_s18  ;;  %v2328_v13 = vrot.slane %v2322_v51, 5 }
 0x30e   : > { %2233 = vrot.lane.b32.xlu0 %v2230_v25, %s2926_s18  ;;  %v2252_v5 = vsel %vm661_vm7, %v2249_v27, %v2251_v54  ;;  %v2312_v25 = vsel %vm726_vm9, %v2309_v14, %v2311_v1  ;;  %v2349_v54 = vrot.slane %v2343_v21, 6 }
 0x30f   : > { %v1822_v57 = vpop.permute.xlu1 %1821  ;;  %v4163_v45 = vpop.permute.xlu2 %1929 }
 0x310   : > { %v1827_v17 = vadd.f32 %v1822_v57, %v1807_v7  ;;  %v1842_v30 = vpop.permute.xlu0 %1841  ;;  %v2769_v7 = vld [vmem:[#allocation4 + $0x28] sm:$0x3f]  ;;  %v2362_v57 = vmul.f32 %v4008_v43, %v2361_v32  ;;  %v2352_v20 = vsel %vm759_vm10, %v2349_v54, %v2351_v6 }
 0x311   : > { %v2284_v15 = vmul.f32 %v2769_v7, %v2281_v4  ;;  %v2324_v9 = vmul.f32 %v2769_v7, %v2321_v26 }
 0x312   : > { %v1847_v19 = vadd.f32 %v1842_v30, %v1827_v17  ;;  %v2342_v30 = vmul.f32 %v4037_v28, %v2341_v35  ;;  %v2368_v63 = vrot.slane %v2362_v57, 6 }
 0x313   : > { %v2291_v31 = vrot.slane %v2284_v15, 4  ;;  %v2331_v62 = vrot.slane %v2324_v9, 5 }
 0x314   : > { %v1860_v46 = vadd.f32 %v4122_v60, %v1847_v19 }
 0x315   : > { %2235 = vrot.lane.b32.xlu1 %v2232_v22, %s2926_s18  ;;  %2275 = vrot.lane.b32.xlu2 %v2272_v61, %s2926_s18  ;;  %v2292_v40 = vsel %vm199_vm1, %v2289_v49, %v2291_v31  ;;  %v2348_v22 = vrot.slane %v2342_v30, 6 }
 0x316   : > { %2255 = vrot.lane.b32.xlu0 %v2252_v5, %s2926_s18 }
 0x317   : > { %v1844_v47 = vpop.permute.xlu1 %1843  ;;  %v4175_v58 = vpop.permute.xlu2 %1967  ;;  %v2350_v28 = vsel %vm759_vm10, %v2348_v22, %v2349_v54 }
 0x318   : > { %v1848_v60 = vadd.f32 %v1844_v47, %v1828_v59  ;;  %v1857_v55 = vpop.permute.xlu0 %1856 }
 0x31a   : > { %v1861_v8 = vadd.f32 %v1857_v55, %v1848_v60 }
 0x31c   : > { %v1874_v33 = vadd.f32 %v4136_v48, %v1861_v8  ;;  %v2329_v48 = vrot.slane %v2323_v52, 5 }
 0x31d   : > { %2273 = vrot.lane.b32.xlu1 %v2270_v36, %s2926_s18  ;;  %2313 = vrot.lane.b32.xlu2 %v2310_v34, %s2926_s18 }
 0x31e   : > { %2293 = vrot.lane.b32.xlu0 %v2290_v38, %s2926_s18  ;;  %v2332_v2 = vsel %vm726_vm9, %v2329_v48, %v2331_v62  ;;  %v2330_v56 = vsel %vm726_vm9, %v2328_v13, %v2329_v48 }
 0x31f   : > { %v1868_v29 = vpop.permute.xlu1 %1867  ;;  %v1990_v23 = vpop.permute.xlu2 %1989 }
 0x320   : > { %v1873_v41 = vadd.f32 %v1868_v29, %v1860_v46  ;;  %v1888_v27 = vpop.permute.xlu0 %1887  ;;  %v2364_v46 = vmul.f32 %v2769_v7, %v2361_v32 }
 0x322   : > { %v1893_v0 = vadd.f32 %v1888_v27, %v1873_v41  ;;  %v2371_v42 = vrot.slane %v2364_v46, 6 }
 0x324   : > { %v1913_v59 = vadd.f32 %v4149_v24, %v1893_v0  ;;  %v2369_v24 = vrot.slane %v2363_v37, 6 }
 0x325   : > { %2295 = vrot.lane.b32.xlu1 %v2292_v40, %s2926_s18  ;;  %2335 = vrot.lane.b32.xlu2 %v2332_v2, %s2926_s18 }
 0x326   : > { %2315 = vrot.lane.b32.xlu0 %v2312_v25, %s2926_s18  ;;  %v2370_v61 = vsel %vm759_vm10, %v2368_v63, %v2369_v24  ;;  %v2372_v60 = vsel %vm759_vm10, %v2369_v24, %v2371_v42 }
 0x327   : > { %v1890_v17 = vpop.permute.xlu1 %1889  ;;  %v2028_v4 = vpop.permute.xlu2 %2027 }
 0x328   : > { %v1894_v18 = vadd.f32 %v1890_v17, %v1874_v33  ;;  %v1910_v39 = vpop.permute.xlu0 %1909 }
 0x32a   : > { %v1914_v19 = vadd.f32 %v1910_v39, %v1894_v18 }
 0x32c   : > { %v1934_v43 = vadd.f32 %v4163_v45, %v1914_v19 }
 0x32d   : > { %2333 = vrot.lane.b32.xlu1 %v2330_v56, %s2926_s18  ;;  %2373 = vrot.lane.b32.xlu2 %v2370_v61, %s2926_s18 }
 0x32e   : > { %2353 = vrot.lane.b32.xlu0 %v2350_v28, %s2926_s18 }
 0x32f   : > { %v1928_v5 = vpop.permute.xlu1 %1927  ;;  %v2050_v45 = vpop.permute.xlu2 %2049 }
 0x330   : > { %v1933_v12 = vadd.f32 %v1928_v5, %v1913_v59  ;;  %v1948_v50 = vpop.permute.xlu0 %1947 }
 0x332   : > { %v1953_v47 = vadd.f32 %v1948_v50, %v1933_v12 }
 0x334   : > { %v1973_v44 = vadd.f32 %v4175_v58, %v1953_v47 }
 0x335   : > { %2355 = vrot.lane.b32.xlu1 %v2352_v20, %s2926_s18 }
 0x336   : > { %2375 = vrot.lane.b32.xlu0 %v2372_v60, %s2926_s18  ;;  %s2423_s18 = scalar_lea.sflag [#allocation7], %s3043_s22 }
 0x337   : > { %v1950_v55 = vpop.permute.xlu1 %1949  ;;  %v2088_v3 = vpop.permute.xlu2 %2087 }
 0x338   : > { %v1954_v14 = vadd.f32 %v1950_v55, %v1934_v43  ;;  %v1970_v10 = vpop.permute.xlu0 %1969 }
 0x33a   : > { %v1974_v49 = vadd.f32 %v1970_v10, %v1954_v14 }
 0x33c   : > { %v1994_v8 = vadd.f32 %v1990_v23, %v1974_v49 }
 0x33f   : > { %v1988_v36 = vpop.permute.xlu1 %1987  ;;  %v2110_v7 = vpop.permute.xlu2 %2109 }
 0x340   : > { %v2008_v53 = vpop.permute.xlu0 %2007  ;;  %v1993_v41 = vadd.f32 %v1988_v36, %v1973_v44 }
 0x342   : > { %v2013_v62 = vadd.f32 %v2008_v53, %v1993_v41 }
 0x344   : > { %v2033_v0 = vadd.f32 %v2028_v4, %v2013_v62 }
 0x347   : > { %v2010_v26 = vpop.permute.xlu1 %2009  ;;  %v2134_v9 = vpop.permute.xlu2 %2133 }
 0x348   : > { %v2030_v34 = vpop.permute.xlu0 %2029  ;;  %v2014_v23 = vadd.f32 %v2010_v26, %v1994_v8 }
 0x34a   : > { %v2034_v35 = vadd.f32 %v2030_v34, %v2014_v23 }
 0x34c   : > { %v2054_v59 = vadd.f32 %v2050_v45, %v2034_v35 }
 0x34f   : > { %v2048_v15 = vpop.permute.xlu1 %2047  ;;  %v2156_v11 = vpop.permute.xlu2 %2155 }
 0x350   : > { %v2068_v58 = vpop.permute.xlu0 %2067  ;;  %v2053_v48 = vadd.f32 %v2048_v15, %v2033_v0 }
 0x352   : > { %v2073_v37 = vadd.f32 %v2068_v58, %v2053_v48 }
 0x354   : > { %v2093_v21 = vadd.f32 %v2088_v3, %v2073_v37 }
 0x357   : > { %v2070_v33 = vpop.permute.xlu1 %2069  ;;  %v2194_v27 = vpop.permute.xlu2 %2193 }
 0x358   : > { %v2090_v38 = vpop.permute.xlu0 %2089  ;;  %v2074_v25 = vadd.f32 %v2070_v33, %v2054_v59 }
 0x35a   : > { %v2094_v30 = vadd.f32 %v2090_v38, %v2074_v25 }
 0x35c   : > { %v2114_v24 = vadd.f32 %v2110_v7, %v2094_v30 }
 0x35f   : > { %v2108_v52 = vpop.permute.xlu1 %2107  ;;  %v2216_v2 = vpop.permute.xlu2 %2215 }
 0x360   : > { %v2121_v29 = vpop.permute.xlu0 %2120  ;;  %v2113_v57 = vadd.f32 %v2108_v52, %v2093_v21 }
 0x362   : > { %v2126_v39 = vadd.f32 %v2121_v29, %v2113_v57 }
 0x364   : > { %v2139_v13 = vadd.f32 %v2134_v9, %v2126_v39 }
 0x367   : > { %v2123_v31 = vpop.permute.xlu1 %2122  ;;  %v2254_v18 = vpop.permute.xlu2 %2253 }
 0x368   : > { %v2136_v1 = vpop.permute.xlu0 %2135  ;;  %v2127_v19 = vadd.f32 %v2123_v31, %v2114_v24 }
 0x36a   : > { %v2140_v22 = vadd.f32 %v2136_v1, %v2127_v19 }
 0x36c   : > { %v2160_v43 = vadd.f32 %v2156_v11, %v2140_v22 }
 0x36f   : > { %v2154_v32 = vpop.permute.xlu1 %2153  ;;  %v2276_v56 = vpop.permute.xlu2 %2275 }
 0x370   : > { %v2174_v40 = vpop.permute.xlu0 %2173  ;;  %v2159_v4 = vadd.f32 %v2154_v32, %v2139_v13 }
 0x372   : > { %v2179_v61 = vadd.f32 %v2174_v40, %v2159_v4 }
 0x374   : > { %v2199_v5 = vadd.f32 %v2194_v27, %v2179_v61 }
 0x377   : > { %v2176_v51 = vpop.permute.xlu1 %2175  ;;  %v2314_v6 = vpop.permute.xlu2 %2313 }
 0x378   : > { %v2196_v17 = vpop.permute.xlu0 %2195  ;;  %v2180_v46 = vadd.f32 %v2176_v51, %v2160_v43 }
 0x37a   : > { %v2200_v50 = vadd.f32 %v2196_v17, %v2180_v46 }
 0x37c   : > { %v2220_v44 = vadd.f32 %v2216_v2, %v2200_v50 }
 0x37f   : > { %v2214_v54 = vpop.permute.xlu1 %2213  ;;  %v2336_v8 = vpop.permute.xlu2 %2335 }
 0x380   : > { %v2234_v63 = vpop.permute.xlu0 %2233  ;;  %v2219_v12 = vadd.f32 %v2214_v54, %v2199_v5 }
 0x382   : > { %v2239_v47 = vadd.f32 %v2234_v63, %v2219_v12 }
 0x384   : > { %v2259_v60 = vadd.f32 %v2254_v18, %v2239_v47 }
 0x387   : > { %v2236_v16 = vpop.permute.xlu1 %2235  ;;  %v2374_v33 = vpop.permute.xlu2 %2373 }
 0x388   : > { %v2256_v28 = vpop.permute.xlu0 %2255  ;;  %v2240_v45 = vadd.f32 %v2236_v16, %v2220_v44 }
 0x38a   : > { %v2260_v10 = vadd.f32 %v2256_v28, %v2240_v45 }
 0x38c   : > { %v2280_v36 = vadd.f32 %v2276_v56, %v2260_v10 }
 0x38f   : > { %v2274_v42 = vpop.permute.xlu1 %2273 }
 0x390   : > { %v2294_v20 = vpop.permute.xlu0 %2293  ;;  %v2279_v55 = vadd.f32 %v2274_v42, %v2259_v60 }
 0x392   : > { %v2299_v3 = vadd.f32 %v2294_v20, %v2279_v55 }
 0x394   : > { %v2319_v26 = vadd.f32 %v2314_v6, %v2299_v3 }
 0x397   : > { %v2296_v14 = vpop.permute.xlu1 %2295 }
 0x398   : > { %v2316_v49 = vpop.permute.xlu0 %2315  ;;  %v2300_v53 = vadd.f32 %v2296_v14, %v2280_v36 }
 0x39a   : > { %v2320_v58 = vadd.f32 %v2316_v49, %v2300_v53 }
 0x39c   : > { %v2340_v52 = vadd.f32 %v2336_v8, %v2320_v58 }
 0x39f   : > { %v2334_v34 = vpop.permute.xlu1 %2333 }
 0x3a0   : > { %v2339_v7 = vadd.f32 %v2334_v34, %v2319_v26  ;;  %v2354_v15 = vpop.permute.xlu0 %2353 }
 0x3a2   : > { %v2359_v9 = vadd.f32 %v2354_v15, %v2339_v7 }
 0x3a4   : > { %v2379_v38 = vadd.f32 %v2374_v33, %v2359_v9 }
 0x3a6   : > { %v2643_v11 = vmul.f32 -1.442695, %v2379_v38 }
 0x3a7   : > { %v2356_v29 = vpop.permute.xlu1 %2355 }
 0x3a8   : > { %2750 = vpow2.f32 %v2643_v11  ;;  %v2360_v41 = vadd.f32 %v2356_v29, %v2340_v52  ;;  %v2376_v27 = vpop.permute.xlu0 %2375 }
 0x3aa   : > { %v2380_v31 = vadd.f32 %v2376_v27, %v2360_v41 }
 0x3ac   : > { %v2644_v62 = vmul.f32 -1.442695, %v2380_v31 }
 0x3ae   : > { %v2751_v1 = vpop.eup %2750  ;;  %2752 = vpow2.f32 %v2644_v62 }
 0x3af   : > { %v2387_v23 = vadd.f32 1.0, %v2751_v1 }
 0x3b1   : > { %2754 = vrcp.f32 %v2387_v23  ;;  %v2400_v2 = vand.u32 2147483648, %v2387_v23  ;;  %v2398_v59 = vand.u32 2147483647, %v2387_v23  ;;  %vm2394_vm12 = vweird.f32 %v2387_v23 }
 0x3b3   : > { %v2401_v57 = vor.u32 1.1754944e-38, %v2400_v2  ;;  %vm2399_vm15 = vcmp.eq.f32.partialorder %v2398_v59, 8.507059e+37 }
 0x3b4   : > { %v2753_v0 = vpop.eup %2752 }
 0x3b5   : > { %v2388_v48 = vadd.f32 1.0, %v2753_v0 }
 0x3b7   : > { %v2755_v32 = vpop.eup %2754  ;;  %2756 = vrcp.f32 %v2388_v48  ;;  %v2415_v18 = vand.u32 2147483648, %v2388_v48  ;;  %v2413_v54 = vand.u32 2147483647, %v2388_v48  ;;  %vm2409_vm1 = vweird.f32 %v2388_v48 }
 0x3b8   : > { %v2390_v35 = vmul.f32 %v2755_v32, %v2387_v23  ;;  %vm2395_vm11 = vweird.f32 %v2755_v32 }
 0x3b9   : > { %vm2396_vm13 = vmor %vm2394_vm12, %vm2395_vm11  ;;  %v2416_v13 = vor.u32 1.1754944e-38, %v2415_v18  ;;  %vm2414_vm3 = vcmp.eq.f32.partialorder %v2413_v54, 8.507059e+37 }
 0x3ba   : > { %v2391_v40 = vsub.f32 1.0, %v2390_v35 }
 0x3bc   : > { %v2392_v37 = vmul.f32 %v2755_v32, %v2391_v40 }
 0x3bd   : > { %v2757_v25 = vpop.eup %2756 }
 0x3be   : > { %v2405_v21 = vmul.f32 %v2757_v25, %v2388_v48  ;;  %v2393_v51 = vadd.f32 %v2755_v32, %v2392_v37  ;;  %vm2410_vm0 = vweird.f32 %v2757_v25 }
 0x3bf   : > { %vm2411_vm2 = vmor %vm2409_vm1, %vm2410_vm0 }
 0x3c0   : > { %v2406_v17 = vsub.f32 1.0, %v2405_v21  ;;  %v2397_v30 = vsel %vm2396_vm13, %v2755_v32, %v2393_v51 }
 0x3c1   : > { %v2402_v39 = vsel %vm2399_vm15, %v2401_v57, %v2397_v30 }
 0x3c2   : > { %v2407_v24 = vmul.f32 %v2757_v25, %v2406_v17  ;;  %2420 = vst.msk [vmem:[%s191_s12] sm:$0xff] %vm2419_vm14, %v2402_v39 }
 0x3c4   : > { %v2408_v19 = vadd.f32 %v2757_v25, %v2407_v24 }
 0x3c6   : > { %v2412_v63 = vsel %vm2411_vm2, %v2757_v25, %v2408_v19 }
 0x3c7   : > { %v2417_v4 = vsel %vm2414_vm3, %v2416_v13, %v2412_v63 }
 0x3c8   : > { %2421 = vst.msk [vmem:[%s191_s12 + $0x8] sm:$0xff] %vm2419_vm14, %v2417_v4 }
 0x3c9   : > { %2842 = shalt.err (!%p2839_p13)
}
 0x3ca   : > { %s2927_s22 = smov 128   ;;  %s2928_s30 = smov 8  }
 0x3cb   : > { %2658 = dma.vmem_to_hbm [thread:$0]  (%p3022_p9), %s2436_s17, 256, %s2438_s6, %s2423_s18, %s2927_s22, %s2927_s22, %s2928_s30  }
 0x3cc PF: > { %s2452_s5 = sand.u32 1, %s2881_s9   ;;  %p4289_p0 = scmp.ge.s32.totalorder %s2901_s14, 2 }
 0x3cd   : > { %s2453_s4 = scalar_lea.sflag [#allocation7], %s2452_s5 }
 0x3ce   : > { %p2669_p3 = pnand %p4289_p0, %p2993_p6 }
 0x3d0   : > { %p2670_p5 = pneg %p2669_p3 }
 0x3d2   : > { %2876 = dma.done.wait (%p2670_p5), %s2453_s4, 256  }
 0x3d3   : > { %2878 = vsyncadd (%p2670_p5), %s2453_s4, 4294967040  ;;  %s19_s14 = sadd.s32 1, %s2901_s14   ;;  %s4290_s9 = smov %s2885_s10 }
 0x3d4   : > { %p16_p7 = scmp.ge.s32.totalorder %s19_s14, 4   ;;  %s4291_s10 = smov %s2889_s11 }
 0x3d5   : > { %s4292_s11 = smov %s3028_s3  ;;  %s4293_s12 = smov %s2897_s13 }
 0x3d6   : > { %s4294_s13 = smov %s4296_s25  ;;  %18 = sbr.rel (!%p16_p7) target bundleno = 7 (0x7), region = 87 }
 0x3db   :  { %2459 = vsyncpa [#allocation6], 1 }
 0x3dc   :  { %2461 = vsyncpa [#allocation6 + $0x1], 1 }
 0x3dd   :  { %2462 = vsyncpa [#allocation7], 1 }
 0x3de   :  { %2464 = vsyncpa [#allocation7 + $0x1], 1 }
 0x3df   :  { %2465 = vsyncpa [#allocation8], 1 }
 0x3e0   :  { %2467 = vsyncpa [#allocation8 + $0x1], 1 }

</bundles_post_ra>
